<compile_context>
chip_gen: v7x
topology: tpu7x:2x2x1
jax: 0.10.0
libtpu: 0.0.40
codegen_flags: <defaults>
</compile_context>

<pallas_src>
import math
import functools

import jax
import jax.numpy as jnp
from jax.experimental import pallas as pl
from jax.experimental.pallas import tpu as pltpu


def _attention_pool_kernel(x_ref, wq_ref, wkv_ref, q0b_ref, kvbr_ref,
                           kvb0_ref, mch_ref, mhc_ref, wc_ref, bc_ref,
                           out_ref, *, num_heads):
    """One grid step processes a tile of Bt batch elements.

    x_ref    : (Bt, L, C)    bf16  input tokens (NLC layout)
    wq_ref   : (C, C)        bf16  q projection (pooled token only)
    wkv_ref  : (C, 2C)       bf16  k/v projection
    q0b_ref  : (1, C)        f32   pos[0] @ Wq + b_q
    kvbr_ref : (L, 2C)       f32   pos[1:] @ Wkv + b_kv   (tokens 1..L)
    kvb0_ref : (1, 2C)       f32   pos[0]  @ Wkv + b_kv   (mean token)
    mch_ref  : (C, H)        f32   head membership (reduce channels -> heads)
    mhc_ref  : (H, C)        f32   head membership (expand heads -> channels)
    wc_ref   : (C, Cout_p)   bf16  output projection (lane padded)
    bc_ref   : (1, Cout_p)   f32
    out_ref  : (Bt, Cout_p)  f32
    """
    Bt, L, C = x_ref.shape
    ch = C // num_heads
    scale = 1.0 / math.sqrt(ch)   # (ch**-0.25 on q) * (ch**-0.25 on k), folded

    x = x_ref[...]                                            # (Bt, L, C) bf16

    # ---- k/v projection for all Bt*L regular tokens: ONE big MXU matmul ----
    kv_x = jnp.dot(x.reshape(Bt * L, C), wkv_ref[...],
                   preferred_element_type=jnp.float32)        # (Bt*L, 2C) f32
    kv_x = kv_x.reshape(Bt, L, 2 * C)

    # Mean ("pooled") token k/v, computed PER batch element.  Matmul is
    # linear, so mean_l(x_b) @ Wkv == mean_l(x_b @ Wkv): no extra projection
    # and no unaligned (L+1, C) concat.
    kv0 = jnp.mean(kv_x, axis=1) + kvb0_ref[...]              # (Bt, 2C)
    kv_r = kv_x + kvbr_ref[...][None]                         # (Bt, L, 2C)
    k0, v0 = kv0[:, :C], kv0[:, C:]                           # (Bt, C)
    k_r, v_r = kv_r[:, :, :C], kv_r[:, :, C:]                 # (Bt, L, C)

    # ---- q projection for the pooled token only ----------------------------
    mean_x = jnp.mean(x.astype(jnp.float32), axis=1)          # (Bt, C), per batch
    q0 = jnp.dot(mean_x.astype(jnp.bfloat16), wq_ref[...],
                 preferred_element_type=jnp.float32) + q0b_ref[...]
    q0 = q0 * scale                                           # (Bt, C)

    # ---- all-head logits in one shot ---------------------------------------
    # logits[b, l, h] = sum_{c in head h} q0[b, c] * k[b, l, c]
    p_r = q0[:, None, :] * k_r                                # (Bt, L, C)
    logits_r = jnp.dot(p_r.reshape(Bt * L, C), mch_ref[...],
                       preferred_element_type=jnp.float32)
    logits_r = logits_r.reshape(Bt, L, num_heads)             # (Bt, L, H)
    logits_0 = jnp.dot(q0 * k0, mch_ref[...],
                       preferred_element_type=jnp.float32)    # (Bt, H)

    # ---- single fused softmax over the S = L+1 tokens (f32) ----------------
    m = jnp.maximum(jnp.max(logits_r, axis=1), logits_0)      # (Bt, H)
    e_r = jnp.exp(logits_r - m[:, None, :])                   # (Bt, L, H)
    e_0 = jnp.exp(logits_0 - m)                               # (Bt, H)
    inv = pl.reciprocal(e_0 + jnp.sum(e_r, axis=1), approx=True)
    w_r = e_r * inv[:, None, :]                               # (Bt, L, H)
    w_0 = e_0 * inv                                           # (Bt, H)

    # ---- weighted sum of v: expand per-head weights back to channels -------
    wr_exp = jnp.dot(w_r.reshape(Bt * L, num_heads), mhc_ref[...],
                     preferred_element_type=jnp.float32).reshape(Bt, L, C)
    w0_exp = jnp.dot(w_0, mhc_ref[...],
                     preferred_element_type=jnp.float32)      # (Bt, C)
    a0 = jnp.sum(wr_exp * v_r, axis=1) + w0_exp * v0          # (Bt, C)

    # ---- output projection (Conv1d k=1), lane-dense store ------------------
    out = jnp.dot(a0.astype(jnp.bfloat16), wc_ref[...],
                  preferred_element_type=jnp.float32) + bc_ref[...]
    out_ref[...] = out.astype(out_ref.dtype)


def attention_pool_3d(x, pos_emb, w_qkv, b_qkv, w_c, b_c, num_heads,
                      batch_tile=8):
    """Forward pass of AttentionPool3d.

    x:       (B, C, *spatial)   "NCTHW" input
    pos_emb: (C, L+1)           positional_embedding parameter
    w_qkv:   (3C, C[, 1])       qkv_proj Conv1d(k=1) weight
    b_qkv:   (3C,)              qkv_proj bias
    w_c:     (Cout, C[, 1])     c_proj Conv1d(k=1) weight
    b_c:     (Cout,)            c_proj bias
    returns: (B, Cout)
    """
    B, C = x.shape[0], x.shape[1]
    L = int(math.prod(x.shape[2:]))
    H = num_heads
    assert C % H == 0
    ch = C // H

    f32, bf16 = jnp.float32, jnp.bfloat16
    w_qkv = w_qkv.reshape(3 * C, C)
    w_c = w_c.reshape(-1, C)
    Cout = w_c.shape[0]

    # ---- wrapper-side layout plumbing & one-time parameter folding ---------
    x_blc = x.reshape(B, C, L).transpose(0, 2, 1).astype(bf16)    # (B, L, C)
    pos = pos_emb.astype(f32).T                                   # (L+1, C)
    wq = w_qkv[:C].astype(f32).T                                  # (C, C)
    wkv = w_qkv[C:].astype(f32).T                                 # (C, 2C)
    bq = b_qkv[:C].astype(f32)
    bkv = b_qkv[C:].astype(f32)

    # Fold the positional embedding + conv biases through the (linear)
    # projections so the kernel never builds the unaligned (L+1, C) tensor.
    q0_bias = pos[0:1] @ wq + bq[None]                            # (1, C)
    kv_bias = pos @ wkv + bkv[None]                               # (L+1, 2C)
    kv_bias0 = kv_bias[0:1]                                       # mean token
    kv_bias_r = kv_bias[1:]                                       # tokens 1..L

    # Head-membership matrices (reduce channels->heads, expand heads->channels).
    head_id = jnp.arange(C, dtype=jnp.int32) // ch
    m_ch = (head_id[:, None] == jnp.arange(H, dtype=jnp.int32)[None, :]).astype(f32)
    m_hc = m_ch.T

    # Lane-dense output: pad Cout up to a multiple of 128.
    cout_p = max(128, -(-Cout // 128) * 128)
    wc_p = jnp.zeros((C, cout_p), bf16).at[:, :Cout].set(w_c.astype(bf16).T)
    bc_p = jnp.zeros((1, cout_p), f32).at[:, :Cout].set(b_c.astype(f32)[None, :])

    # Batch tiling: Bt batches per grid step (pad B; padded rows discarded).
    bt = max(1, min(batch_tile, B))
    if bt < B and bt % 8 != 0:
        bt = -(-bt // 8) * 8          # keep the (bt, Cout_p) store sublane aligned
    n_tiles = -(-B // bt)
    Bp = n_tiles * bt
    if Bp != B:
        x_blc = jnp.concatenate(
            [x_blc, jnp.zeros((Bp - B, L, C), x_blc.dtype)], axis=0)

    kernel = functools.partial(_attention_pool_kernel, num_heads=H)
    args = (x_blc, wq.astype(bf16), wkv.astype(bf16), q0_bias, kv_bias_r,
            kv_bias0, m_ch, m_hc, wc_p, bc_p)

    # NOTE: at these sizes everything fits the default 32 MiB scoped VMEM.
    # For large C (>= 2048) raise vmem_limit_bytes on v5e/v6e, and on v7x
    # additionally tile the kv projection over the 2C weight-column axis so
    # Wkv never has to be fully resident in 64 MiB of VMEM.
    # TODO(synk): weight-column tiling of the kv projection for C >= 2048.
    def build(single_buffer_consts):
        const_kwargs = (dict(pipeline_mode=pl.Buffered(1))
                        if single_buffer_consts else {})

        def const_spec(shape):
            # constant index map -> block is resident; single buffer suffices
            return pl.BlockSpec(shape, lambda b: (0,) * len(shape),
                                **const_kwargs)

        in_specs = [
            pl.BlockSpec((bt, L, C), lambda b: (b, 0, 0)),    # x batch tile
            const_spec((C, C)),                               # Wq
            const_spec((C, 2 * C)),                           # Wkv
            const_spec((1, C)),                               # q0 bias
            const_spec((L, 2 * C)),                           # kv bias, tokens 1..L
            const_spec((1, 2 * C)),                           # kv bias, mean token
            const_spec((C, H)),                               # head reduce matrix
            const_spec((H, C)),                               # head expand matrix
            const_spec((C, cout_p)),                          # Wc (lane padded)
            const_spec((1, cout_p)),                          # bc (lane padded)
        ]
        return pl.pallas_call(
            kernel,
            out_shape=jax.ShapeDtypeStruct((Bp, cout_p), jnp.float32),
            grid=(n_tiles,),
            in_specs=in_specs,
            out_specs=pl.BlockSpec((bt, cout_p), lambda b: (b, 0)),
            compiler_params=pltpu.CompilerParams(
                dimension_semantics=("parallel",)),
        )

    try:
        out_p = build(single_buffer_consts=True)(*args)
    except Exception:
        # pipeline_mode=pl.Buffered(1) not supported by this JAX/Mosaic build;
        # fall back to default (double-buffered) constant operands.
        out_p = build(single_buffer_consts=False)(*args)

    return out_p[:B, :Cout]


def reference_attention_pool_3d(x, pos_cs, Wqkv, bqkv, Wc, bc, num_heads):
    """Pure-JAX f32 replica of the PyTorch forward (NCTHW in, NC out)."""
    b, c = x.shape[:2]
    xf = x.reshape(b, c, -1)
    xf = jnp.concatenate([xf.mean(axis=-1, keepdims=True), xf], axis=-1)
    xf = xf + pos_cs[None]
    qkv = jnp.einsum('oc,bct->bot', Wqkv, xf) + bqkv[None, :, None]
    S = qkv.shape[-1]
    ch = c // num_heads
    q, k, v = jnp.split(qkv, 3, axis=1)
    scale = 1.0 / math.sqrt(math.sqrt(ch))
    q = q.reshape(b * num_heads, ch, S)
    k = k.reshape(b * num_heads, ch, S)
    v = v.reshape(b * num_heads, ch, S)
    w = jnp.einsum('bct,bcs->bts', q * scale, k * scale)
    w = jax.nn.softmax(w.astype(jnp.float32), axis=-1)
    a = jnp.einsum('bts,bcs->bct', w, v).reshape(b, c, S)
    out = jnp.einsum('oc,bct->bot', Wc, a) + bc[None, :, None]
    return out[:, :, 0]


if __name__ == "__main__":
    key = jax.random.PRNGKey(0)
    # embed_dim = 128, spatial T*H*W = 32 (data_dim), batch 16 -> grid of 2
    B, C, T, Hs, Ws = 16, 128, 2, 4, 4
    num_heads = 4
    Cout = 64                          # output_dim
    L = T * Hs * Ws
    S = L + 1

    k1, k2, k3, k4, k5, k6 = jax.random.split(key, 6)
    x = jax.random.normal(k1, (B, C, T, Hs, Ws), jnp.float32)
    pos_cs = jax.random.normal(k2, (C, S), jnp.float32) / (C ** 0.5)
    Wqkv = jax.random.normal(k3, (3 * C, C), jnp.float32) / math.sqrt(C)
    bqkv = jax.random.normal(k4, (3 * C,), jnp.float32) * 0.02
    Wc = jax.random.normal(k5, (Cout, C), jnp.float32) / math.sqrt(C)
    bc = jax.random.normal(k6, (Cout,), jnp.float32) * 0.02

    out = attention_pool_3d(x, pos_cs, Wqkv, bqkv, Wc, bc, num_heads)
    out = jax.block_until_ready(out)

    ref = reference_attention_pool_3d(x, pos_cs, Wqkv, bqkv, Wc, bc, num_heads)
    assert out.shape == (B, Cout), out.shape
    max_err = float(jnp.max(jnp.abs(out - ref)))
    # bf16 matmul operands (f32 accumulate / f32 softmax) vs. f32 reference.
    assert jnp.allclose(out, ref, rtol=5e-2, atol=5e-2), max_err
    print("KERNEL_OK")
</pallas_src>

<mosaic_0001>
module attributes {stable_mosaic.version = 11 : i64} {
  func.func @_attention_pool_kernel(%arg0: i32, %arg1: memref<8x32x128xbf16, #tpu.memory_space<vmem>>, %arg2: memref<128x128xbf16, #tpu.memory_space<vmem>>, %arg3: memref<128x256xbf16, #tpu.memory_space<vmem>>, %arg4: memref<1x128xf32, #tpu.memory_space<vmem>>, %arg5: memref<32x256xf32, #tpu.memory_space<vmem>>, %arg6: memref<1x256xf32, #tpu.memory_space<vmem>>, %arg7: memref<128x4xf32, #tpu.memory_space<vmem>>, %arg8: memref<4x128xf32, #tpu.memory_space<vmem>>, %arg9: memref<128x128xbf16, #tpu.memory_space<vmem>>, %arg10: memref<1x128xf32, #tpu.memory_space<vmem>>, %arg11: memref<8x128xf32, #tpu.memory_space<vmem>>) attributes {dimension_semantics = [#tpu.dimension_semantics<parallel>], iteration_bounds = array<i64: 2>, scalar_prefetch = 0 : i64, scratch_operands = 0 : i64, tpu.core_type = #tpu.core_type<tc>, window_params = [{transform_indices = @transform_0, window_bounds = array<i64: 8, 32, 128>}, {pipeline_mode = #tpu.pipeline_mode<synchronous>, transform_indices = @transform_1, window_bounds = array<i64: 128, 128>}, {pipeline_mode = #tpu.pipeline_mode<synchronous>, transform_indices = @transform_2, window_bounds = array<i64: 128, 256>}, {pipeline_mode = #tpu.pipeline_mode<synchronous>, transform_indices = @transform_3, window_bounds = array<i64: 1, 128>}, {pipeline_mode = #tpu.pipeline_mode<synchronous>, transform_indices = @transform_4, window_bounds = array<i64: 32, 256>}, {pipeline_mode = #tpu.pipeline_mode<synchronous>, transform_indices = @transform_5, window_bounds = array<i64: 1, 256>}, {pipeline_mode = #tpu.pipeline_mode<synchronous>, transform_indices = @transform_6, window_bounds = array<i64: 128, 4>}, {pipeline_mode = #tpu.pipeline_mode<synchronous>, transform_indices = @transform_7, window_bounds = array<i64: 4, 128>}, {pipeline_mode = #tpu.pipeline_mode<synchronous>, transform_indices = @transform_8, window_bounds = array<i64: 128, 128>}, {pipeline_mode = #tpu.pipeline_mode<synchronous>, transform_indices = @transform_9, window_bounds = array<i64: 1, 128>}, {transform_indices = @transform_10, window_bounds = array<i64: 8, 128>}]} {
    %c0 = arith.constant 0 : index
    %c0_0 = arith.constant 0 : index
    %c0_1 = arith.constant 0 : index
    %0 = vector.load %arg1[%c0, %c0_0, %c0_1] : memref<8x32x128xbf16, #tpu.memory_space<vmem>>, vector<8x32x128xbf16>
    %1 = vector.shape_cast %0 : vector<8x32x128xbf16> to vector<256x128xbf16>
    %c0_2 = arith.constant 0 : index
    %c0_3 = arith.constant 0 : index
    %2 = vector.load %arg3[%c0_2, %c0_3] : memref<128x256xbf16, #tpu.memory_space<vmem>>, vector<128x256xbf16>
    %cst = arith.constant dense<0.000000e+00> : vector<256x256xf32>
    %3 = tpu.matmul %1, %2, %cst {dimension_numbers = #tpu.dot_dimension_numbers<[1], [0], [0], [1], [0, 0, 1, 1], [], []>} : vector<256x128xbf16>, vector<128x256xbf16>, vector<256x256xf32> -> vector<256x256xf32>
    %4 = vector.shape_cast %3 : vector<256x256xf32> to vector<8x32x256xf32>
    %cst_4 = arith.constant dense<0.000000e+00> : vector<8x256xf32>
    %5 = vector.multi_reduction <add>, %4, %cst_4 [1] : vector<8x32x256xf32> to vector<8x256xf32>
    %cst_5 = arith.constant 3.200000e+01 : f32
    %6 = vector.broadcast %cst_5 : f32 to vector<8x256xf32>
    %7 = arith.divf %5, %6 : vector<8x256xf32>
    %c0_6 = arith.constant 0 : index
    %c0_7 = arith.constant 0 : index
    %8 = vector.load %arg6[%c0_6, %c0_7] : memref<1x256xf32, #tpu.memory_space<vmem>>, vector<1x256xf32>
    %9 = vector.broadcast %8 : vector<1x256xf32> to vector<8x256xf32>
    %10 = arith.addf %7, %9 : vector<8x256xf32>
    %c0_8 = arith.constant 0 : index
    %c0_9 = arith.constant 0 : index
    %11 = vector.load %arg5[%c0_8, %c0_9] : memref<32x256xf32, #tpu.memory_space<vmem>>, vector<32x256xf32>
    %12 = vector.shape_cast %11 : vector<32x256xf32> to vector<1x32x256xf32>
    %13 = vector.broadcast %12 : vector<1x32x256xf32> to vector<8x32x256xf32>
    %14 = arith.addf %4, %13 : vector<8x32x256xf32>
    %15 = vector.extract_strided_slice %10 {offsets = [0, 0], sizes = [8, 128], strides = [1, 1]} : vector<8x256xf32> to vector<8x128xf32>
    %16 = vector.extract_strided_slice %10 {offsets = [0, 128], sizes = [8, 128], strides = [1, 1]} : vector<8x256xf32> to vector<8x128xf32>
    %17 = vector.extract_strided_slice %14 {offsets = [0, 0, 0], sizes = [8, 32, 128], strides = [1, 1, 1]} : vector<8x32x256xf32> to vector<8x32x128xf32>
    %18 = vector.extract_strided_slice %14 {offsets = [0, 0, 128], sizes = [8, 32, 128], strides = [1, 1, 1]} : vector<8x32x256xf32> to vector<8x32x128xf32>
    %19 = arith.extf %0 : vector<8x32x128xbf16> to vector<8x32x128xf32>
    %cst_10 = arith.constant dense<0.000000e+00> : vector<8x128xf32>
    %20 = vector.multi_reduction <add>, %19, %cst_10 [1] : vector<8x32x128xf32> to vector<8x128xf32>
    %cst_11 = arith.constant 3.200000e+01 : f32
    %21 = vector.broadcast %cst_11 : f32 to vector<8x128xf32>
    %22 = arith.divf %20, %21 : vector<8x128xf32>
    %23 = arith.truncf %22 : vector<8x128xf32> to vector<8x128xbf16>
    %c0_12 = arith.constant 0 : index
    %c0_13 = arith.constant 0 : index
    %24 = vector.load %arg2[%c0_12, %c0_13] : memref<128x128xbf16, #tpu.memory_space<vmem>>, vector<128x128xbf16>
    %cst_14 = arith.constant dense<0.000000e+00> : vector<8x128xf32>
    %25 = tpu.matmul %23, %24, %cst_14 {dimension_numbers = #tpu.dot_dimension_numbers<[1], [0], [0], [1], [0, 0, 1, 1], [], []>} : vector<8x128xbf16>, vector<128x128xbf16>, vector<8x128xf32> -> vector<8x128xf32>
    %c0_15 = arith.constant 0 : index
    %c0_16 = arith.constant 0 : index
    %26 = vector.load %arg4[%c0_15, %c0_16] : memref<1x128xf32, #tpu.memory_space<vmem>>, vector<1x128xf32>
    %27 = vector.broadcast %26 : vector<1x128xf32> to vector<8x128xf32>
    %28 = arith.addf %25, %27 : vector<8x128xf32>
    %cst_17 = arith.constant 0.176776692 : f32
    %29 = vector.broadcast %cst_17 : f32 to vector<8x128xf32>
    %30 = arith.mulf %28, %29 : vector<8x128xf32>
    %31 = vector.shape_cast %30 : vector<8x128xf32> to vector<8x1x128xf32>
    %32 = vector.broadcast %31 : vector<8x1x128xf32> to vector<8x32x128xf32>
    %33 = arith.mulf %32, %17 : vector<8x32x128xf32>
    %34 = vector.shape_cast %33 : vector<8x32x128xf32> to vector<256x128xf32>
    %c0_18 = arith.constant 0 : index
    %c0_19 = arith.constant 0 : index
    %35 = vector.load %arg7[%c0_18, %c0_19] : memref<128x4xf32, #tpu.memory_space<vmem>>, vector<128x4xf32>
    %cst_20 = arith.constant dense<0.000000e+00> : vector<256x4xf32>
    %36 = tpu.matmul %34, %35, %cst_20 {dimension_numbers = #tpu.dot_dimension_numbers<[1], [0], [0], [1], [0, 0, 1, 1], [], []>} : vector<256x128xf32>, vector<128x4xf32>, vector<256x4xf32> -> vector<256x4xf32>
    %37 = vector.shape_cast %36 : vector<256x4xf32> to vector<8x32x4xf32>
    %38 = arith.mulf %30, %15 : vector<8x128xf32>
    %c0_21 = arith.constant 0 : index
    %c0_22 = arith.constant 0 : index
    %39 = vector.load %arg7[%c0_21, %c0_22] : memref<128x4xf32, #tpu.memory_space<vmem>>, vector<128x4xf32>
    %cst_23 = arith.constant dense<0.000000e+00> : vector<8x4xf32>
    %40 = tpu.matmul %38, %39, %cst_23 {dimension_numbers = #tpu.dot_dimension_numbers<[1], [0], [0], [1], [0, 0, 1, 1], [], []>} : vector<8x128xf32>, vector<128x4xf32>, vector<8x4xf32> -> vector<8x4xf32>
    %cst_24 = arith.constant dense<0xFF800000> : vector<8x4xf32>
    %41 = vector.multi_reduction <maximumf>, %37, %cst_24 [1] : vector<8x32x4xf32> to vector<8x4xf32>
    %42 = arith.maximumf %41, %40 : vector<8x4xf32>
    %43 = vector.shape_cast %42 : vector<8x4xf32> to vector<8x1x4xf32>
    %44 = vector.broadcast %43 : vector<8x1x4xf32> to vector<8x32x4xf32>
    %45 = arith.subf %37, %44 : vector<8x32x4xf32>
    %46 = math.exp %45 : vector<8x32x4xf32>
    %47 = arith.subf %40, %42 : vector<8x4xf32>
    %48 = math.exp %47 : vector<8x4xf32>
    %cst_25 = arith.constant dense<0.000000e+00> : vector<8x4xf32>
    %49 = vector.multi_reduction <add>, %46, %cst_25 [1] : vector<8x32x4xf32> to vector<8x4xf32>
    %50 = arith.addf %48, %49 : vector<8x4xf32>
    %51 = tpu.reciprocal %50 {approx = true} : vector<8x4xf32> -> vector<8x4xf32>
    %52 = vector.shape_cast %51 : vector<8x4xf32> to vector<8x1x4xf32>
    %53 = vector.broadcast %52 : vector<8x1x4xf32> to vector<8x32x4xf32>
    %54 = arith.mulf %46, %53 : vector<8x32x4xf32>
    %55 = arith.mulf %48, %51 : vector<8x4xf32>
    %56 = vector.shape_cast %54 : vector<8x32x4xf32> to vector<256x4xf32>
    %c0_26 = arith.constant 0 : index
    %c0_27 = arith.constant 0 : index
    %57 = vector.load %arg8[%c0_26, %c0_27] : memref<4x128xf32, #tpu.memory_space<vmem>>, vector<4x128xf32>
    %cst_28 = arith.constant dense<0.000000e+00> : vector<256x128xf32>
    %58 = tpu.matmul %56, %57, %cst_28 {dimension_numbers = #tpu.dot_dimension_numbers<[1], [0], [0], [1], [0, 0, 1, 1], [], []>} : vector<256x4xf32>, vector<4x128xf32>, vector<256x128xf32> -> vector<256x128xf32>
    %59 = vector.shape_cast %58 : vector<256x128xf32> to vector<8x32x128xf32>
    %c0_29 = arith.constant 0 : index
    %c0_30 = arith.constant 0 : index
    %60 = vector.load %arg8[%c0_29, %c0_30] : memref<4x128xf32, #tpu.memory_space<vmem>>, vector<4x128xf32>
    %cst_31 = arith.constant dense<0.000000e+00> : vector<8x128xf32>
    %61 = tpu.matmul %55, %60, %cst_31 {dimension_numbers = #tpu.dot_dimension_numbers<[1], [0], [0], [1], [0, 0, 1, 1], [], []>} : vector<8x4xf32>, vector<4x128xf32>, vector<8x128xf32> -> vector<8x128xf32>
    %62 = arith.mulf %59, %18 : vector<8x32x128xf32>
    %cst_32 = arith.constant dense<0.000000e+00> : vector<8x128xf32>
    %63 = vector.multi_reduction <add>, %62, %cst_32 [1] : vector<8x32x128xf32> to vector<8x128xf32>
    %64 = arith.mulf %61, %16 : vector<8x128xf32>
    %65 = arith.addf %63, %64 : vector<8x128xf32>
    %66 = arith.truncf %65 : vector<8x128xf32> to vector<8x128xbf16>
    %c0_33 = arith.constant 0 : index
    %c0_34 = arith.constant 0 : index
    %67 = vector.load %arg9[%c0_33, %c0_34] : memref<128x128xbf16, #tpu.memory_space<vmem>>, vector<128x128xbf16>
    %cst_35 = arith.constant dense<0.000000e+00> : vector<8x128xf32>
    %68 = tpu.matmul %66, %67, %cst_35 {dimension_numbers = #tpu.dot_dimension_numbers<[1], [0], [0], [1], [0, 0, 1, 1], [], []>} : vector<8x128xbf16>, vector<128x128xbf16>, vector<8x128xf32> -> vector<8x128xf32>
    %c0_36 = arith.constant 0 : index
    %c0_37 = arith.constant 0 : index
    %69 = vector.load %arg10[%c0_36, %c0_37] : memref<1x128xf32, #tpu.memory_space<vmem>>, vector<1x128xf32>
    %70 = vector.broadcast %69 : vector<1x128xf32> to vector<8x128xf32>
    %71 = arith.addf %68, %70 : vector<8x128xf32>
    %c0_38 = arith.constant 0 : index
    %c0_39 = arith.constant 0 : index
    %72 = vector.load %arg11[%c0_38, %c0_39] : memref<8x128xf32, #tpu.memory_space<vmem>>, vector<8x128xf32>
    tpu.vector_store %arg11[%c0_38, %c0_39], %71 {strides = array<i32>} : memref<8x128xf32, #tpu.memory_space<vmem>>, vector<8x128xf32>,
    return
  }
  func.func @transform_0(%arg0: i32) -> (i32, i32, i32) {
    %c0_i32 = arith.constant 0 : i32
    %c0_i32_0 = arith.constant 0 : i32
    %c0_i32_1 = arith.constant 0 : i32
    return %arg0, %c0_i32, %c0_i32_0 : i32, i32, i32
  }
  func.func @transform_1(%arg0: i32) -> (i32, i32) {
    %c0_i32 = arith.constant 0 : i32
    %c0_i32_0 = arith.constant 0 : i32
    %c0_i32_1 = arith.constant 0 : i32
    return %c0_i32, %c0_i32_0 : i32, i32
  }
  func.func @transform_2(%arg0: i32) -> (i32, i32) {
    %c0_i32 = arith.constant 0 : i32
    %c0_i32_0 = arith.constant 0 : i32
    %c0_i32_1 = arith.constant 0 : i32
    return %c0_i32, %c0_i32_0 : i32, i32
  }
  func.func @transform_3(%arg0: i32) -> (i32, i32) {
    %c0_i32 = arith.constant 0 : i32
    %c0_i32_0 = arith.constant 0 : i32
    %c0_i32_1 = arith.constant 0 : i32
    return %c0_i32, %c0_i32_0 : i32, i32
  }
  func.func @transform_4(%arg0: i32) -> (i32, i32) {
    %c0_i32 = arith.constant 0 : i32
    %c0_i32_0 = arith.constant 0 : i32
    %c0_i32_1 = arith.constant 0 : i32
    return %c0_i32, %c0_i32_0 : i32, i32
  }
  func.func @transform_5(%arg0: i32) -> (i32, i32) {
    %c0_i32 = arith.constant 0 : i32
    %c0_i32_0 = arith.constant 0 : i32
    %c0_i32_1 = arith.constant 0 : i32
    return %c0_i32, %c0_i32_0 : i32, i32
  }
  func.func @transform_6(%arg0: i32) -> (i32, i32) {
    %c0_i32 = arith.constant 0 : i32
    %c0_i32_0 = arith.constant 0 : i32
    %c0_i32_1 = arith.constant 0 : i32
    return %c0_i32, %c0_i32_0 : i32, i32
  }
  func.func @transform_7(%arg0: i32) -> (i32, i32) {
    %c0_i32 = arith.constant 0 : i32
    %c0_i32_0 = arith.constant 0 : i32
    %c0_i32_1 = arith.constant 0 : i32
    return %c0_i32, %c0_i32_0 : i32, i32
  }
  func.func @transform_8(%arg0: i32) -> (i32, i32) {
    %c0_i32 = arith.constant 0 : i32
    %c0_i32_0 = arith.constant 0 : i32
    %c0_i32_1 = arith.constant 0 : i32
    return %c0_i32, %c0_i32_0 : i32, i32
  }
  func.func @transform_9(%arg0: i32) -> (i32, i32) {
    %c0_i32 = arith.constant 0 : i32
    %c0_i32_0 = arith.constant 0 : i32
    %c0_i32_1 = arith.constant 0 : i32
    return %c0_i32, %c0_i32_0 : i32, i32
  }
  func.func @transform_10(%arg0: i32) -> (i32, i32) {
    %c0_i32 = arith.constant 0 : i32
    %c0_i32_0 = arith.constant 0 : i32
    return %arg0, %c0_i32 : i32, i32
  }
}

module attributes {stable_mosaic.version = 11 : i64} {
  func.func @_attention_pool_kernel(%arg0: i32, %arg1: memref<8x32x128xbf16, #tpu.memory_space<vmem>>, %arg2: memref<128x128xbf16, #tpu.memory_space<vmem>>, %arg3: memref<128x256xbf16, #tpu.memory_space<vmem>>, %arg4: memref<1x128xf32, #tpu.memory_space<vmem>>, %arg5: memref<32x256xf32, #tpu.memory_space<vmem>>, %arg6: memref<1x256xf32, #tpu.memory_space<vmem>>, %arg7: memref<128x4xf32, #tpu.memory_space<vmem>>, %arg8: memref<4x128xf32, #tpu.memory_space<vmem>>, %arg9: memref<128x128xbf16, #tpu.memory_space<vmem>>, %arg10: memref<1x128xf32, #tpu.memory_space<vmem>>, %arg11: memref<8x128xf32, #tpu.memory_space<vmem>>) attributes {dimension_semantics = [#tpu.dimension_semantics<parallel>], iteration_bounds = array<i64: 2>, scalar_prefetch = 0 : i64, scratch_operands = 0 : i64, tpu.core_type = #tpu.core_type<tc>, window_params = [{transform_indices = @transform_0, window_bounds = array<i64: 8, 32, 128>}, {pipeline_mode = #tpu.pipeline_mode<synchronous>, transform_indices = @transform_1, window_bounds = array<i64: 128, 128>}, {pipeline_mode = #tpu.pipeline_mode<synchronous>, transform_indices = @transform_2, window_bounds = array<i64: 128, 256>}, {pipeline_mode = #tpu.pipeline_mode<synchronous>, transform_indices = @transform_3, window_bounds = array<i64: 1, 128>}, {pipeline_mode = #tpu.pipeline_mode<synchronous>, transform_indices = @transform_4, window_bounds = array<i64: 32, 256>}, {pipeline_mode = #tpu.pipeline_mode<synchronous>, transform_indices = @transform_5, window_bounds = array<i64: 1, 256>}, {pipeline_mode = #tpu.pipeline_mode<synchronous>, transform_indices = @transform_6, window_bounds = array<i64: 128, 4>}, {pipeline_mode = #tpu.pipeline_mode<synchronous>, transform_indices = @transform_7, window_bounds = array<i64: 4, 128>}, {pipeline_mode = #tpu.pipeline_mode<synchronous>, transform_indices = @transform_8, window_bounds = array<i64: 128, 128>}, {pipeline_mode = #tpu.pipeline_mode<synchronous>, transform_indices = @transform_9, window_bounds = array<i64: 1, 128>}, {transform_indices = @transform_10, window_bounds = array<i64: 8, 128>}]} {
    %c0 = arith.constant 0 : index
    %c0_0 = arith.constant 0 : index
    %c0_1 = arith.constant 0 : index
    %0 = vector.load %arg1[%c0, %c0_0, %c0_1] : memref<8x32x128xbf16, #tpu.memory_space<vmem>>, vector<8x32x128xbf16>
    %1 = vector.shape_cast %0 : vector<8x32x128xbf16> to vector<256x128xbf16>
    %c0_2 = arith.constant 0 : index
    %c0_3 = arith.constant 0 : index
    %2 = vector.load %arg3[%c0_2, %c0_3] : memref<128x256xbf16, #tpu.memory_space<vmem>>, vector<128x256xbf16>
    %cst = arith.constant dense<0.000000e+00> : vector<256x256xf32>
    %3 = tpu.matmul %1, %2, %cst {dimension_numbers = #tpu.dot_dimension_numbers<[1], [0], [0], [1], [0, 0, 1, 1], [], []>} : vector<256x128xbf16>, vector<128x256xbf16>, vector<256x256xf32> -> vector<256x256xf32>
    %4 = vector.shape_cast %3 : vector<256x256xf32> to vector<8x32x256xf32>
    %cst_4 = arith.constant dense<0.000000e+00> : vector<8x256xf32>
    %5 = vector.multi_reduction <add>, %4, %cst_4 [1] : vector<8x32x256xf32> to vector<8x256xf32>
    %cst_5 = arith.constant 3.200000e+01 : f32
    %6 = vector.broadcast %cst_5 : f32 to vector<8x256xf32>
    %7 = arith.divf %5, %6 : vector<8x256xf32>
    %c0_6 = arith.constant 0 : index
    %c0_7 = arith.constant 0 : index
    %8 = vector.load %arg6[%c0_6, %c0_7] : memref<1x256xf32, #tpu.memory_space<vmem>>, vector<1x256xf32>
    %9 = vector.broadcast %8 : vector<1x256xf32> to vector<8x256xf32>
    %10 = arith.addf %7, %9 : vector<8x256xf32>
    %c0_8 = arith.constant 0 : index
    %c0_9 = arith.constant 0 : index
    %11 = vector.load %arg5[%c0_8, %c0_9] : memref<32x256xf32, #tpu.memory_space<vmem>>, vector<32x256xf32>
    %12 = vector.shape_cast %11 : vector<32x256xf32> to vector<1x32x256xf32>
    %13 = vector.broadcast %12 : vector<1x32x256xf32> to vector<8x32x256xf32>
    %14 = arith.addf %4, %13 : vector<8x32x256xf32>
    %15 = vector.extract_strided_slice %10 {offsets = [0, 0], sizes = [8, 128], strides = [1, 1]} : vector<8x256xf32> to vector<8x128xf32>
    %16 = vector.extract_strided_slice %10 {offsets = [0, 128], sizes = [8, 128], strides = [1, 1]} : vector<8x256xf32> to vector<8x128xf32>
    %17 = vector.extract_strided_slice %14 {offsets = [0, 0, 0], sizes = [8, 32, 128], strides = [1, 1, 1]} : vector<8x32x256xf32> to vector<8x32x128xf32>
    %18 = vector.extract_strided_slice %14 {offsets = [0, 0, 128], sizes = [8, 32, 128], strides = [1, 1, 1]} : vector<8x32x256xf32> to vector<8x32x128xf32>
    %19 = arith.extf %0 : vector<8x32x128xbf16> to vector<8x32x128xf32>
    %cst_10 = arith.constant dense<0.000000e+00> : vector<8x128xf32>
    %20 = vector.multi_reduction <add>, %19, %cst_10 [1] : vector<8x32x128xf32> to vector<8x128xf32>
    %cst_11 = arith.constant 3.200000e+01 : f32
    %21 = vector.broadcast %cst_11 : f32 to vector<8x128xf32>
    %22 = arith.divf %20, %21 : vector<8x128xf32>
    %23 = arith.truncf %22 : vector<8x128xf32> to vector<8x128xbf16>
    %c0_12 = arith.constant 0 : index
    %c0_13 = arith.constant 0 : index
    %24 = vector.load %arg2[%c0_12, %c0_13] : memref<128x128xbf16, #tpu.memory_space<vmem>>, vector<128x128xbf16>
    %cst_14 = arith.constant dense<0.000000e+00> : vector<8x128xf32>
    %25 = tpu.matmul %23, %24, %cst_14 {dimension_numbers = #tpu.dot_dimension_numbers<[1], [0], [0], [1], [0, 0, 1, 1], [], []>} : vector<8x128xbf16>, vector<128x128xbf16>, vector<8x128xf32> -> vector<8x128xf32>
    %c0_15 = arith.constant 0 : index
    %c0_16 = arith.constant 0 : index
    %26 = vector.load %arg4[%c0_15, %c0_16] : memref<1x128xf32, #tpu.memory_space<vmem>>, vector<1x128xf32>
    %27 = vector.broadcast %26 : vector<1x128xf32> to vector<8x128xf32>
    %28 = arith.addf %25, %27 : vector<8x128xf32>
    %cst_17 = arith.constant 0.176776692 : f32
    %29 = vector.broadcast %cst_17 : f32 to vector<8x128xf32>
    %30 = arith.mulf %28, %29 : vector<8x128xf32>
    %31 = vector.shape_cast %30 : vector<8x128xf32> to vector<8x1x128xf32>
    %32 = vector.broadcast %31 : vector<8x1x128xf32> to vector<8x32x128xf32>
    %33 = arith.mulf %32, %17 : vector<8x32x128xf32>
    %34 = vector.shape_cast %33 : vector<8x32x128xf32> to vector<256x128xf32>
    %c0_18 = arith.constant 0 : index
    %c0_19 = arith.constant 0 : index
    %35 = vector.load %arg7[%c0_18, %c0_19] : memref<128x4xf32, #tpu.memory_space<vmem>>, vector<128x4xf32>
    %cst_20 = arith.constant dense<0.000000e+00> : vector<256x4xf32>
    %36 = tpu.matmul %34, %35, %cst_20 {dimension_numbers = #tpu.dot_dimension_numbers<[1], [0], [0], [1], [0, 0, 1, 1], [], []>} : vector<256x128xf32>, vector<128x4xf32>, vector<256x4xf32> -> vector<256x4xf32>
    %37 = vector.shape_cast %36 : vector<256x4xf32> to vector<8x32x4xf32>
    %38 = arith.mulf %30, %15 : vector<8x128xf32>
    %c0_21 = arith.constant 0 : index
    %c0_22 = arith.constant 0 : index
    %39 = vector.load %arg7[%c0_21, %c0_22] : memref<128x4xf32, #tpu.memory_space<vmem>>, vector<128x4xf32>
    %cst_23 = arith.constant dense<0.000000e+00> : vector<8x4xf32>
    %40 = tpu.matmul %38, %39, %cst_23 {dimension_numbers = #tpu.dot_dimension_numbers<[1], [0], [0], [1], [0, 0, 1, 1], [], []>} : vector<8x128xf32>, vector<128x4xf32>, vector<8x4xf32> -> vector<8x4xf32>
    %cst_24 = arith.constant dense<0xFF800000> : vector<8x4xf32>
    %41 = vector.multi_reduction <maximumf>, %37, %cst_24 [1] : vector<8x32x4xf32> to vector<8x4xf32>
    %42 = arith.maximumf %41, %40 : vector<8x4xf32>
    %43 = vector.shape_cast %42 : vector<8x4xf32> to vector<8x1x4xf32>
    %44 = vector.broadcast %43 : vector<8x1x4xf32> to vector<8x32x4xf32>
    %45 = arith.subf %37, %44 : vector<8x32x4xf32>
    %46 = math.exp %45 : vector<8x32x4xf32>
    %47 = arith.subf %40, %42 : vector<8x4xf32>
    %48 = math.exp %47 : vector<8x4xf32>
    %cst_25 = arith.constant dense<0.000000e+00> : vector<8x4xf32>
    %49 = vector.multi_reduction <add>, %46, %cst_25 [1] : vector<8x32x4xf32> to vector<8x4xf32>
    %50 = arith.addf %48, %49 : vector<8x4xf32>
    %51 = tpu.reciprocal %50 {approx = true} : vector<8x4xf32> -> vector<8x4xf32>
    %52 = vector.shape_cast %51 : vector<8x4xf32> to vector<8x1x4xf32>
    %53 = vector.broadcast %52 : vector<8x1x4xf32> to vector<8x32x4xf32>
    %54 = arith.mulf %46, %53 : vector<8x32x4xf32>
    %55 = arith.mulf %48, %51 : vector<8x4xf32>
    %56 = vector.shape_cast %54 : vector<8x32x4xf32> to vector<256x4xf32>
    %c0_26 = arith.constant 0 : index
    %c0_27 = arith.constant 0 : index
    %57 = vector.load %arg8[%c0_26, %c0_27] : memref<4x128xf32, #tpu.memory_space<vmem>>, vector<4x128xf32>
    %cst_28 = arith.constant dense<0.000000e+00> : vector<256x128xf32>
    %58 = tpu.matmul %56, %57, %cst_28 {dimension_numbers = #tpu.dot_dimension_numbers<[1], [0], [0], [1], [0, 0, 1, 1], [], []>} : vector<256x4xf32>, vector<4x128xf32>, vector<256x128xf32> -> vector<256x128xf32>
    %59 = vector.shape_cast %58 : vector<256x128xf32> to vector<8x32x128xf32>
    %c0_29 = arith.constant 0 : index
    %c0_30 = arith.constant 0 : index
    %60 = vector.load %arg8[%c0_29, %c0_30] : memref<4x128xf32, #tpu.memory_space<vmem>>, vector<4x128xf32>
    %cst_31 = arith.constant dense<0.000000e+00> : vector<8x128xf32>
    %61 = tpu.matmul %55, %60, %cst_31 {dimension_numbers = #tpu.dot_dimension_numbers<[1], [0], [0], [1], [0, 0, 1, 1], [], []>} : vector<8x4xf32>, vector<4x128xf32>, vector<8x128xf32> -> vector<8x128xf32>
    %62 = arith.mulf %59, %18 : vector<8x32x128xf32>
    %cst_32 = arith.constant dense<0.000000e+00> : vector<8x128xf32>
    %63 = vector.multi_reduction <add>, %62, %cst_32 [1] : vector<8x32x128xf32> to vector<8x128xf32>
    %64 = arith.mulf %61, %16 : vector<8x128xf32>
    %65 = arith.addf %63, %64 : vector<8x128xf32>
    %66 = arith.truncf %65 : vector<8x128xf32> to vector<8x128xbf16>
    %c0_33 = arith.constant 0 : index
    %c0_34 = arith.constant 0 : index
    %67 = vector.load %arg9[%c0_33, %c0_34] : memref<128x128xbf16, #tpu.memory_space<vmem>>, vector<128x128xbf16>
    %cst_35 = arith.constant dense<0.000000e+00> : vector<8x128xf32>
    %68 = tpu.matmul %66, %67, %cst_35 {dimension_numbers = #tpu.dot_dimension_numbers<[1], [0], [0], [1], [0, 0, 1, 1], [], []>} : vector<8x128xbf16>, vector<128x128xbf16>, vector<8x128xf32> -> vector<8x128xf32>
    %c0_36 = arith.constant 0 : index
    %c0_37 = arith.constant 0 : index
    %69 = vector.load %arg10[%c0_36, %c0_37] : memref<1x128xf32, #tpu.memory_space<vmem>>, vector<1x128xf32>
    %70 = vector.broadcast %69 : vector<1x128xf32> to vector<8x128xf32>
    %71 = arith.addf %68, %70 : vector<8x128xf32>
    %c0_38 = arith.constant 0 : index
    %c0_39 = arith.constant 0 : index
    %72 = vector.load %arg11[%c0_38, %c0_39] : memref<8x128xf32, #tpu.memory_space<vmem>>, vector<8x128xf32>
    tpu.vector_store %arg11[%c0_38, %c0_39], %71 {strides = array<i32>} : memref<8x128xf32, #tpu.memory_space<vmem>>, vector<8x128xf32>,
    return
  }
  func.func @transform_0(%arg0: i32) -> (i32, i32, i32) {
    %c0_i32 = arith.constant 0 : i32
    %c0_i32_0 = arith.constant 0 : i32
    %c0_i32_1 = arith.constant 0 : i32
    return %arg0, %c0_i32, %c0_i32_0 : i32, i32, i32
  }
  func.func @transform_1(%arg0: i32) -> (i32, i32) {
    %c0_i32 = arith.constant 0 : i32
    %c0_i32_0 = arith.constant 0 : i32
    %c0_i32_1 = arith.constant 0 : i32
    return %c0_i32, %c0_i32_0 : i32, i32
  }
  func.func @transform_2(%arg0: i32) -> (i32, i32) {
    %c0_i32 = arith.constant 0 : i32
    %c0_i32_0 = arith.constant 0 : i32
    %c0_i32_1 = arith.constant 0 : i32
    return %c0_i32, %c0_i32_0 : i32, i32
  }
  func.func @transform_3(%arg0: i32) -> (i32, i32) {
    %c0_i32 = arith.constant 0 : i32
    %c0_i32_0 = arith.constant 0 : i32
    %c0_i32_1 = arith.constant 0 : i32
    return %c0_i32, %c0_i32_0 : i32, i32
  }
  func.func @transform_4(%arg0: i32) -> (i32, i32) {
    %c0_i32 = arith.constant 0 : i32
    %c0_i32_0 = arith.constant 0 : i32
    %c0_i32_1 = arith.constant 0 : i32
    return %c0_i32, %c0_i32_0 : i32, i32
  }
  func.func @transform_5(%arg0: i32) -> (i32, i32) {
    %c0_i32 = arith.constant 0 : i32
    %c0_i32_0 = arith.constant 0 : i32
    %c0_i32_1 = arith.constant 0 : i32
    return %c0_i32, %c0_i32_0 : i32, i32
  }
  func.func @transform_6(%arg0: i32) -> (i32, i32) {
    %c0_i32 = arith.constant 0 : i32
    %c0_i32_0 = arith.constant 0 : i32
    %c0_i32_1 = arith.constant 0 : i32
    return %c0_i32, %c0_i32_0 : i32, i32
  }
  func.func @transform_7(%arg0: i32) -> (i32, i32) {
    %c0_i32 = arith.constant 0 : i32
    %c0_i32_0 = arith.constant 0 : i32
    %c0_i32_1 = arith.constant 0 : i32
    return %c0_i32, %c0_i32_0 : i32, i32
  }
  func.func @transform_8(%arg0: i32) -> (i32, i32) {
    %c0_i32 = arith.constant 0 : i32
    %c0_i32_0 = arith.constant 0 : i32
    %c0_i32_1 = arith.constant 0 : i32
    return %c0_i32, %c0_i32_0 : i32, i32
  }
  func.func @transform_9(%arg0: i32) -> (i32, i32) {
    %c0_i32 = arith.constant 0 : i32
    %c0_i32_0 = arith.constant 0 : i32
    %c0_i32_1 = arith.constant 0 : i32
    return %c0_i32, %c0_i32_0 : i32, i32
  }
  func.func @transform_10(%arg0: i32) -> (i32, i32) {
    %c0_i32 = arith.constant 0 : i32
    %c0_i32_0 = arith.constant 0 : i32
    return %arg0, %c0_i32 : i32, i32
  }
}

</mosaic_0001>

<bundles_post_ra>
// kernel: tpu_custom_call.1
= control target key start
LH: loop header
LB: loop body
LE: loop exit
PB: predicated region body
PF: predicated region fallthrough
CT: control target
= control target key end

     0   :  { %s5544_s0 = inlined_call_operand.hbm [shape: bf16[16,32,128], index: 0, kind: input, shape index: {}]   ;;  %s5545_s1 = inlined_call_operand.hbm [shape: bf16[128,128], index: 1, kind: input, shape index: {}]   ;;  %s5546_s2 = inlined_call_operand.vmem [shape: bf16[128,256], index: 2, kind: input, shape index: {}]   ;;  %s5547_s3 = inlined_call_operand.vmem [shape: f32[1,128], index: 3, kind: input, shape index: {}]   ;;  %s5548_s4 = inlined_call_operand.hbm [shape: f32[32,256], index: 4, kind: input, shape index: {}]   ;;  %s5549_s5 = inlined_call_operand.vmem [shape: f32[1,256], index: 5, kind: input, shape index: {}]   ;;  %s5550_s6 = inlined_call_operand.vmem [shape: f32[128,4], index: 6, kind: input, shape index: {}]   ;;  %s5551_s7 = inlined_call_operand.vmem [shape: f32[4,128], index: 7, kind: input, shape index: {}]   ;;  %s5552_s8 = inlined_call_operand.hbm [shape: bf16[128,128], index: 8, kind: input, shape index: {}]   ;;  %s5553_s9 = inlined_call_operand.vmem [shape: f32[1,128], index: 9, kind: input, shape index: {}]   ;;  %s5554_s10 = inlined_call_operand.hbm [shape: f32[16,128], index: 10, kind: output, shape index: {}]  }
   0x1   :  { %5614 = sst [smem:[#allocation56_spill]] %s5545_s1 }
   0x2   :  { %5615 = sst [smem:[#allocation57_spill]] %s5553_s9 }
   0x3   :  { %5616 = sst [smem:[#allocation58_spill]] %s5554_s10 }
   0x4   :  { %15 = vsyncpa [#allocation3], 0 }
   0x5   :  { %17 = vsyncpa [#allocation3 + $0x1], 0 }
   0x6   :  { %18 = vsyncpa [#allocation6], 0 }
   0x7   :  { %19 = vsyncpa [#allocation9], 0 }
   0x8   :  { %20 = vsyncpa [#allocation4], 0 }
   0x9   :  { %22 = vsyncpa [#allocation4 + $0x1], 0  ;;  %s4144_s13 = smov 0   ;;  %s4146_s14 = smov 0  }
   0xa   :  { %s4148_s15 = smov 0   ;;  %s4150_s16 = smov 0  }
   0xb LB: > { %5617 = sst [smem:[#allocation15_spill]] %s4061_s13  ;;  %s4165_s17 = sadd.s32 4294967295, %s4073_s16   ;;  %s4073_s16 = sphi %s4150_s16, %s5728_s16   ;;  %s4069_s15 = sphi %s4148_s15, %s5727_s15   ;;  %s4065_s14 = sphi %s4146_s14, %s5726_s14   ;;  %s4061_s13 = sphi %s4144_s13, %s5725_s13  }
   0xc   : > { %s3168_s18 = sadd.s32 4294967294, %s4073_s16   ;;  %p48_p0 = scmp.ne.s32.totalorder %s4065_s14, %s4061_s13 }
   0xd   : > { %p5555_p1 = scmp.eq.s32.totalorder %s4165_s17, 0  ;;  %p267_p3 = scmp.eq.s32.totalorder %s3168_s18, 1 }
   0xe   : > { %p3169_p5 = scmp.ge.s32.totalorder %s4073_s16, 1  ;;  %p274_p7 = scmp.lt.s32.totalorder %s4073_s16, 3 }
   0xf   : > { %p4174_p4 = por %p5555_p1, %p48_p0  ;;  %p4179_p6 = por %p267_p3, %p48_p0 }
  0x10   : > { %p4184_p8 = pnand %p3169_p5, %p274_p7  ;;  %s4075_s22 = smov [#allocation5]  }
  0x11   : > { %s5618_s19 = scalar_select %p4174_p4, 1, 0 }
  0x12   : > { %s5619_s20 = scalar_select %p4179_p6, 1, 0 }
  0x13   : > { %s5621_s21 = scalar_select %p4184_p8, 1, 0 }
  0x14   : > { %5620 = sst [smem:[#allocation16_spill]] %s5619_s20  ;;  %s286_s23 = sshll.u32 %s4075_s22, 4  ;;  %s4188_s23 = int_to_ptr.vmem [resolvable:$true] %s286_s23 }
  0x15   : > { %p3675_p9 = pneg %p4184_p8  ;;  %s4076_s25 = smov [#allocation7]  }
  0x16   : > { %s305_s26 = sshll.u32 %s4076_s25, 4  ;;  %s5623_s1 = sld [smem:[#allocation56_spill]]  ;;  %s4199_s26 = int_to_ptr.vmem [resolvable:$true] %s305_s26 }
  0x17   : > { %p4195_p11 = pnand %p3675_p9, %p5555_p1 }
  0x19   : > { %p4209_p13 = pneg %p4195_p11 }
  0x1c   : > { %s3885_s29 = scalar_lea.hbm %s5623_s1, 1024 }
  0x1d   : > { %p3886_p12 = scmp.ne.s32.totalorder %s5623_s1, %s3885_s29  ;;  %p3892_p5 = scmp.lt.u32.totalorder %s3885_s29, %s5623_s1 }
  0x1f   : > { %p3888_p0 = pnand %p4209_p13, %p3886_p12 }
  0x21   : > { %p3889_p3 = pneg %p3888_p0 }
  0x23   : > { %p3894_p7 = pnand %p3892_p5, %p3889_p3 }
  0x25   : > { %3897 = shalt.err (!%p3894_p7)
}
  0x26   : > { %s3898_s25 = scalar_lea.vmem %s4188_s23, 1024  ;;  %p3906_p2 = scmp.lt.s32.totalorder %s4188_s23, %s4188_s23 }
  0x27   : > { %p3899_p9 = scmp.ne.s32.totalorder %s4188_s23, %s3898_s25  ;;  %p3907_p6 = scmp.lt.s32.totalorder %s3898_s25, %s3898_s25 }
  0x29   : > { %p3901_p10 = pnand %p3899_p9, %p4209_p13  ;;  %p3908_p12 = por %p3907_p6, %p3906_p2 }
  0x2b   : > { %p3902_p1 = pneg %p3901_p10 }
  0x2d   : > { %p3909_p0 = pnand %p3908_p12, %p3902_p1 }
  0x2f   : > { %3912 = shalt.err (!%p3909_p0)
}
  0x30   : > { %s5559_s27 = smov 64   ;;  %s5561_s28 = smov 4  }
  0x31   : > { %3678 = dma.hbm_to_vmem [thread:$0]  (!%p4195_p11), %s5623_s1, 1024, %s4188_s23, [#allocation6], %s5559_s27, %s5559_s27, %s5561_s28  }
  0x32   : > { %s3913_s22 = scalar_lea.hbm %s5548_s4, 1024 }
  0x33   : > { %p3914_p1 = scmp.ne.s32.totalorder %s5548_s4, %s3913_s22  ;;  %p3920_p10 = scmp.lt.u32.totalorder %s3913_s22, %s5548_s4 }
  0x35   : > { %p3916_p2 = pnand %p3914_p1, %p4209_p13 }
  0x37   : > { %p3917_p6 = pneg %p3916_p2 }
  0x39   : > { %p3922_p3 = pnand %p3920_p10, %p3917_p6 }
  0x3b   : > { %3925 = shalt.err (!%p3922_p3)
}
  0x3c   : > { %s3926_s23 = scalar_lea.vmem %s4199_s26, 1024  ;;  %p3934_p12 = scmp.lt.s32.totalorder %s4199_s26, %s4199_s26 }
  0x3d   : > { %p3927_p5 = scmp.ne.s32.totalorder %s4199_s26, %s3926_s23  ;;  %p3935_p0 = scmp.lt.s32.totalorder %s3926_s23, %s3926_s23 }
  0x3f   : > { %p3929_p7 = pnand %p3927_p5, %p4209_p13  ;;  %p3936_p1 = por %p3935_p0, %p3934_p12 }
  0x41   : > { %p3930_p9 = pneg %p3929_p7 }
  0x43   : > { %p3937_p2 = pnand %p3936_p1, %p3930_p9 }
  0x45   : > { %3940 = shalt.err (!%p3937_p2)
}
  0x46   : > { %s4079_s20 = smov 256   ;;  %s4080_s10 = smov 16  }
  0x47   : > { %3681 = dma.hbm_to_vmem [thread:$0]  (!%p4195_p11), %s5548_s4, 1024, %s4199_s26, [#allocation6], %s4079_s20, %s4079_s20, %s4080_s10  }
  0x48   : > { %s4081_s30 = smov [#allocation8]   ;;  %s4257_s18 = sadd.s32 1, %s4073_s16  }
  0x49   : > { %s327_s11 = sshll.u32 %s4081_s30, 4  ;;  %s3941_s23 = scalar_lea.hbm %s5552_s8, 1024  ;;  %s328_s11 = int_to_ptr.vmem [resolvable:$true] %s327_s11 }
  0x4a   : > { %p3942_p6 = scmp.ne.s32.totalorder %s5552_s8, %s3941_s23  ;;  %p3948_p5 = scmp.lt.u32.totalorder %s3941_s23, %s5552_s8 }
  0x4c   : > { %p3944_p10 = pnand %p3942_p6, %p4209_p13 }
  0x4e   : > { %p3945_p3 = pneg %p3944_p10 }
  0x50   : > { %p3950_p7 = pnand %p3948_p5, %p3945_p3 }
  0x52   : > { %3953 = shalt.err (!%p3950_p7)
}
  0x53   : > { %s3954_s26 = scalar_lea.vmem %s328_s11, 1024  ;;  %p3962_p1 = scmp.lt.s32.totalorder %s328_s11, %s328_s11 }
  0x54   : > { %p3955_p9 = scmp.ne.s32.totalorder %s328_s11, %s3954_s26  ;;  %p3963_p2 = scmp.lt.s32.totalorder %s3954_s26, %s3954_s26 }
  0x56   : > { %p3957_p12 = pnand %p3955_p9, %p4209_p13  ;;  %p3964_p4 = por %p3963_p2, %p3962_p1 }
  0x58   : > { %p3958_p0 = pneg %p3957_p12 }
  0x5a   : > { %p3965_p8 = pnand %p3964_p4, %p3958_p0 }
  0x5c   : > { %3968 = shalt.err (!%p3965_p8)
}
  0x5d   : > { %s5625_s27 = smov 4   ;;  %s5626_s28 = smov 64  }
  0x5e   : > { %3684 = dma.hbm_to_vmem [thread:$0]  (!%p4195_p11), %s5552_s8, 1024, %s328_s11, [#allocation9], %s5626_s28, %s5626_s28, %s5625_s27  }
  0x5f   : > { %s32_s12 = ssub.s32 %s4073_s16, %s4257_s18  ;;  %s35_s24 = sadd.s32 1, %s4069_s15 }
  0x60   : > { %p33_p4 = scmp.eq.s32.totalorder %s32_s12, 0  ;;  %p42_p8 = scmp.ne.s32.totalorder %s4069_s15, %s4065_s14 }
  0x61   : > { %p43_p13 = scmp.eq.s32.totalorder %s4073_s16, 0  ;;  %p3696_p6 = scmp.lt.s32.totalorder %s4073_s16, 2 }
  0x62   : > { %s4288_s20 = scalar_select %p33_p4, %s4069_s15, %s35_s24  }
  0x63   : > { %p44_p10 = por %p43_p13, %p42_p8  ;;  %p5627_p3 = scmp.eq.s32.totalorder %s4165_s17, 1 }
  0x64   : > { %s344_s13 = sand.u32 1, %s4069_s15   ;;  %s3274_s29 = sshll.u32 %s4073_s16, 11 }
  0x65   : > { %p4292_p5 = por %p5627_p3, %p42_p8  ;;  %s3174_s30 = sshll.u32 %s344_s13, 7 }
  0x66   : > { %s4301_s11 = scalar_lea.hbm %s5544_s0, %s3274_s29  ;;  %s348_s23 = scalar_lea.vmem [#allocation2], %s3174_s30 }
  0x67   : > { %s356_s26 = sshll.u32 %s348_s23, 4  ;;  %p4303_p11 = pnand %p3696_p6, %p44_p10  ;;  %s4307_s26 = int_to_ptr.vmem [resolvable:$true] %s356_s26 }
  0x68   : > { %s4309_s9 = scalar_lea.sflag [#allocation3], %s344_s13  ;;  %s3969_s12 = scalar_lea.hbm %s4301_s11, 2048 }
  0x69   : > { %p3970_p7 = scmp.ne.s32.totalorder %s4301_s11, %s3969_s12  ;;  %p3971_p9 = pneg %p4303_p11 }
  0x6a   : > { %s3974_s30 = scalar_lea.hbm %s5544_s0, 4096  ;;  %p3975_p1 = scmp.lt.u32.totalorder %s4301_s11, %s5544_s0 }
  0x6b   : > { %p3972_p12 = pnand %p3971_p9, %p3970_p7  ;;  %p3976_p2 = scmp.lt.u32.totalorder %s3974_s30, %s3969_s12 }
  0x6c   : > { %p3978_p8 = scmp.lt.u32.totalorder %s3969_s12, %s4301_s11 }
  0x6d   : > { %p3973_p0 = pneg %p3972_p12  ;;  %p3977_p4 = por %p3976_p2, %p3975_p1 }
  0x6f   : > { %p3979_p13 = por %p3978_p8, %p3977_p4 }
  0x71   : > { %p3980_p6 = pnand %p3979_p13, %p3973_p0 }
  0x73   : > { %3983 = shalt.err (!%p3980_p6)
}
  0x74   : > { %s3984_s13 = scalar_lea.vmem %s4307_s26, 2048  ;;  %s4082_s23 = smov [#allocation2]  }
  0x75   : > { %p3985_p10 = scmp.ne.s32.totalorder %s4307_s26, %s3984_s13  ;;  %s3989_s24 = sshll.u32 %s4082_s23, 4  ;;  %s3990_s24 = int_to_ptr.vmem [resolvable:$false] %s3989_s24 }
  0x76   : > { %s3991_s29 = scalar_lea.vmem %s3990_s24, 4096  ;;  %p3992_p12 = scmp.lt.s32.totalorder %s4307_s26, %s3990_s24 }
  0x77   : > { %p3987_p3 = pnand %p3985_p10, %p3971_p9  ;;  %p3993_p1 = scmp.lt.s32.totalorder %s3991_s29, %s3984_s13 }
  0x79   : > { %p3988_p7 = pneg %p3987_p3  ;;  %p3994_p2 = por %p3993_p1, %p3992_p12 }
  0x7b   : > { %p3995_p4 = pnand %p3994_p2, %p3988_p7 }
  0x7d   : > { %3998 = shalt.err (!%p3995_p4)
}
  0x7e   : > { %3688 = dma.hbm_to_vmem [thread:$0]  (!%p4303_p11), %s4301_s11, 2048, %s4307_s26, %s4309_s9, %s5626_s28, %s5626_s28, %s5625_s27  }
  0x7f   : > { %p5630_p9 = scmp.ne.s32.totalorder %s5621_s21, 0 }
  0x81   : > { %368 = sbr.rel (%p5630_p9) target bundleno = 1377 (0x561), region = 60 }
  0x88   : > { %s4343_s12 = sand.u32 1, %s4065_s14   ;;  %p5631_p0 = scmp.ne.s32.totalorder %s5618_s19, 0 }
  0x89   : > { %s3179_s30 = sshll.u32 %s4343_s12, 7  ;;  %s371_s22 = scalar_lea.sflag [#allocation3], %s4343_s12 }
  0x8a   : > { %s4347_s25 = scalar_lea.vmem [#allocation2], %s3179_s30 }
  0x8b   : > { %4044 = dma.done.wait (%p5631_p0), %s371_s22, 2048  }
  0x8c   : > { %4046 = vsyncadd (%p5631_p0), %s371_s22, 4294965248  ;;  %p5632_p11 = scmp.eq.s32.totalorder %s4165_s17, 0 }
  0x8e   : > { %4048 = dma.done.wait (%p5632_p11), [#allocation6], 2048   ;;  %p5633_p8 = pmov %p5632_p11 }
  0x90   : > { %4050 = vsyncadd (%p5633_p8), [#allocation6], 4294965248  ;;  %p5634_p13 = pmov %p5633_p8 }
  0x91   : > { %p5635_p6 = pmov %p5633_p8 }
  0x92   : > { %4052 = dma.done.wait (%p5634_p13), [#allocation9], 1024  }
  0x93   : > { %4054 = vsyncadd (%p5635_p6), [#allocation9], 4294966272  ;;  %v5568_v0 = vmov 0.0   ;;  %v5565_v1 = vmov 0   ;;  %vm4085_vm0 = vmmov 0   ;;  %v3748_v4 = vld [vmem:[#allocation5] sm:$0xff]  }
  0x94   : > { %3393 = vmatprep.subr.bf16.mxu1 %v5568_v0  ;;  %681 = vmatprep.mubr.bf16.mxu0 %v5565_v1  ;;  %v3745_v2 = vld [vmem:[%s5546_s2 + $0x4] ss:$8 sps:$4 sm:$0xff]   ;;  %v3747_v3 = vld [vmem:[%s5546_s2] ss:$8 sps:$4 sm:$0xff]   ;;  %v3749_v5 = vld [vmem:[%s5546_s2 + $0x14] ss:$8 sps:$4 sm:$0xff]  }
  0x95   : > { %3409 = vmatprep.mubr.msk.bf16.mxu1 %vm4085_vm0, %v5568_v0  ;;  %649 = vmatprep.subr.bf16.mxu0 %v3745_v2  ;;  %v3751_v6 = vld [vmem:[%s5546_s2 + $0x10] ss:$8 sps:$4 sm:$0xff]   ;;  %v3752_v7 = vld [vmem:[#allocation5 + $0x8] sm:$0xff]   ;;  %v3757_v11 = vld [vmem:[%s5546_s2 + $0x34] ss:$8 sps:$4 sm:$0xff]   ;;  %vm1262_vm1 = vcmask 1041409  }
  0x96   : > { %650 = vmatpush1.bf16.msra.mxu0 %v3747_v3  ;;  %3394 = vmatpush3.bf16.msra.mxu1 %v3748_v4  ;;  %v3753_v8 = vld [vmem:[%s5546_s2 + $0x24] ss:$8 sps:$4 sm:$0xff]   ;;  %v3755_v9 = vld [vmem:[%s5546_s2 + $0x20] ss:$8 sps:$4 sm:$0xff]   ;;  %v3756_v10 = vld [vmem:[#allocation5 + $0x10] sm:$0xff]   ;;  %vm1264_vm2 = vcmask 1042434  }
  0x97   : > { %651 = vmatprep.subr.bf16.mxu0 %v3749_v5  ;;  %3395 = vmatprep.subr.bf16.mxu1 %v5568_v0  ;;  %v3759_v12 = vld [vmem:[%s5546_s2 + $0x30] ss:$8 sps:$4 sm:$0xff]   ;;  %v3761_v14 = vld [vmem:[%s5546_s2 + $0x44] ss:$8 sps:$4 sm:$0xff]   ;;  %v3763_v15 = vld [vmem:[%s5546_s2 + $0x40] ss:$8 sps:$4 sm:$0xff]  }
  0x98   : > { %v3760_v13 = vld [vmem:[#allocation5 + $0x18] sm:$0xff]   ;;  %v3764_v16 = vld [vmem:[#allocation5 + $0x20] sm:$0xff]   ;;  %v3768_v19 = vld [vmem:[#allocation5 + $0x28] sm:$0xff]   ;;  %vm1266_vm3 = vcmask 1043459   ;;  %vm1268_vm4 = vcmask 1044484   ;;  %vm1270_vm5 = vcmask 1045509  }
  0x99   : > { %v3765_v17 = vld [vmem:[%s5546_s2 + $0x54] ss:$8 sps:$4 sm:$0xff]   ;;  %v3767_v18 = vld [vmem:[%s5546_s2 + $0x50] ss:$8 sps:$4 sm:$0xff]   ;;  %v3769_v20 = vld [vmem:[%s5546_s2 + $0x64] ss:$8 sps:$4 sm:$0xff]  }
  0x9a   : > { %652 = vmatpush1.bf16.msra.mxu0 %v3751_v6  ;;  %3396 = vmatpush3.bf16.msra.mxu1 %v3752_v7  ;;  %v4409_v21 = vld [vmem:[%s4347_s25] sm:$0xff]   ;;  %v4412_v22 = vld [vmem:[%s4347_s25 + $0x8] sm:$0xff]   ;;  %v4417_v25 = vld [vmem:[%s4347_s25 + $0x10] sm:$0xff]   ;;  %vm1272_vm6 = vcmask 1046534   ;;  %vm1274_vm7 = vcmask 1047559   ;;  %vm1824_vm8 = vcmask 31744  }
  0x9b   : > { %653 = vmatprep.subr.bf16.mxu0 %v3753_v8  ;;  %3397 = vmatprep.subr.bf16.mxu1 %v5568_v0  ;;  %v1103_v23 = vunpack.c.l.bf16 %v4409_v21  ;;  %v1104_v24 = vunpack.c.h.bf16 %v4409_v21  ;;  %v4420_v26 = vld [vmem:[%s4347_s25 + $0x18] sm:$0xff]   ;;  %v1105_v27 = vunpack.c.l.bf16 %v4412_v22  ;;  %v1106_v28 = vunpack.c.h.bf16 %v4412_v22  ;;  %v4425_v29 = vld [vmem:[%s4347_s25 + $0x20] sm:$0xff]   ;;  %v4428_v30 = vld [vmem:[%s4347_s25 + $0x28] sm:$0xff]   ;;  %s3183_s29 = sshll.u32 %s4343_s12, 3  ;;  %s5719_s19 = sld [smem:[#allocation57_spill]] }
  0x9c   : > { %v4431_v31 = vld [vmem:[%s4347_s25 + $0x30] sm:$0xff]   ;;  %v1107_v32 = vunpack.c.l.bf16 %v4417_v25  ;;  %v1108_v33 = vunpack.c.h.bf16 %v4417_v25  ;;  %v3771_v34 = vld [vmem:[%s5546_s2 + $0x60] ss:$8 sps:$4 sm:$0xff]   ;;  %v4440_v36 = vld [vmem:[%s4347_s25 + $0x38] sm:$0xff]   ;;  %v1109_v39 = vunpack.c.l.bf16 %v4420_v26  ;;  %v1110_v40 = vunpack.c.h.bf16 %v4420_v26  ;;  %s3270_s21 = sshll.u32 %s4165_s17, 7  ;;  %s5720_s26 = sld [smem:[#allocation58_spill]] }
  0x9d   : > { %v1135_v35 = vadd.f32 %v1104_v24, %v1103_v23  ;;  %v4443_v37 = vld [vmem:[%s4347_s25 + $0x40] sm:$0xff]   ;;  %v4446_v38 = vld [vmem:[%s4347_s25 + $0x48] sm:$0xff]   ;;  %v1111_v41 = vunpack.c.l.bf16 %v4425_v29  ;;  %v3772_v42 = vld [vmem:[#allocation5 + $0x30] sm:$0xff]   ;;  %v1112_v47 = vunpack.c.h.bf16 %v4425_v29  ;;  %v1113_v48 = vunpack.c.l.bf16 %v4428_v30  ;;  %s3056_s9 = scalar_lea.sflag [#allocation4], %s4343_s12  ;;  %s4088_s13 = smov [#allocation10]  }
  0x9e   : > { %654 = vmatpush1.bf16.msra.mxu0 %v3755_v9  ;;  %3398 = vmatpush3.bf16.msra.mxu1 %v3756_v10  ;;  %v3773_v43 = vld [vmem:[%s5546_s2 + $0x74] ss:$8 sps:$4 sm:$0xff]   ;;  %v4461_v46 = vld [vmem:[%s4347_s25 + $0x60] sm:$0xff]   ;;  %v1114_v49 = vunpack.c.h.bf16 %v4428_v30  ;;  %v1115_v50 = vunpack.c.l.bf16 %v4431_v31  ;;  %v4468_v52 = vld [vmem:[%s4347_s25 + $0x68] sm:$0xff]   ;;  %v1116_v55 = vunpack.c.h.bf16 %v4431_v31  ;;  %v1117_v56 = vunpack.c.l.bf16 %v4440_v36  ;;  %s4003_s23 = sshll.u32 %s4088_s13, 4  ;;  %s4004_s23 = int_to_ptr.vmem [resolvable:$false] %s4003_s23 }
  0x9f   : > { %655 = vmatprep.subr.bf16.mxu0 %v3757_v11  ;;  %3399 = vmatprep.subr.bf16.mxu1 %v5568_v0  ;;  %v4455_v44 = vld [vmem:[%s4347_s25 + $0x50] sm:$0xff]   ;;  %v4458_v45 = vld [vmem:[%s4347_s25 + $0x58] sm:$0xff]   ;;  %v1136_v51 = vadd.f32 %v1135_v35, %v1105_v27  ;;  %v1118_v57 = vunpack.c.h.bf16 %v4440_v36  ;;  %v1119_v58 = vunpack.c.l.bf16 %v4443_v37  ;;  %v1120_v59 = vunpack.c.h.bf16 %v4443_v37  ;;  %s4005_s24 = scalar_lea.vmem %s4004_s23, 256 }
  0xa0   : > { %v4471_v53 = vld [vmem:[%s4347_s25 + $0x70] sm:$0xff]   ;;  %v4474_v54 = vld [vmem:[%s4347_s25 + $0x78] sm:$0xff]   ;;  %v1121_v60 = vunpack.c.l.bf16 %v4446_v38  ;;  %v1122_v61 = vunpack.c.h.bf16 %v4446_v38  ;;  %v1123_v2 = vunpack.c.l.bf16 %v4455_v44  ;;  %v1124_v3 = vunpack.c.h.bf16 %v4455_v44  ;;  %s422_s25 = scalar_lea.vmem [#allocation10], %s3183_s29 }
  0xa1   : > { %5636 = vst [vmem:[#allocation17_spill] sm:$0xff] %v4474_v54  ;;  %v3775_v62 = vld [vmem:[%s5546_s2 + $0x70] ss:$8 sps:$4 sm:$0xff]   ;;  %v1137_v63 = vadd.f32 %v1136_v51, %v1106_v28  ;;  %v1125_v4 = vunpack.c.l.bf16 %v4458_v45  ;;  %v1126_v5 = vunpack.c.h.bf16 %v4458_v45  ;;  %v1127_v6 = vunpack.c.l.bf16 %v4461_v46  ;;  %s3069_s27 = sshll.u32 %s422_s25, 4  ;;  %s5502_s27 = int_to_ptr.vmem [resolvable:$true] %s3069_s27 }
  0xa2   : > { %656 = vmatpush1.bf16.msra.mxu0 %v3759_v12  ;;  %3400 = vmatpush3.bf16.msra.mxu1 %v3760_v13  ;;  %v1128_v7 = vunpack.c.h.bf16 %v4461_v46  ;;  %v1129_v8 = vunpack.c.l.bf16 %v4468_v52  ;;  %v3776_v9 = vld [vmem:[#allocation5 + $0x38] sm:$0xff]   ;;  %v1130_v11 = vunpack.c.h.bf16 %v4468_v52  ;;  %v1131_v12 = vunpack.c.l.bf16 %v4471_v53  ;;  %s5500_s1 = scalar_lea.hbm %s5720_s26, %s3270_s21  ;;  %s3999_s17 = scalar_lea.vmem %s5502_s27, 128 }
  0xa3   : > { %657 = vmatprep.subr.bf16.mxu0 %v3761_v14  ;;  %3401 = vmatprep.subr.bf16.mxu1 %v5568_v0  ;;  %v1138_v10 = vrot.slane %v1137_v63, 4  ;;  %v1132_v13 = vunpack.c.h.bf16 %v4471_v53  ;;  %v1133_v14 = vunpack.c.l.bf16 %v4474_v54  ;;  %v1180_v23 = vadd.f32 %v1124_v3, %v1123_v2  ;;  %p4000_p10 = scmp.ne.s32.totalorder %s5502_s27, %s3999_s17  ;;  %p4006_p12 = scmp.lt.s32.totalorder %s5502_s27, %s4004_s23 }
  0xa4   : > { %v1189_v28 = vadd.f32 %v1128_v7, %v1127_v6  ;;  %vm2449_vm9 = vcmask 1043456   ;;  %p4007_p1 = scmp.lt.s32.totalorder %s4005_s24, %s3999_s17 }
  0xa5   : > { %v1181_v51 = vadd.f32 %v1180_v23, %v1125_v4  ;;  %p4001_p3 = pnand %p4000_p10, %p4292_p5 }
  0xa6   : > { %658 = vmatpush1.bf16.msra.mxu0 %v3763_v15  ;;  %3402 = vmatpush3.bf16.msra.mxu1 %v3764_v16  ;;  %v1134_v15 = vunpack.c.h.bf16 %v4474_v54  ;;  %v1144_v16 = vadd.f32 %v1108_v33, %v1107_v32  ;;  %v1190_v32 = vadd.f32 %v1189_v28, %v1129_v8  ;;  %p4008_p2 = por %p4007_p1, %p4006_p12 }
  0xa7   : > { %659 = vmatprep.subr.bf16.mxu0 %v3765_v17  ;;  %3403 = vmatprep.subr.bf16.mxu1 %v5568_v0  ;;  %v1153_v17 = vadd.f32 %v1112_v47, %v1111_v41  ;;  %p4002_p7 = pneg %p4001_p3 }
  0xa8   : > { %v1145_v24 = vadd.f32 %v1144_v16, %v1109_v39 }
  0xa9   : > { %v1154_v27 = vadd.f32 %v1153_v17, %v1113_v48  ;;  %p4009_p4 = pnand %p4008_p2, %p4002_p7 }
  0xaa   : > { %660 = vmatpush1.bf16.msra.mxu0 %v3767_v18  ;;  %3404 = vmatpush3.bf16.msra.mxu1 %v3768_v19  ;;  %v1139_v18 = vadd.f32 %v1138_v10, %v1137_v63  ;;  %v1162_v19 = vadd.f32 %v1116_v55, %v1115_v50  ;;  %v1146_v1 = vadd.f32 %v1145_v24, %v1110_v40  ;;  %v5637_v40 = vmov 0  }
  0xab   : > { %661 = vmatprep.subr.bf16.mxu0 %v3769_v20  ;;  %3405 = vmatprep.subr.bf16.mxu1 %v5568_v0  ;;  %v1171_v20 = vadd.f32 %v1120_v59, %v1119_v58  ;;  %v1155_v54 = vadd.f32 %v1154_v27, %v1114_v49  ;;  %v1182_v50 = vadd.f32 %v1181_v51, %v1126_v5 }
  0xac   : > { %v1140_v35 = vrot.slane %v1139_v18, 2  ;;  %v1147_v39 = vrot.slane %v1146_v1, 4  ;;  %v1191_v55 = vadd.f32 %v1190_v32, %v1130_v11 }
  0xad   : > { %v1156_v48 = vrot.slane %v1155_v54, 4 }
  0xae   : > { %662 = vmatpush1.bf16.msra.mxu0 %v3771_v34  ;;  %3406 = vmatpush3.bf16.msra.mxu1 %v3772_v42  ;;  %v1198_v34 = vadd.f32 %v1132_v13, %v1131_v12  ;;  %v1163_v42 = vadd.f32 %v1162_v19, %v1117_v56  ;;  %v1141_v41 = vadd.f32 %v1140_v35, %v1139_v18  ;;  %v1192_v3 = vrot.slane %v1191_v55, 4 }
  0xaf   : > { %663 = vmatprep.subr.bf16.mxu0 %v3773_v43  ;;  %3407 = vmatprep.subr.bf16.mxu1 %v5568_v0  ;;  %v1172_v43 = vadd.f32 %v1171_v20, %v1121_v60  ;;  %v1148_v49 = vadd.f32 %v1147_v39, %v1146_v1  ;;  %v1157_v2 = vadd.f32 %v1156_v48, %v1155_v54 }
  0xb0   : > { %v1199_v33 = vadd.f32 %v1198_v34, %v1133_v14  ;;  %v1164_v47 = vadd.f32 %v1163_v42, %v1118_v57  ;;  %v1142_v56 = vrot.slane %v1141_v41, 1  ;;  %v1193_v8 = vadd.f32 %v1192_v3, %v1191_v55 }
  0xb1   : > { %v1173_v63 = vadd.f32 %v1172_v43, %v1122_v61  ;;  %v1149_v7 = vrot.slane %v1148_v49, 2 }
  0xb2   : > { %664 = vmatpush1.bf16.msra.mxu0 %v3775_v62  ;;  %3408 = vmatpush3.bf16.msra.mxu1 %v3776_v9  ;;  %v1200_v58 = vadd.f32 %v1199_v33, %v1134_v15  ;;  %v1165_v59 = vrot.slane %v1164_v47, 4  ;;  %v1183_v62 = vrot.slane %v1182_v50, 4  ;;  %v1143_v61 = vadd.f32 %v1142_v56, %v1141_v41 }
  0xb3   : > { %3578 = vmatprep.subr.mxu0 %v5568_v0  ;;  %v1174_v60 = vrot.slane %v1173_v63, 4  ;;  %v1150_v14 = vadd.f32 %v1149_v7, %v1148_v49  ;;  %v1194_v16 = vrot.slane %v1193_v8, 2 }
  0xb4   : > { %v1201_v57 = vrot.slane %v1200_v58, 4  ;;  %v1166_v4 = vadd.f32 %v1165_v59, %v1164_v47  ;;  %v1184_v6 = vadd.f32 %v1183_v62, %v1182_v50  ;;  %v1207_v10 = vmul.f32 0.03125, %v1143_v61 }
  0xb5   : > { %682 = vmatmul.mubr.bf16.vlgmr.msra.gmra.mrb[0].mxu0 %v4409_v21  ;;  %v1175_v5 = vadd.f32 %v1174_v60, %v1173_v63  ;;  %v1158_v21 = vrot.slane %v1157_v2, 2  ;;  %v1151_v19 = vrot.slane %v1150_v14, 1  ;;  %v1195_v23 = vadd.f32 %v1194_v16, %v1193_v8 }
  0xb6   : > { %691 = vmatprep.mubr.bf16.mxu0 %v5637_v40  ;;  %v1202_v9 = vadd.f32 %v1201_v57, %v1200_v58  ;;  %v1167_v11 = vrot.slane %v1166_v4, 2  ;;  %v1185_v13 = vrot.slane %v1184_v6, 2  ;;  %v1215_v27 = vpack.c.bf16 %v1207_v10, %v1207_v10 }
  0xb7   : > { %v1176_v12 = vrot.slane %v1175_v5, 2  ;;  %v1159_v15 = vadd.f32 %v1158_v21, %v1157_v2  ;;  %v1152_v42 = vadd.f32 %v1151_v19, %v1150_v14  ;;  %v1196_v51 = vrot.slane %v1195_v23, 1 }
  0xb8   : > { %v1203_v17 = vrot.slane %v1202_v9, 2  ;;  %v1168_v1 = vadd.f32 %v1167_v11, %v1166_v4  ;;  %v1186_v18 = vadd.f32 %v1185_v13, %v1184_v6  ;;  %v1254_v55 = vunpack.c.l.b16 %v1215_v27  ;;  %v1490_v13 = vld [vmem:[%s5550_s6 + $0x8] sm:$0xff] }
  0xb9   : > { %v1177_v54 = vadd.f32 %v1176_v12, %v1175_v5  ;;  %v1160_v20 = vrot.slane %v1159_v15, 1  ;;  %v1197_v63 = vadd.f32 %v1196_v51, %v1195_v23  ;;  %v1208_v39 = vmul.f32 0.03125, %v1152_v42  ;;  %v1489_v12 = vld [vmem:[%s5550_s6] sm:$0xff]  ;;  %v1494_v27 = vld [vmem:[%s5550_s6 + $0x28] sm:$0xff] }
  0xba   : > { %v1204_v24 = vadd.f32 %v1203_v17, %v1202_v9  ;;  %v1169_v28 = vrot.slane %v1168_v1, 1  ;;  %v1187_v35 = vrot.slane %v1186_v18, 1 }
  0xbb   : > { %v1178_v34 = vrot.slane %v1177_v54, 1  ;;  %v1161_v43 = vadd.f32 %v1160_v20, %v1159_v15  ;;  %v1213_v60 = vmul.f32 0.03125, %v1197_v63  ;;  %v1216_v49 = vpack.c.bf16 %v1208_v39, %v1208_v39 }
  0xbc   : > { %v1205_v32 = vrot.slane %v1204_v24, 1  ;;  %v1170_v33 = vadd.f32 %v1169_v28, %v1168_v1  ;;  %v1188_v47 = vadd.f32 %v1187_v35, %v1186_v18  ;;  %v4518_v1 = vpack.c.bf16 %v1490_v13, %v1489_v12  ;;  %v1492_v18 = vld [vmem:[%s5550_s6 + $0x18] sm:$0xff]  ;;  %v3216_v12 = vld [vmem:[%s5547_s3] ss:$0 sm:$0xff] }
  0xbd   : > { %v1179_v41 = vadd.f32 %v1178_v34, %v1177_v54  ;;  %v1209_v48 = vmul.f32 0.03125, %v1161_v43  ;;  %692 = vmatmul.mubr.bf16.gmra.mrb[4].mxu0 %v4412_v22  ;;  %v1221_v4 = vpack.c.bf16 %v1213_v60, %v1213_v60  ;;  %v1255_v6 = vunpack.c.l.b16 %v1216_v49  ;;  %v1491_v54 = vld [vmem:[%s5550_s6 + $0x10] sm:$0xff]  ;;  %v1496_v35 = vld [vmem:[%s5550_s6 + $0x38] sm:$0xff]  ;;  %v1498_v43 = vld [vmem:[%s5550_s6 + $0x48] sm:$0xff] }
  0xbe   : > { %v1206_v50 = vadd.f32 %v1205_v32, %v1204_v24  ;;  %v1210_v58 = vmul.f32 0.03125, %v1170_v33  ;;  %v1212_v59 = vmul.f32 0.03125, %v1188_v47  ;;  %701 = vmatprep.mubr.bf16.mxu0 %v5637_v40  ;;  %3604 = vmatprep.subr.bf16.mxu1 %v4518_v1  ;;  %v4529_v23 = vpack.c.bf16 %v1492_v18, %v1491_v54  ;;  %v1493_v24 = vld [vmem:[%s5550_s6 + $0x20] sm:$0xff]  ;;  %v1495_v34 = vld [vmem:[%s5550_s6 + $0x30] sm:$0xff] }
  0xbf   : > { %v1211_v56 = vmul.f32 0.03125, %v1179_v41  ;;  %v1217_v2 = vpack.c.bf16 %v1209_v48, %v1209_v48  ;;  %v1263_v22 = vsel %vm1262_vm1, %v1255_v6, %v1254_v55  ;;  %v1260_v10 = vunpack.c.l.b16 %v1221_v4  ;;  %v5638_v33 = vld [vmem:[#allocation17_spill] sm:$0xff] }
  0xc0   : > { %v1214_v62 = vmul.f32 0.03125, %v1206_v50  ;;  %v1218_v3 = vpack.c.bf16 %v1210_v58, %v1210_v58  ;;  %v1220_v61 = vpack.c.bf16 %v1212_v59, %v1212_v59  ;;  %v4540_v28 = vpack.c.bf16 %v1494_v27, %v1493_v24 }
  0xc1   : > { %v1219_v57 = vpack.c.bf16 %v1211_v56, %v1211_v56  ;;  %v1256_v7 = vunpack.c.l.b16 %v1217_v2  ;;  %v4551_v42 = vpack.c.bf16 %v1496_v35, %v1495_v34  ;;  %v4086_v47 = vmov 0.0|0.0  }
  0xc2   : > { %v1222_v5 = vpack.c.bf16 %v1214_v62, %v1214_v62  ;;  %v1257_v21 = vunpack.c.l.b16 %v1218_v3  ;;  %v1259_v9 = vunpack.c.l.b16 %v1220_v61  ;;  %v4087_v4 = vmov 1966171168  }
  0xc3   : > { %v1258_v8 = vunpack.c.l.b16 %v1219_v57  ;;  %v1265_v11 = vsel %vm1264_vm2, %v1256_v7, %v1263_v22 }
  0xc4   : > { %v1261_v14 = vunpack.c.l.b16 %v1222_v5  ;;  %v1267_v15 = vsel %vm1266_vm3, %v1257_v21, %v1265_v11  ;;  %v1370_v5 = vunpack.c.l.s4 %v4087_v4 }
  0xc5   : > { %v1269_v16 = vsel %vm1268_vm4, %v1258_v8, %v1267_v15  ;;  %702 = vmatmul.mubr.bf16.gmra.mrb[8].mxu0 %v4417_v25 }
  0xc6   : > { %v1271_v17 = vsel %vm1270_vm5, %v1259_v9, %v1269_v16  ;;  %711 = vmatprep.mubr.bf16.mxu0 %v5637_v40  ;;  %v1371_v22 = vunpack.c.0.s8 %v1370_v5 }
  0xc7   : > { %v1273_v19 = vsel %vm1272_vm6, %v1260_v10, %v1271_v17 }
  0xc8   : > { %v1275_v20 = vsel %vm1274_vm7, %v1261_v14, %v1273_v19 }
  0xc9   : > { %v1276_v25 = vpack.c.b16 %v1275_v20, %v1275_v20 }
  0xcb   : > { %3410 = vmatmul.mubr.bf16.vlgmr.msra.gmra.mrb[0].mxu1 %v1276_v25 }
  0xcc   : > { %3606 = vmatpush3.bf16.msra.mxu1 %v4518_v1 }
  0xcd   : > { %712 = vmatmul.mubr.bf16.gmra.mrb[12].mxu0 %v4420_v26  ;;  %3608 = vmatprep.subr.bf16.mxu1 %v4529_v23  ;;  %v1497_v26 = vld [vmem:[%s5550_s6 + $0x40] sm:$0xff] }
  0xce   : > { %721 = vmatprep.mubr.bf16.mxu0 %v5637_v40  ;;  %v4562_v51 = vpack.c.bf16 %v1498_v43, %v1497_v26 }
  0xd0   : > { %3610 = vmatpush3.bf16.msra.mxu1 %v4529_v23 }
  0xd1   : > { %3612 = vmatprep.subr.bf16.mxu1 %v4540_v28 }
  0xd4   : > { %3614 = vmatpush3.bf16.msra.mxu1 %v4540_v28 }
  0xd5   : > { %722 = vmatmul.mubr.bf16.gmra.mrb[16].mxu0 %v4425_v29  ;;  %3616 = vmatprep.subr.bf16.mxu1 %v4551_v42  ;;  %v1499_v29 = vld [vmem:[%s5550_s6 + $0x50] sm:$0xff] }
  0xd6   : > { %731 = vmatprep.mubr.bf16.mxu0 %v5637_v40 }
  0xd8   : > { %3618 = vmatpush3.bf16.msra.mxu1 %v4551_v42 }
  0xd9   : > { %3620 = vmatprep.subr.bf16.mxu1 %v4562_v51 }
  0xdc   : > { %3622 = vmatpush3.bf16.msra.mxu1 %v4562_v51 }
  0xdd   : > { %732 = vmatmul.mubr.bf16.gmra.mrb[20].mxu0 %v4428_v30  ;;  %v1500_v30 = vld [vmem:[%s5550_s6 + $0x58] sm:$0xff] }
  0xde   : > { %741 = vmatprep.mubr.bf16.mxu0 %v5637_v40 }
  0xe5   : > { %742 = vmatmul.mubr.bf16.gmra.mrb[24].mxu0 %v4431_v31  ;;  %v4592_v31 = vpack.c.bf16 %v1500_v30, %v1499_v29 }
  0xe6   : > { %751 = vmatprep.mubr.bf16.mxu0 %v5637_v40 }
  0xe7   : > { %3624 = vmatprep.subr.bf16.mxu1 %v4592_v31 }
  0xe8   : > { %3626 = vmatpush3.bf16.msra.mxu1 %v4592_v31 }
  0xed   : > { %752 = vmatmul.mubr.bf16.gmra.mrb[28].mxu0 %v4440_v36  ;;  %v1501_v36 = vld [vmem:[%s5550_s6 + $0x60] sm:$0xff] }
  0xee   : > { %761 = vmatprep.mubr.bf16.mxu0 %v5637_v40 }
  0xf5   : > { %762 = vmatmul.mubr.bf16.gmra.mrb[32].mxu0 %v4443_v37  ;;  %v1502_v37 = vld [vmem:[%s5550_s6 + $0x68] sm:$0xff] }
  0xf6   : > { %771 = vmatprep.mubr.bf16.mxu0 %v5637_v40 }
  0xfd   : > { %772 = vmatmul.mubr.bf16.gmra.mrb[36].mxu0 %v4446_v38  ;;  %v4602_v38 = vpack.c.bf16 %v1502_v37, %v1501_v36 }
  0xfe   : > { %781 = vmatprep.mubr.bf16.mxu0 %v5637_v40 }
  0xff   : > { %3628 = vmatprep.subr.bf16.mxu1 %v4602_v38 }
 0x100   : > { %3630 = vmatpush3.bf16.msra.mxu1 %v4602_v38 }
 0x105   : > { %782 = vmatmul.mubr.bf16.gmra.mrb[40].mxu0 %v4455_v44  ;;  %v1005_v44 = vlaneseq }
 0x106   : > { %791 = vmatprep.mubr.bf16.mxu0 %v5637_v40 }
 0x107   : > { %v1006_v32 = vshrl.u32 %v1005_v44, 7 }
 0x109   : > { %v4663_v18 = vsub.s32 %v1371_v22, %v1006_v32 }
 0x10b   : > { %5645 = vst [vmem:[#allocation23_spill] sm:$0xff] %v4663_v18 }
 0x10d   : > { %792 = vmatmul.mubr.bf16.gmra.mrb[44].mxu0 %v4458_v45  ;;  %v1503_v45 = vld [vmem:[%s5550_s6 + $0x70] sm:$0xff] }
 0x10e   : > { %801 = vmatprep.mubr.bf16.mxu0 %v5637_v40 }
 0x115   : > { %802 = vmatmul.mubr.bf16.gmra.mrb[48].mxu0 %v4461_v46  ;;  %v1504_v46 = vld [vmem:[%s5550_s6 + $0x78] sm:$0xff] }
 0x116   : > { %811 = vmatprep.mubr.bf16.mxu0 %v5637_v40 }
 0x11d   : > { %812 = vmatmul.mubr.bf16.gmra.mrb[52].mxu0 %v4468_v52  ;;  %v4614_v52 = vpack.c.bf16 %v1504_v46, %v1503_v45  ;;  %v4674_v46 = vsub.s32 0, %v1006_v32 }
 0x11e   : > { %821 = vmatprep.mubr.bf16.mxu0 %v5637_v40 }
 0x11f   : > { %3632 = vmatprep.subr.bf16.mxu1 %v4614_v52 }
 0x120   : > { %3634 = vmatpush3.bf16.msra.mxu1 %v4614_v52 }
 0x121   : > { %3635 = vmatprep.subr.bf16.mxu1 %v4086_v47 }
 0x125   : > { %822 = vmatmul.mubr.bf16.gmra.mrb[56].mxu0 %v4471_v53  ;;  %v4620_v53 = vld [vmem:[%s5549_s5] sm:$0x3] }
 0x126   : > { %831 = vmatprep.mubr.bf16.mxu0 %v5637_v40  ;;  %v1011_v40 = vsub.s32 1, %v1006_v32 }
 0x128   : > { %v4625_v41 = vrot.slane %v4620_v53, %v1011_v40 }
 0x12d   : > { %832 = vmatmul.mubr.bf16.gmra.mrb[60].mxu0 %v5638_v33 }
 0x12e   : > { %3580 = vmatprep.mubr.msk.f32.mxu0 %vm4085_vm0, %v5568_v0 }
 0x188   : > { %v4630_v63 = vpop.f32.mrb[0].mxu0 }
 0x189   : > { %v4632_v50 = vpop.f32.mrb[1].mxu0 }
 0x18a   : > { %5639 = vst [vmem:[#allocation17_spill] sm:$0xff] %v4632_v50  ;;  %v687_v39 = vpop.f32.mrb[2].mxu0 }
 0x18b   : > { %v842_v48 = vadd.f32 %v687_v39, %v4630_v63  ;;  %v4635_v55 = vpop.f32.mrb[3].mxu0 }
 0x18c   : > { %5640 = vst [vmem:[#allocation18_spill] sm:$0xff] %v4635_v55  ;;  %v851_v58 = vadd.f32 %v4635_v55, %v4632_v50 }
 0x190   : > { %v4639_v56 = vpop.f32.mrb[4].mxu0 }
 0x191   : > { %v843_v59 = vadd.f32 %v842_v48, %v4639_v56  ;;  %v4642_v60 = vpop.f32.mrb[5].mxu0 }
 0x192   : > { %5641 = vst [vmem:[#allocation19_spill] sm:$0xff] %v4642_v60  ;;  %v852_v62 = vadd.f32 %v851_v58, %v4642_v60  ;;  %v4645_v49 = vpop.f32.mrb[6].mxu0 }
 0x193   : > { %v844_v2 = vadd.f32 %v843_v59, %v4645_v49  ;;  %v4648_v3 = vpop.f32.mrb[7].mxu0 }
 0x194   : > { %5642 = vst [vmem:[#allocation20_spill] sm:$0xff] %v4648_v3  ;;  %v853_v57 = vadd.f32 %v852_v62, %v4648_v3  ;;  %v4681_v62 = vld [vmem:[#allocation7 + $0x10] sm:$0xff] }
 0x195   : > { %v845_v13 = vrot.slane %v844_v2, 4  ;;  %v1041_v5 = vadd.f32 %v4681_v62, %v687_v39 }
 0x196   : > { %v854_v61 = vrot.slane %v853_v57, 4 }
 0x197   : > { %v846_v20 = vadd.f32 %v845_v13, %v844_v2  ;;  %v4694_v13 = vld [vmem:[#allocation7 + $0x30] sm:$0xff] }
 0x198   : > { %v855_v6 = vadd.f32 %v854_v61, %v853_v57  ;;  %v703_v7 = vpop.f32.mrb[8].mxu0  ;;  %v4683_v57 = vld [vmem:[#allocation7] sm:$0xff] }
 0x199   : > { %v4651_v21 = vpop.f32.mrb[9].mxu0  ;;  %v847_v40 = vrot.slane %v846_v20, 2 }
 0x19a   : > { %5643 = vst [vmem:[#allocation21_spill] sm:$0xff] %v4651_v21  ;;  %v856_v8 = vrot.slane %v855_v6, 2  ;;  %v4653_v9 = vpop.f32.mrb[10].mxu0 }
 0x19b   : > { %v860_v10 = vadd.f32 %v4653_v9, %v703_v7  ;;  %v4656_v11 = vpop.f32.mrb[11].mxu0 }
 0x19c   : > { %5644 = vst [vmem:[#allocation22_spill] sm:$0xff] %v4656_v11  ;;  %v857_v14 = vadd.f32 %v856_v8, %v855_v6  ;;  %v869_v15 = vadd.f32 %v4656_v11, %v4651_v21  ;;  %v4690_v6 = vld [vmem:[#allocation7 + $0x20] sm:$0xff]  ;;  %v848_v8 = vadd.f32 %v847_v40, %v846_v20  ;;  %v1047_v20 = vadd.f32 %v4683_v57, %v703_v7 }
 0x19d   : > { %v1043_v39 = vadd.f32 %v4690_v6, %v4639_v56 }
 0x19e   : > { %v1360_v16 = vpop.f32.mrb[0].mxu1  ;;  %v858_v17 = vrot.slane %v857_v14, 1 }
 0x19f   : > { %v1361_v54 = vadd.f32 %v3216_v12, %v1360_v16  ;;  %v3411_v19 = vpop.f32.mrb[1].mxu1  ;;  %v1039_v12 = vadd.f32 %v4683_v57, %v4630_v63  ;;  %v1045_v63 = vadd.f32 %v4694_v13, %v4645_v49 }
 0x1a0   : > { %v859_v25 = vadd.f32 %v858_v17, %v857_v14  ;;  %v713_v24 = vpop.f32.mrb[12].mxu0  ;;  %v1363_v27 = vpop.f32.mrb[2].mxu1 }
 0x1a1   : > { %v4665_v34 = vmul.f32 0.17677669, %v1361_v54  ;;  %v861_v35 = vadd.f32 %v860_v10, %v713_v24  ;;  %v4667_v26 = vpop.f32.mrb[13].mxu0  ;;  %v3412_v43 = vpop.f32.mrb[3].mxu1  ;;  %v849_v27 = vrot.slane %v848_v8, 1 }
 0x1a2   : > { %5646 = vst [vmem:[#allocation24_spill] sm:$0xff] %v4667_v26  ;;  %v988_v29 = vmul.f32 0.03125, %v859_v25  ;;  %v870_v30 = vadd.f32 %v869_v15, %v4667_v26  ;;  %v717_v36 = vpop.f32.mrb[14].mxu0 }
 0x1a3   : > { %v1375_v37 = vrot.slane %v4665_v34, %v4663_v18  ;;  %v862_v44 = vadd.f32 %v861_v35, %v717_v36  ;;  %v4672_v45 = vpop.f32.mrb[15].mxu0  ;;  %v850_v49 = vadd.f32 %v849_v27, %v848_v8 }
 0x1a4   : > { %5647 = vst [vmem:[#allocation25_spill] sm:$0xff] %v4672_v45  ;;  %v4677_v33 = vadd.f32 %v4625_v41, %v988_v29  ;;  %v871_v48 = vadd.f32 %v870_v30, %v4672_v45 }
 0x1a5   : > { %v1383_v58 = vcombine.high %v1375_v37, %v1375_v37  ;;  %v1391_v59 = vrot.slane %v1375_v37, %v4663_v18  ;;  %v863_v2 = vrot.slane %v862_v44, 4  ;;  %v987_v27 = vmul.f32 0.03125, %v850_v49 }
 0x1a6   : > { %v872_v61 = vrot.slane %v871_v48, 4 }
 0x1a7   : > { %v4686_v4 = vrot.slane %v1383_v58, %v4663_v18  ;;  %v1420_v32 = vrot.slane %v1391_v59, %v4674_v46  ;;  %v864_v22 = vadd.f32 %v863_v2, %v862_v44  ;;  %v1413_v37 = vcombine.high %v1391_v59, %v1391_v59 }
 0x1a8   : > { %v723_v10 = vpop.f32.mrb[16].mxu0  ;;  %v873_v14 = vadd.f32 %v872_v61, %v871_v48  ;;  %v1049_v44 = vadd.f32 %v4681_v62, %v4653_v9  ;;  %v1051_v48 = vadd.f32 %v4690_v6, %v713_v24  ;;  %v1053_v59 = vadd.f32 %v4694_v13, %v717_v36 }
 0x1a9   : > { %v4696_v15 = vpop.f32.mrb[17].mxu0  ;;  %v1458_v16 = vmul.f32 %v1420_v32, %v1041_v5  ;;  %v1424_v54 = vrot.slane %v4686_v4, %v4674_v46  ;;  %v1457_v19 = vmul.f32 %v1420_v32, %v1039_v12  ;;  %v865_v35 = vrot.slane %v864_v22, 2 }
 0x1aa   : > { %5648 = vst [vmem:[#allocation26_spill] sm:$0xff] %v4696_v15  ;;  %v727_v17 = vpop.f32.mrb[18].mxu0  ;;  %v1459_v43 = vmul.f32 %v1420_v32, %v1043_v39  ;;  %v874_v29 = vrot.slane %v873_v14, 2  ;;  %v1460_v2 = vmul.f32 %v1420_v32, %v1045_v63  ;;  %v4724_v63 = vrot.slane %v4620_v53, %v4674_v46 }
 0x1ab   : > { %v4703_v25 = vpop.f32.mrb[19].mxu0  ;;  %3445 = vmatprep.mubr.f32.mxu1 %v1457_v19  ;;  %v878_v30 = vadd.f32 %v727_v17, %v723_v10  ;;  %v866_v56 = vadd.f32 %v865_v35, %v864_v22  ;;  %v1461_v40 = vmul.f32 %v1424_v54, %v1047_v20  ;;  %v1428_v22 = vrot.slane %v1413_v37, %v4674_v46 }
 0x1ac   : > { %5649 = vst [vmem:[#allocation27_spill] sm:$0xff] %v4703_v25  ;;  %3446 = vmatmul.mubr.f32.vlgmr.msra.gmra.mrb[4].mxu1 %v1458_v16  ;;  %v887_v7 = vadd.f32 %v4703_v25, %v4696_v15  ;;  %v875_v58 = vadd.f32 %v874_v29, %v873_v14  ;;  %v1462_v39 = vmul.f32 %v1424_v54, %v1049_v44 }
 0x1ad   : > { %3448 = vmatprep.mubr.f32.mxu1 %v1459_v43  ;;  %v867_v61 = vrot.slane %v866_v56, 1  ;;  %3637 = vmatpush3.bf16.msra.mxu1 %v4518_v1  ;;  %v1463_v14 = vmul.f32 %v1424_v54, %v1051_v48  ;;  %v1055_v1 = vadd.f32 %v4683_v57, %v723_v10  ;;  %v1415_v29 = vcombine.high %v4686_v4, %v4686_v4 }
 0x1ae   : > { %v876_v12 = vrot.slane %v875_v58, 1  ;;  %3638 = vmatprep.subr.bf16.mxu1 %v4086_v47  ;;  %v1464_v44 = vmul.f32 %v1424_v54, %v1053_v59  ;;  %v1015_v4 = vadd.f32 %v4724_v63, %v987_v27  ;;  %v1368_v54 = vcombine.high %v4665_v34, %v4665_v34 }
 0x1af   : > { %v868_v24 = vadd.f32 %v867_v61, %v866_v56  ;;  %v1057_v56 = vadd.f32 %v4681_v62, %v727_v17  ;;  %v1432_v59 = vrot.slane %v1415_v29, %v4674_v46 }
 0x1b0   : > { %v733_v5 = vpop.f32.mrb[20].mxu0  ;;  %3449 = vmatmul.mubr.f32.gmra.mrb[6].mxu1 %v1460_v2  ;;  %v877_v19 = vadd.f32 %v876_v12, %v875_v58  ;;  %v4755_v29 = vrot.slane %v1368_v54, %v4663_v18 }
 0x1b1   : > { %v879_v16 = vadd.f32 %v878_v30, %v733_v5  ;;  %v4714_v9 = vpop.f32.mrb[21].mxu0  ;;  %3451 = vmatprep.mubr.f32.mxu1 %v1461_v40  ;;  %v989_v35 = vmul.f32 0.03125, %v868_v24  ;;  %3640 = vmatpush3.bf16.msra.mxu1 %v4529_v23  ;;  %v1465_v40 = vmul.f32 %v1428_v22, %v1055_v1  ;;  %v1059_v23 = vadd.f32 %v4690_v6, %v733_v5 }
 0x1b2   : > { %5650 = vst [vmem:[#allocation28_spill] sm:$0xff] %v4714_v9  ;;  %v888_v8 = vadd.f32 %v887_v7, %v4714_v9  ;;  %v737_v32 = vpop.f32.mrb[22].mxu0  ;;  %v990_v30 = vmul.f32 0.03125, %v877_v19  ;;  %3641 = vmatprep.subr.bf16.mxu1 %v4086_v47 }
 0x1b3   : > { %v880_v36 = vadd.f32 %v879_v16, %v737_v32  ;;  %v4720_v20 = vpop.f32.mrb[23].mxu0  ;;  %v1017_v10 = vadd.f32 %v4724_v63, %v989_v35  ;;  %v1466_v16 = vmul.f32 %v1428_v22, %v1057_v56 }
 0x1b4   : > { %5651 = vst [vmem:[#allocation29_spill] sm:$0xff] %v4720_v20  ;;  %v889_v43 = vadd.f32 %v888_v8, %v4720_v20  ;;  %3452 = vmatmul.mubr.f32.gmra.mrb[8].mxu1 %v1462_v39  ;;  %v1018_v7 = vadd.f32 %v4625_v41, %v990_v30  ;;  %v1061_v39 = vadd.f32 %v4694_v13, %v737_v32 }
 0x1b5   : > { %v881_v37 = vrot.slane %v880_v36, 4  ;;  %3454 = vmatprep.mubr.f32.mxu1 %v1463_v14  ;;  %v1738_v58 = vrot.slane %v1017_v10, 7  ;;  %3643 = vmatpush3.bf16.msra.mxu1 %v4540_v28  ;;  %v1467_v28 = vmul.f32 %v1428_v22, %v1059_v23 }
 0x1b6   : > { %v890_v53 = vrot.slane %v889_v43, 4  ;;  %v2863_v61 = vrot.slane %v1018_v7, 7  ;;  %3644 = vmatprep.subr.bf16.mxu1 %v4086_v47  ;;  %v1468_v30 = vmul.f32 %v1428_v22, %v1061_v39  ;;  %v4765_v22 = vrot.slane %v4755_v29, %v4663_v18 }
 0x1b7   : > { %v882_v48 = vadd.f32 %v881_v37, %v880_v36  ;;  %v1739_v5 = vsel %vm1262_vm1, %v1738_v58, %v1015_v4 }
 0x1b8   : > { %v891_v49 = vadd.f32 %v890_v53, %v889_v43  ;;  %v743_v2 = vpop.f32.mrb[24].mxu0  ;;  %3455 = vmatmul.mubr.f32.gmra.mrb[10].mxu1 %v1464_v44  ;;  %v2864_v43 = vsel %vm1262_vm1, %v2863_v61, %v4677_v33 }
 0x1b9   : > { %v883_v17 = vrot.slane %v882_v48, 2  ;;  %v4740_v12 = vpop.f32.mrb[25].mxu0  ;;  %3457 = vmatprep.mubr.f32.mxu1 %v1465_v40  ;;  %v1063_v19 = vadd.f32 %v4683_v57, %v743_v2  ;;  %3646 = vmatpush3.bf16.msra.mxu1 %v4551_v42 }
 0x1ba   : > { %5652 = vst [vmem:[#allocation30_spill] sm:$0xff] %v4740_v12  ;;  %v892_v24 = vrot.slane %v891_v49, 2  ;;  %v747_v8 = vpop.f32.mrb[26].mxu0  ;;  %3647 = vmatprep.subr.bf16.mxu1 %v4086_v47 }
 0x1bb   : > { %v884_v14 = vadd.f32 %v883_v17, %v882_v48  ;;  %v896_v1 = vadd.f32 %v747_v8, %v743_v2  ;;  %v4746_v36 = vpop.f32.mrb[27].mxu0  ;;  %v1065_v10 = vadd.f32 %v4681_v62, %v747_v8  ;;  %v1469_v56 = vmul.f32 %v1432_v59, %v1063_v19 }
 0x1bc   : > { %5653 = vst [vmem:[#allocation31_spill] sm:$0xff] %v4746_v36  ;;  %v893_v27 = vadd.f32 %v892_v24, %v891_v49  ;;  %v905_v35 = vadd.f32 %v4746_v36, %v4740_v12  ;;  %3458 = vmatmul.mubr.f32.gmra.mrb[12].mxu1 %v1466_v16 }
 0x1bd   : > { %v885_v32 = vrot.slane %v884_v14, 1  ;;  %3460 = vmatprep.mubr.f32.mxu1 %v1467_v28  ;;  %3649 = vmatpush3.bf16.msra.mxu1 %v4562_v51  ;;  %v1470_v4 = vmul.f32 %v1432_v59, %v1065_v10 }
 0x1be   : > { %v894_v37 = vrot.slane %v893_v27, 1  ;;  %3650 = vmatprep.subr.bf16.mxu1 %v4086_v47 }
 0x1bf   : > { %v886_v44 = vadd.f32 %v885_v32, %v884_v14 }
 0x1c0   : > { %v895_v53 = vadd.f32 %v894_v37, %v893_v27  ;;  %v753_v7 = vpop.f32.mrb[28].mxu0  ;;  %3461 = vmatmul.mubr.f32.gmra.mrb[14].mxu1 %v1468_v30 }
 0x1c1   : > { %v991_v42 = vmul.f32 0.03125, %v886_v44  ;;  %v897_v33 = vadd.f32 %v896_v1, %v753_v7  ;;  %v1067_v40 = vadd.f32 %v4690_v6, %v753_v7  ;;  %v4760_v23 = vpop.f32.mrb[29].mxu0  ;;  %3463 = vmatprep.mubr.f32.mxu1 %v1469_v56  ;;  %3652 = vmatpush3.bf16.msra.mxu1 %v4592_v31  ;;  %v1436_v1 = vrot.slane %v4765_v22, %v4674_v46 }
 0x1c2   : > { %5654 = vst [vmem:[#allocation32_spill] sm:$0xff] %v4760_v23  ;;  %v992_v48 = vmul.f32 0.03125, %v895_v53  ;;  %v906_v58 = vadd.f32 %v905_v35, %v4760_v23  ;;  %v757_v49 = vpop.f32.mrb[30].mxu0  ;;  %3653 = vmatprep.subr.bf16.mxu1 %v4086_v47 }
 0x1c3   : > { %v1019_v51 = vadd.f32 %v4724_v63, %v991_v42  ;;  %v1471_v2 = vmul.f32 %v1432_v59, %v1067_v40  ;;  %v898_v54 = vadd.f32 %v897_v33, %v757_v49  ;;  %v1069_v61 = vadd.f32 %v4694_v13, %v757_v49  ;;  %v4770_v17 = vpop.f32.mrb[31].mxu0 }
 0x1c4   : > { %5655 = vst [vmem:[#allocation33_spill] sm:$0xff] %v4770_v17  ;;  %v1020_v16 = vadd.f32 %v4625_v41, %v992_v48  ;;  %v907_v39 = vadd.f32 %v906_v58, %v4770_v17  ;;  %3464 = vmatmul.mubr.f32.gmra.mrb[16].mxu1 %v1470_v4 }
 0x1c5   : > { %v1740_v24 = vrot.slane %v1019_v51, 6  ;;  %v899_v8 = vrot.slane %v898_v54, 4  ;;  %v1472_v14 = vmul.f32 %v1432_v59, %v1069_v61  ;;  %3466 = vmatprep.mubr.f32.mxu1 %v1471_v2  ;;  %3655 = vmatpush3.bf16.msra.mxu1 %v4602_v38  ;;  %v1384_v51 = vcombine.high %v4755_v29, %v4755_v29 }
 0x1c6   : > { %v2865_v28 = vrot.slane %v1020_v16, 6  ;;  %v908_v19 = vrot.slane %v907_v39, 4  ;;  %3656 = vmatprep.subr.bf16.mxu1 %v4086_v47 }
 0x1c7   : > { %v1741_v27 = vsel %vm1264_vm2, %v1740_v24, %v1739_v5  ;;  %v900_v35 = vadd.f32 %v899_v8, %v898_v54 }
 0x1c8   : > { %v909_v32 = vadd.f32 %v908_v19, %v907_v39  ;;  %v763_v30 = vpop.f32.mrb[32].mxu0  ;;  %v2866_v31 = vsel %vm1264_vm2, %v2865_v28, %v2864_v43  ;;  %3467 = vmatmul.mubr.f32.gmra.mrb[18].mxu1 %v1472_v14 }
 0x1c9   : > { %v901_v37 = vrot.slane %v900_v35, 2  ;;  %v1071_v10 = vadd.f32 %v4683_v57, %v763_v30  ;;  %v4782_v44 = vpop.f32.mrb[33].mxu0  ;;  %3658 = vmatpush3.bf16.msra.mxu1 %v4614_v52 }
 0x1ca   : > { %5656 = vst [vmem:[#allocation34_spill] sm:$0xff] %v4782_v44  ;;  %v910_v59 = vrot.slane %v909_v32, 2  ;;  %v767_v56 = vpop.f32.mrb[34].mxu0 }
 0x1cb   : > { %v902_v53 = vadd.f32 %v901_v37, %v900_v35  ;;  %v1473_v5 = vmul.f32 %v1436_v1, %v1071_v10  ;;  %v914_v7 = vadd.f32 %v767_v56, %v763_v30  ;;  %v1073_v42 = vadd.f32 %v4681_v62, %v767_v56  ;;  %v4786_v33 = vpop.f32.mrb[35].mxu0 }
 0x1cc   : > { %5657 = vst [vmem:[#allocation35_spill] sm:$0xff] %v4786_v33  ;;  %v911_v38 = vadd.f32 %v910_v59, %v909_v32  ;;  %v923_v43 = vadd.f32 %v4786_v33, %v4782_v44  ;;  %v4804_v30 = vrot.slane %v1384_v51, %v4663_v18 }
 0x1cd   : > { %v903_v40 = vrot.slane %v902_v53, 1  ;;  %v1474_v48 = vmul.f32 %v1436_v1, %v1073_v42  ;;  %3469 = vmatprep.mubr.f32.mxu1 %v1473_v5 }
 0x1ce   : > { %v912_v47 = vrot.slane %v911_v38, 1 }
 0x1cf   : > { %v904_v4 = vadd.f32 %v903_v40, %v902_v53  ;;  %3470 = vmatmul.mubr.f32.gmra.mrb[20].mxu1 %v1474_v48 }
 0x1d0   : > { %v913_v58 = vadd.f32 %v912_v47, %v911_v38  ;;  %v773_v49 = vpop.f32.mrb[36].mxu0  ;;  %v1440_v47 = vrot.slane %v4804_v30, %v4674_v46 }
 0x1d1   : > { %v993_v2 = vmul.f32 0.03125, %v904_v4  ;;  %v915_v54 = vadd.f32 %v914_v7, %v773_v49  ;;  %v1075_v61 = vadd.f32 %v4690_v6, %v773_v49  ;;  %v4794_v16 = vpop.f32.mrb[37].mxu0 }
 0x1d2   : > { %5658 = vst [vmem:[#allocation36_spill] sm:$0xff] %v4794_v16  ;;  %v994_v39 = vmul.f32 0.03125, %v913_v58  ;;  %v924_v52 = vadd.f32 %v923_v43, %v4794_v16  ;;  %v777_v24 = vpop.f32.mrb[38].mxu0 }
 0x1d3   : > { %v1021_v8 = vadd.f32 %v4724_v63, %v993_v2  ;;  %v1475_v28 = vmul.f32 %v1436_v1, %v1075_v61  ;;  %v916_v14 = vadd.f32 %v915_v54, %v777_v24  ;;  %v1077_v19 = vadd.f32 %v4694_v13, %v777_v24  ;;  %v4799_v35 = vpop.f32.mrb[39].mxu0 }
 0x1d4   : > { %5659 = vst [vmem:[#allocation37_spill] sm:$0xff] %v4799_v35  ;;  %v1022_v29 = vadd.f32 %v4625_v41, %v994_v39  ;;  %v925_v32 = vadd.f32 %v924_v52, %v4799_v35 }
 0x1d5   : > { %v1742_v37 = vrot.slane %v1021_v8, 5  ;;  %v917_v10 = vrot.slane %v916_v14, 4  ;;  %v1476_v59 = vmul.f32 %v1436_v1, %v1077_v19  ;;  %3472 = vmatprep.mubr.f32.mxu1 %v1475_v28 }
 0x1d6   : > { %v2867_v56 = vrot.slane %v1022_v29, 5  ;;  %v926_v53 = vrot.slane %v925_v32, 4 }
 0x1d7   : > { %v1743_v5 = vsel %vm1266_vm3, %v1742_v37, %v1741_v27  ;;  %v918_v7 = vadd.f32 %v917_v10, %v916_v14  ;;  %3473 = vmatmul.mubr.f32.gmra.mrb[22].mxu1 %v1476_v59 }
 0x1d8   : > { %v927_v42 = vadd.f32 %v926_v53, %v925_v32  ;;  %v783_v38 = vpop.f32.mrb[40].mxu0  ;;  %v2868_v43 = vsel %vm1266_vm3, %v2867_v56, %v2866_v31 }
 0x1d9   : > { %v919_v40 = vrot.slane %v918_v7, 2  ;;  %v1079_v48 = vadd.f32 %v4683_v57, %v783_v38  ;;  %v4811_v4 = vpop.f32.mrb[41].mxu0 }
 0x1da   : > { %5660 = vst [vmem:[#allocation38_spill] sm:$0xff] %v4811_v4  ;;  %v928_v1 = vrot.slane %v927_v42, 2  ;;  %v787_v58 = vpop.f32.mrb[42].mxu0 }
 0x1db   : > { %v920_v49 = vadd.f32 %v919_v40, %v918_v7  ;;  %v1477_v51 = vmul.f32 %v1440_v47, %v1079_v48  ;;  %v932_v2 = vadd.f32 %v787_v58, %v783_v38  ;;  %v1081_v27 = vadd.f32 %v4681_v62, %v787_v58  ;;  %v4814_v54 = vpop.f32.mrb[43].mxu0 }
 0x1dc   : > { %5661 = vst [vmem:[#allocation39_spill] sm:$0xff] %v4814_v54  ;;  %v929_v61 = vadd.f32 %v928_v1, %v927_v42  ;;  %v941_v31 = vadd.f32 %v4814_v54, %v4811_v4  ;;  %v1414_v58 = vcombine.high %v4765_v22, %v4765_v22 }
 0x1dd   : > { %v921_v39 = vrot.slane %v920_v49, 1  ;;  %v1478_v52 = vmul.f32 %v1440_v47, %v1081_v27  ;;  %3475 = vmatprep.mubr.f32.mxu1 %v1477_v51 }
 0x1de   : > { %v930_v24 = vrot.slane %v929_v61, 1 }
 0x1df   : > { %v922_v8 = vadd.f32 %v921_v39, %v920_v49  ;;  %3476 = vmatmul.mubr.f32.gmra.mrb[24].mxu1 %v1478_v52 }
 0x1e0   : > { %v931_v28 = vadd.f32 %v930_v24, %v929_v61  ;;  %v793_v14 = vpop.f32.mrb[44].mxu0 }
 0x1e1   : > { %v995_v19 = vmul.f32 0.03125, %v922_v8  ;;  %v933_v29 = vadd.f32 %v932_v2, %v793_v14  ;;  %v1083_v32 = vadd.f32 %v4690_v6, %v793_v14  ;;  %v4819_v37 = vpop.f32.mrb[45].mxu0 }
 0x1e2   : > { %5662 = vst [vmem:[#allocation40_spill] sm:$0xff] %v4819_v37  ;;  %v996_v10 = vmul.f32 0.03125, %v931_v28  ;;  %v942_v59 = vadd.f32 %v941_v31, %v4819_v37  ;;  %v797_v56 = vpop.f32.mrb[46].mxu0 }
 0x1e3   : > { %v1023_v53 = vadd.f32 %v4724_v63, %v995_v19  ;;  %v1479_v7 = vmul.f32 %v1440_v47, %v1083_v32  ;;  %v934_v42 = vadd.f32 %v933_v29, %v797_v56  ;;  %v1085_v38 = vadd.f32 %v4694_v13, %v797_v56  ;;  %v4824_v40 = vpop.f32.mrb[47].mxu0 }
 0x1e4   : > { %5663 = vst [vmem:[#allocation41_spill] sm:$0xff] %v4824_v40  ;;  %v1024_v48 = vadd.f32 %v4625_v41, %v996_v10  ;;  %v943_v1 = vadd.f32 %v942_v59, %v4824_v40  ;;  %v1444_v19 = vrot.slane %v1414_v58, %v4674_v46 }
 0x1e5   : > { %v1744_v49 = vrot.slane %v1023_v53, 4  ;;  %v935_v51 = vrot.slane %v934_v42, 4  ;;  %v1480_v2 = vmul.f32 %v1440_v47, %v1085_v38  ;;  %3478 = vmatprep.mubr.f32.mxu1 %v1479_v7 }
 0x1e6   : > { %v2869_v27 = vrot.slane %v1024_v48, 4  ;;  %v944_v61 = vrot.slane %v943_v1, 4 }
 0x1e7   : > { %v1745_v31 = vsel %vm1268_vm4, %v1744_v49, %v1743_v5  ;;  %v936_v39 = vadd.f32 %v935_v51, %v934_v42  ;;  %3479 = vmatmul.mubr.f32.gmra.mrb[26].mxu1 %v1480_v2 }
 0x1e8   : > { %v945_v52 = vadd.f32 %v944_v61, %v943_v1  ;;  %v803_v24 = vpop.f32.mrb[48].mxu0  ;;  %v2870_v8 = vsel %vm1268_vm4, %v2869_v27, %v2868_v43 }
 0x1e9   : > { %v937_v28 = vrot.slane %v936_v39, 2  ;;  %v1087_v14 = vadd.f32 %v4683_v57, %v803_v24  ;;  %v4834_v22 = vpop.f32.mrb[49].mxu0 }
 0x1ea   : > { %5664 = vst [vmem:[#allocation42_spill] sm:$0xff] %v4834_v22  ;;  %v946_v29 = vrot.slane %v945_v52, 2  ;;  %v807_v47 = vpop.f32.mrb[50].mxu0 }
 0x1eb   : > { %v938_v32 = vadd.f32 %v937_v28, %v936_v39  ;;  %v1481_v10 = vmul.f32 %v1444_v19, %v1087_v14  ;;  %v950_v59 = vadd.f32 %v807_v47, %v803_v24  ;;  %v1089_v5 = vadd.f32 %v4681_v62, %v807_v47  ;;  %v4837_v56 = vpop.f32.mrb[51].mxu0 }
 0x1ec   : > { %5665 = vst [vmem:[#allocation43_spill] sm:$0xff] %v4837_v56  ;;  %v947_v53 = vadd.f32 %v946_v29, %v945_v52  ;;  %v959_v43 = vadd.f32 %v4837_v56, %v4834_v22 }
 0x1ed   : > { %v939_v7 = vrot.slane %v938_v32, 1  ;;  %v1482_v42 = vmul.f32 %v1444_v19, %v1089_v5  ;;  %3481 = vmatprep.mubr.f32.mxu1 %v1481_v10 }
 0x1ee   : > { %v948_v38 = vrot.slane %v947_v53, 1 }
 0x1ef   : > { %v940_v48 = vadd.f32 %v939_v7, %v938_v32  ;;  %3482 = vmatmul.mubr.f32.gmra.mrb[28].mxu1 %v1482_v42 }
 0x1f0   : > { %v949_v1 = vadd.f32 %v948_v38, %v947_v53  ;;  %v813_v58 = vpop.f32.mrb[52].mxu0 }
 0x1f1   : > { %v997_v49 = vmul.f32 0.03125, %v940_v48  ;;  %v951_v51 = vadd.f32 %v950_v59, %v813_v58  ;;  %v1091_v2 = vadd.f32 %v4690_v6, %v813_v58  ;;  %v4842_v27 = vpop.f32.mrb[53].mxu0  ;;  %v1416_v59 = vcombine.high %v4804_v30, %v4804_v30 }
 0x1f2   : > { %5666 = vst [vmem:[#allocation44_spill] sm:$0xff] %v4842_v27  ;;  %v998_v61 = vmul.f32 0.03125, %v949_v1  ;;  %v960_v39 = vadd.f32 %v959_v43, %v4842_v27  ;;  %v817_v52 = vpop.f32.mrb[54].mxu0 }
 0x1f3   : > { %v1025_v24 = vadd.f32 %v4724_v63, %v997_v49  ;;  %v1483_v28 = vmul.f32 %v1444_v19, %v1091_v2  ;;  %v952_v14 = vadd.f32 %v951_v51, %v817_v52  ;;  %v1093_v29 = vadd.f32 %v4694_v13, %v817_v52  ;;  %v4847_v47 = vpop.f32.mrb[55].mxu0 }
 0x1f4   : > { %5667 = vst [vmem:[#allocation45_spill] sm:$0xff] %v4847_v47  ;;  %v1026_v32 = vadd.f32 %v4625_v41, %v998_v61  ;;  %v961_v10 = vadd.f32 %v960_v39, %v4847_v47  ;;  %v1448_v61 = vrot.slane %v1416_v59, %v4674_v46 }
 0x1f5   : > { %v1746_v5 = vrot.slane %v1025_v24, 3  ;;  %v953_v53 = vrot.slane %v952_v14, 4  ;;  %v1484_v7 = vmul.f32 %v1444_v19, %v1093_v29  ;;  %3484 = vmatprep.mubr.f32.mxu1 %v1483_v28 }
 0x1f6   : > { %v962_v43 = vrot.slane %v961_v10, 4  ;;  %v2871_v42 = vrot.slane %v1026_v32, 3 }
 0x1f7   : > { %v1747_v38 = vsel %vm1270_vm5, %v1746_v5, %v1745_v31  ;;  %v954_v48 = vadd.f32 %v953_v53, %v952_v14  ;;  %3485 = vmatmul.mubr.f32.gmra.mrb[30].mxu1 %v1484_v7 }
 0x1f8   : > { %v963_v1 = vadd.f32 %v962_v43, %v961_v10  ;;  %v823_v58 = vpop.f32.mrb[56].mxu0  ;;  %v2872_v49 = vsel %vm1270_vm5, %v2871_v42, %v2870_v8 }
 0x1f9   : > { %v955_v51 = vrot.slane %v954_v48, 2  ;;  %v1095_v2 = vadd.f32 %v4683_v57, %v823_v58  ;;  %v4857_v30 = vpop.f32.mrb[57].mxu0 }
 0x1fa   : > { %5668 = vst [vmem:[#allocation46_spill] sm:$0xff] %v4857_v30  ;;  %v964_v39 = vrot.slane %v963_v1, 2  ;;  %v827_v19 = vpop.f32.mrb[58].mxu0 }
 0x1fb   : > { %v956_v52 = vadd.f32 %v955_v51, %v954_v48  ;;  %v1485_v24 = vmul.f32 %v1448_v61, %v1095_v2  ;;  %v968_v28 = vadd.f32 %v827_v19, %v823_v58  ;;  %v1097_v31 = vadd.f32 %v4681_v62, %v827_v19  ;;  %v4860_v14 = vpop.f32.mrb[59].mxu0 }
 0x1fc   : > { %5669 = vst [vmem:[#allocation47_spill] sm:$0xff] %v4860_v14  ;;  %v965_v29 = vadd.f32 %v964_v39, %v963_v1  ;;  %v977_v8 = vadd.f32 %v4860_v14, %v4857_v30 }
 0x1fd   : > { %v957_v32 = vrot.slane %v956_v52, 1  ;;  %v1486_v10 = vmul.f32 %v1448_v61, %v1097_v31  ;;  %3487 = vmatprep.mubr.f32.mxu1 %v1485_v24 }
 0x1fe   : > { %v966_v57 = vrot.slane %v965_v29, 1 }
 0x1ff   : > { %v958_v59 = vadd.f32 %v957_v32, %v956_v52  ;;  %3488 = vmatmul.mubr.f32.gmra.mrb[32].mxu1 %v1486_v10 }
 0x200   : > { %v967_v5 = vadd.f32 %v966_v57, %v965_v29  ;;  %v833_v53 = vpop.f32.mrb[60].mxu0 }
 0x201   : > { %v999_v7 = vmul.f32 0.03125, %v958_v59  ;;  %v969_v43 = vadd.f32 %v968_v28, %v833_v53  ;;  %v1099_v42 = vadd.f32 %v4690_v6, %v833_v53  ;;  %v4865_v48 = vpop.f32.mrb[61].mxu0 }
 0x202   : > { %5670 = vst [vmem:[#allocation48_spill] sm:$0xff] %v4865_v48  ;;  %v1000_v62 = vmul.f32 0.03125, %v967_v5  ;;  %v978_v1 = vadd.f32 %v977_v8, %v4865_v48  ;;  %v837_v58 = vpop.f32.mrb[62].mxu0 }
 0x203   : > { %v1027_v51 = vadd.f32 %v4724_v63, %v999_v7  ;;  %v1487_v2 = vmul.f32 %v1448_v61, %v1099_v42  ;;  %v970_v39 = vadd.f32 %v969_v43, %v837_v58  ;;  %v1101_v19 = vadd.f32 %v4694_v13, %v837_v58  ;;  %v4870_v52 = vpop.f32.mrb[63].mxu0 }
 0x204   : > { %5671 = vst [vmem:[#allocation49_spill] sm:$0xff] %v4870_v52  ;;  %v979_v24 = vadd.f32 %v978_v1, %v4870_v52  ;;  %v1028_v28 = vadd.f32 %v4625_v41, %v1000_v62 }
 0x205   : > { %v1748_v31 = vrot.slane %v1027_v51, 2  ;;  %v971_v6 = vrot.slane %v970_v39, 4  ;;  %v1488_v29 = vmul.f32 %v1448_v61, %v1101_v19  ;;  %3490 = vmatprep.mubr.f32.mxu1 %v1487_v2 }
 0x206   : > { %v980_v32 = vrot.slane %v979_v24, 4  ;;  %v2873_v10 = vrot.slane %v1028_v28, 2 }
 0x207   : > { %v972_v8 = vadd.f32 %v971_v6, %v970_v39  ;;  %3491 = vmatmul.mubr.f32.gmra.mrb[34].mxu1 %v1488_v29  ;;  %v1749_v57 = vsel %vm1272_vm6, %v1748_v31, %v1747_v38 }
 0x208   : > { %v981_v59 = vadd.f32 %v980_v32, %v979_v24  ;;  %3525 = vmatprep.mubr.msk.f32.mxu1 %vm4085_vm0, %v5568_v0  ;;  %v2874_v13 = vsel %vm1272_vm6, %v2873_v10, %v2872_v49 }
 0x209   : > { %v973_v5 = vrot.slane %v972_v8, 2 }
 0x20a   : > { %v982_v53 = vrot.slane %v981_v59, 2 }
 0x20b   : > { %v974_v7 = vadd.f32 %v973_v5, %v972_v8 }
 0x20c   : > { %v983_v43 = vadd.f32 %v982_v53, %v981_v59 }
 0x20d   : > { %v975_v42 = vrot.slane %v974_v7, 1 }
 0x20e   : > { %v984_v62 = vrot.slane %v983_v43, 1 }
 0x20f   : > { %v976_v61 = vadd.f32 %v975_v42, %v974_v7 }
 0x210   : > { %v985_v1 = vadd.f32 %v984_v62, %v983_v43 }
 0x211   : > { %v1001_v58 = vmul.f32 0.03125, %v976_v61 }
 0x212   : > { %v1002_v51 = vmul.f32 0.03125, %v985_v1 }
 0x213   : > { %v1029_v2 = vadd.f32 %v4724_v63, %v1001_v58 }
 0x214   : > { %v1030_v38 = vadd.f32 %v4625_v41, %v1002_v51 }
 0x215   : > { %v1750_v39 = vrot.slane %v1029_v2, 1 }
 0x216   : > { %v2875_v19 = vrot.slane %v1030_v38, 1 }
 0x217   : > { %v1751_v24 = vsel %vm1274_vm7, %v1750_v39, %v1749_v57 }
 0x218   : > { %v1753_v49 = vmul.f32 %v1751_v24, %v4665_v34  ;;  %v4883_v28 = vsel %vm1274_vm7, %v2875_v19, %v2874_v13 }
 0x219   : > { %5672 = vst [vmem:[#allocation50_spill] sm:$0xff] %v4883_v28 }
 0x21a   : > { %3526 = vmatmul.mubr.f32.vlgmr.msra.gmra.mrb[36].mxu1 %v1753_v49 }
 0x27f   : > { %v4885_v31 = vpop.f32.mrb[4].mxu1 }
 0x280   : > { %v1826_v6 = vsel %vm1824_vm8, %v4885_v31, -inf  ;;  %v4889_v29 = vpop.f32.mrb[5].mxu1 }
 0x281   : > { %v1825_v41 = vsel %vm1824_vm8, %v4889_v29, -inf }
 0x282   : > { %v1827_v63 = vmax.f32 %v1825_v41, %v1826_v6 }
 0x283   : > { %v4893_v32 = vpop.f32.mrb[6].mxu1 }
 0x284   : > { %v4895_v10 = vpop.f32.mrb[7].mxu1  ;;  %v1830_v57 = vsel %vm1824_vm8, %v4893_v32, -inf }
 0x285   : > { %v1828_v34 = vsel %vm1824_vm8, %v4895_v10, -inf }
 0x286   : > { %v1829_v8 = vmax.f32 %v1827_v63, %v1828_v34 }
 0x287   : > { %v4901_v59 = vpop.f32.mrb[8].mxu1 }
 0x288   : > { %v4903_v13 = vmax.f32 %v1829_v8, %v1830_v57  ;;  %v1839_v5 = vsel %vm1824_vm8, %v4901_v59, -inf  ;;  %v4907_v53 = vpop.f32.mrb[9].mxu1 }
 0x289   : > { %v1838_v7 = vsel %vm1824_vm8, %v4907_v53, -inf }
 0x28a   : > { %v1840_v43 = vmax.f32 %v1838_v7, %v1839_v5  ;;  %v1832_v23 = vrot.slane %v4903_v13, 4 }
 0x28b   : > { %v4911_v42 = vpop.f32.mrb[10].mxu1 }
 0x28c   : > { %v4913_v62 = vpop.f32.mrb[11].mxu1  ;;  %v1843_v58 = vsel %vm1824_vm8, %v4911_v42, -inf  ;;  %v1833_v9 = vmax.f32 %v4903_v13, %v1832_v23 }
 0x28d   : > { %v1841_v61 = vsel %vm1824_vm8, %v4913_v62, -inf }
 0x28e   : > { %v1842_v1 = vmax.f32 %v1840_v43, %v1841_v61  ;;  %v1834_v50 = vrot.slane %v1833_v9, 2 }
 0x28f   : > { %v4919_v51 = vpop.f32.mrb[12].mxu1 }
 0x290   : > { %v4921_v2 = vmax.f32 %v1842_v1, %v1843_v58  ;;  %v1852_v38 = vsel %vm1824_vm8, %v4919_v51, -inf  ;;  %v4925_v39 = vpop.f32.mrb[13].mxu1 }
 0x291   : > { %v1851_v19 = vsel %vm1824_vm8, %v4925_v39, -inf }
 0x292   : > { %v1853_v24 = vmax.f32 %v1851_v19, %v1852_v38  ;;  %v1845_v17 = vrot.slane %v4921_v2, 4 }
 0x293   : > { %v4929_v49 = vpop.f32.mrb[14].mxu1 }
 0x294   : > { %v4931_v6 = vpop.f32.mrb[15].mxu1  ;;  %v1856_v34 = vsel %vm1824_vm8, %v4929_v49, -inf  ;;  %v1846_v15 = vmax.f32 %v4921_v2, %v1845_v17 }
 0x295   : > { %v1854_v41 = vsel %vm1824_vm8, %v4931_v6, -inf }
 0x296   : > { %v1855_v63 = vmax.f32 %v1853_v24, %v1854_v41  ;;  %v1847_v23 = vrot.slane %v1846_v15, 2 }
 0x297   : > { %v4937_v8 = vpop.f32.mrb[16].mxu1 }
 0x298   : > { %v4939_v57 = vmax.f32 %v1855_v63, %v1856_v34  ;;  %v1865_v5 = vsel %vm1824_vm8, %v4937_v8, -inf  ;;  %v4943_v7 = vpop.f32.mrb[17].mxu1 }
 0x299   : > { %v1864_v43 = vsel %vm1824_vm8, %v4943_v7, -inf }
 0x29a   : > { %v1866_v61 = vmax.f32 %v1864_v43, %v1865_v5 }
 0x29b   : > { %v4947_v1 = vpop.f32.mrb[18].mxu1 }
 0x29c   : > { %v4949_v58 = vpop.f32.mrb[19].mxu1  ;;  %v1869_v24 = vsel %vm1824_vm8, %v4947_v1, -inf }
 0x29d   : > { %v1867_v38 = vsel %vm1824_vm8, %v4949_v58, -inf }
 0x29e   : > { %v1868_v19 = vmax.f32 %v1866_v61, %v1867_v38 }
 0x2a0   : > { %v1870_v41 = vmax.f32 %v1868_v19, %v1869_v24 }
 0x2a2   : > { %v4955_v63 = vpop.f32.mrb[20].mxu1 }
 0x2a3   : > { %v1878_v34 = vsel %vm1824_vm8, %v4955_v63, -inf  ;;  %v4959_v0 = vpop.f32.mrb[21].mxu1 }
 0x2a4   : > { %v1877_v5 = vsel %vm1824_vm8, %v4959_v0, -inf }
 0x2a5   : > { %v1879_v43 = vmax.f32 %v1877_v5, %v1878_v34 }
 0x2aa   : > { %v4963_v52 = vpop.f32.mrb[22].mxu1 }
 0x2ab   : > { %v4965_v48 = vpop.f32.mrb[23].mxu1  ;;  %v1882_v19 = vsel %vm1824_vm8, %v4963_v52, -inf }
 0x2ac   : > { %v1880_v61 = vsel %vm1824_vm8, %v4965_v48, -inf }
 0x2ad   : > { %v1881_v38 = vmax.f32 %v1879_v43, %v1880_v61  ;;  %v2352_v43 = vld [vmem:[%s5551_s7] sm:$0xf] }
 0x2ae   : > { %3579 = vmatpush3.msk.msra.mxu0 %vm2449_vm9, %v2352_v43  ;;  %3528 = vmatprep.subr.msk.mxu1 %vm2449_vm9, %v2352_v43 }
 0x2af   : > { %v1883_v24 = vmax.f32 %v1881_v38, %v1882_v19  ;;  %3529 = vmatpush3.msk.msra.mxu1 %vm2449_vm9, %v2352_v43  ;;  %v5673_v19 = vmov 0.0  }
 0x2b0   : > { %3583 = vmatprep.subr.bf16.mxu0 %v5673_v19 }
 0x2b1   : > { %v1884_v12 = vrot.slane %v1883_v24, 4 }
 0x2b2   : > { %v4971_v14 = vpop.f32.mrb[24].mxu1 }
 0x2b3   : > { %v1891_v30 = vsel %vm1824_vm8, %v4971_v14, -inf  ;;  %v4975_v47 = vpop.f32.mrb[25].mxu1  ;;  %v1885_v26 = vmax.f32 %v1883_v24, %v1884_v12 }
 0x2b4   : > { %v1890_v34 = vsel %vm1824_vm8, %v4975_v47, -inf }
 0x2b5   : > { %v1892_v5 = vmax.f32 %v1890_v34, %v1891_v30  ;;  %v1886_v28 = vrot.slane %v1885_v26, 2 }
 0x2b7   : > { %v1887_v24 = vmax.f32 %v1885_v26, %v1886_v28 }
 0x2b9   : > { %v1888_v18 = vrot.slane %v1887_v24, 1 }
 0x2ba   : > { %v4979_v27 = vpop.f32.mrb[26].mxu1 }
 0x2bb   : > { %v4981_v56 = vpop.f32.mrb[27].mxu1  ;;  %v1895_v30 = vsel %vm1824_vm8, %v4979_v27, -inf }
 0x2bc   : > { %v1893_v61 = vsel %vm1824_vm8, %v4981_v56, -inf }
 0x2bd   : > { %v1894_v38 = vmax.f32 %v1892_v5, %v1893_v61 }
 0x2bf   : > { %v1896_v34 = vmax.f32 %v1894_v38, %v1895_v30 }
 0x2c2   : > { %v4991_v22 = vpop.f32.mrb[28].mxu1 }
 0x2c3   : > { %v1904_v40 = vsel %vm1824_vm8, %v4991_v22, -inf  ;;  %v4995_v37 = vpop.f32.mrb[29].mxu1 }
 0x2c4   : > { %v1903_v54 = vsel %vm1824_vm8, %v4995_v37, -inf }
 0x2c5   : > { %v1905_v4 = vmax.f32 %v1903_v54, %v1904_v40 }
 0x2ca   : > { %v4999_v35 = vpop.f32.mrb[30].mxu1 }
 0x2cb   : > { %5674 = vst [vmem:[#allocation51_spill] sm:$0xff] %v4999_v35  ;;  %v5001_v5 = vpop.f32.mrb[31].mxu1  ;;  %v1908_v38 = vsel %vm1824_vm8, %v4999_v35, -inf }
 0x2cc   : > { %v1906_v43 = vsel %vm1824_vm8, %v5001_v5, -inf }
 0x2cd   : > { %v1907_v61 = vmax.f32 %v1905_v4, %v1906_v43  ;;  %v1858_v4 = vrot.slane %v4939_v57, 4  ;;  %v1871_v43 = vrot.slane %v1870_v41, 4 }
 0x2cf   : > { %v1909_v30 = vmax.f32 %v1907_v61, %v1908_v38  ;;  %v1897_v61 = vrot.slane %v1896_v34, 4 }
 0x2d1   : > { %v1910_v38 = vrot.slane %v1909_v30, 4  ;;  %v1898_v45 = vmax.f32 %v1896_v34, %v1897_v61 }
 0x2d2   : > { %v5007_v16 = vpop.f32.mrb[32].mxu1 }
 0x2d3   : > { %5675 = vst [vmem:[#allocation52_spill] sm:$0xff] %v5007_v16  ;;  %v1917_v44 = vsel %vm1824_vm8, %v5007_v16, -inf  ;;  %v5011_v33 = vpop.f32.mrb[33].mxu1  ;;  %v1911_v21 = vmax.f32 %v1909_v30, %v1910_v38  ;;  %v1899_v17 = vrot.slane %v1898_v45, 2 }
 0x2d4   : > { %5676 = vst [vmem:[#allocation53_spill] sm:$0xff] %v5011_v33  ;;  %v1916_v54 = vsel %vm1824_vm8, %v5011_v33, -inf }
 0x2d5   : > { %v1918_v40 = vmax.f32 %v1916_v54, %v1917_v44  ;;  %v1859_v44 = vmax.f32 %v4939_v57, %v1858_v4  ;;  %v1872_v54 = vmax.f32 %v1870_v41, %v1871_v43  ;;  %v1912_v2 = vrot.slane %v1911_v21, 2 }
 0x2d6   : > { %v1835_v4 = vmax.f32 %v1833_v9, %v1834_v50  ;;  %v1848_v43 = vmax.f32 %v1846_v15, %v1847_v23  ;;  %v1900_v34 = vmax.f32 %v1898_v45, %v1899_v17  ;;  %v1889_v15 = vmax.f32 %v1887_v24, %v1888_v18 }
 0x2d7   : > { %v1860_v13 = vrot.slane %v1859_v44, 2  ;;  %v1873_v55 = vrot.slane %v1872_v54, 2 }
 0x2d8   : > { %v1836_v61 = vrot.slane %v1835_v4, 1 }
 0x2d9   : > { %v1861_v19 = vmax.f32 %v1859_v44, %v1860_v13  ;;  %v1874_v12 = vmax.f32 %v1872_v54, %v1873_v55 }
 0x2da   : > { %v5018_v36 = vpop.f32.mrb[34].mxu1  ;;  %v1837_v33 = vmax.f32 %v1835_v4, %v1836_v61 }
 0x2db   : > { %5677 = vst [vmem:[#allocation54_spill] sm:$0xff] %v5018_v36  ;;  %v5021_v20 = vpop.f32.mrb[35].mxu1  ;;  %v1921_v60 = vsel %vm1824_vm8, %v5018_v36, -inf  ;;  %v1875_v38 = vrot.slane %v1874_v12, 1  ;;  %v1901_v36 = vrot.slane %v1900_v34, 1 }
 0x2dc   : > { %5678 = vst [vmem:[#allocation55_spill] sm:$0xff] %v5021_v20  ;;  %v1919_v25 = vsel %vm1824_vm8, %v5021_v20, -inf }
 0x2dd   : > { %v1920_v11 = vmax.f32 %v1918_v40, %v1919_v25  ;;  %v1913_v25 = vmax.f32 %v1911_v21, %v1912_v2  ;;  %v1876_v50 = vmax.f32 %v1874_v12, %v1875_v38  ;;  %v1902_v9 = vmax.f32 %v1900_v34, %v1901_v36 }
 0x2df   : > { %v1922_v3 = vmax.f32 %v1920_v11, %v1921_v60  ;;  %v1849_v60 = vrot.slane %v1848_v43, 1  ;;  %v1862_v11 = vrot.slane %v1861_v19, 1  ;;  %v1914_v20 = vrot.slane %v1913_v25, 1 }
 0x2e1   : > { %v1923_v57 = vrot.slane %v1922_v3, 4  ;;  %v1850_v35 = vmax.f32 %v1848_v43, %v1849_v60  ;;  %v1915_v55 = vmax.f32 %v1913_v25, %v1914_v20 }
 0x2e3   : > { %v1924_v41 = vmax.f32 %v1922_v3, %v1923_v57  ;;  %v1863_v3 = vmax.f32 %v1861_v19, %v1862_v11 }
 0x2e5   : > { %v1925_v30 = vrot.slane %v1924_v41, 2 }
 0x2e7   : > { %v1926_v40 = vmax.f32 %v1924_v41, %v1925_v30 }
 0x2e9   : > { %v1927_v16 = vrot.slane %v1926_v40, 1 }
 0x2eb   : > { %v1928_v26 = vmax.f32 %v1926_v40, %v1927_v16 }
 0x2ed   : > { %v5029_v45 = vpop.f32.mrb[36].mxu1 }
 0x2ee   : > { %v1930_v21 = vrot.slane %v5029_v45, 1  ;;  %v1931_v28 = vrot.slane %v5029_v45, 2  ;;  %v1932_v44 = vrot.slane %v5029_v45, 3  ;;  %v1933_v54 = vrot.slane %v5029_v45, 4  ;;  %v3527_v23 = vpop.f32.mrb[37].mxu1 }
 0x2ef   : > { %v1934_v13 = vrot.slane %v5029_v45, 5  ;;  %v1935_v19 = vrot.slane %v5029_v45, 6  ;;  %v1936_v18 = vrot.slane %v5029_v45, 7  ;;  %v5039_v20 = vmax.f32 %v1837_v33, %v5029_v45 }
 0x2f0   : > { %v5041_v36 = vmax.f32 %v1850_v35, %v1930_v21  ;;  %v5043_v16 = vmax.f32 %v1863_v3, %v1931_v28  ;;  %v5045_v17 = vmax.f32 %v1876_v50, %v1932_v44  ;;  %v5047_v2 = vmax.f32 %v1889_v15, %v1933_v54 }
 0x2f1   : > { %v5049_v57 = vmax.f32 %v1902_v9, %v1934_v13  ;;  %v5051_v41 = vmax.f32 %v1915_v55, %v1935_v19  ;;  %v5053_v4 = vmax.f32 %v1928_v26, %v1936_v18  ;;  %v1956_v43 = vrot.slane %v5039_v20, %v4674_v46 }
 0x2f2   : > { %v1960_v33 = vrot.slane %v5041_v36, %v4674_v46  ;;  %v1964_v35 = vrot.slane %v5043_v16, %v4674_v46  ;;  %v1968_v12 = vrot.slane %v5045_v17, %v4674_v46  ;;  %v5065_v24 = vrot.slane %v5047_v2, %v4674_v46 }
 0x2f3   : > { %v5069_v34 = vrot.slane %v5049_v57, %v4674_v46  ;;  %v5073_v25 = vrot.slane %v5051_v41, %v4674_v46  ;;  %v5077_v30 = vrot.slane %v5053_v4, %v4674_v46  ;;  %v1985_v40 = vsub.f32 %v4889_v29, %v1956_v43 }
 0x2f4   : > { %v1986_v61 = vsub.f32 %v4885_v31, %v1956_v43  ;;  %v1987_v60 = vsub.f32 %v4895_v10, %v1956_v43  ;;  %v1988_v11 = vsub.f32 %v4893_v32, %v1956_v43  ;;  %v1989_v38 = vsub.f32 %v4907_v53, %v1960_v33 }
 0x2f5   : > { %v1990_v3 = vsub.f32 %v4901_v59, %v1960_v33  ;;  %v1991_v50 = vsub.f32 %v4913_v62, %v1960_v33  ;;  %v1992_v15 = vsub.f32 %v4911_v42, %v1960_v33  ;;  %v1993_v9 = vsub.f32 %v4925_v39, %v1964_v35 }
 0x2f6   : > { %v1994_v55 = vsub.f32 %v4919_v51, %v1964_v35  ;;  %v1995_v29 = vsub.f32 %v4931_v6, %v1964_v35  ;;  %v1996_v31 = vsub.f32 %v4929_v49, %v1964_v35  ;;  %v1997_v10 = vsub.f32 %v4943_v7, %v1968_v12 }
 0x2f7   : > { %v1998_v32 = vsub.f32 %v4937_v8, %v1968_v12  ;;  %v1999_v53 = vsub.f32 %v4949_v58, %v1968_v12  ;;  %v2000_v59 = vsub.f32 %v4947_v1, %v1968_v12  ;;  %v2001_v62 = vsub.f32 %v4959_v0, %v5065_v24 }
 0x2f8   : > { %v2002_v42 = vsub.f32 %v4955_v63, %v5065_v24  ;;  %v2003_v51 = vsub.f32 %v4965_v48, %v5065_v24  ;;  %v2004_v39 = vsub.f32 %v4963_v52, %v5065_v24  ;;  %v2005_v49 = vsub.f32 %v4975_v47, %v5069_v34  ;;  %v5679_v47 = vld [vmem:[#allocation51_spill] sm:$0xff] }
 0x2f9   : > { %v2006_v6 = vsub.f32 %v4971_v14, %v5069_v34  ;;  %v2007_v8 = vsub.f32 %v4981_v56, %v5069_v34  ;;  %v2008_v0 = vsub.f32 %v4979_v27, %v5069_v34  ;;  %v2009_v7 = vsub.f32 %v4995_v37, %v5073_v25  ;;  %v5680_v14 = vld [vmem:[#allocation53_spill] sm:$0xff]  ;;  %v5681_v56 = vld [vmem:[#allocation52_spill] sm:$0xff]  ;;  %v5682_v27 = vld [vmem:[#allocation55_spill] sm:$0xff] }
 0x2fa   : > { %v2010_v48 = vsub.f32 %v4991_v22, %v5073_v25  ;;  %v2011_v52 = vsub.f32 %v5001_v5, %v5073_v25  ;;  %v2012_v1 = vsub.f32 %v5679_v47, %v5073_v25  ;;  %v2013_v58 = vsub.f32 %v5680_v14, %v5077_v30  ;;  %v5683_v37 = vld [vmem:[#allocation54_spill] sm:$0xff] }
 0x2fb   : > { %v2014_v63 = vsub.f32 %v5681_v56, %v5077_v30  ;;  %v2015_v26 = vsub.f32 %v5682_v27, %v5077_v30  ;;  %v2016_v21 = vsub.f32 %v5683_v37, %v5077_v30  ;;  %v2017_v28 = vmul.f32 1.442695, %v1985_v40 }
 0x2fc   : > { %v2019_v22 = vmul.f32 1.442695, %v1986_v61  ;;  %v2021_v44 = vmul.f32 1.442695, %v1987_v60  ;;  %v2023_v54 = vmul.f32 1.442695, %v1988_v11 }
 0x2fd   : > { %3817 = vpow2.f32 %v2017_v28  ;;  %v2025_v5 = vmul.f32 1.442695, %v1989_v38  ;;  %v2027_v23 = vmul.f32 1.442695, %v1990_v3  ;;  %v2029_v13 = vmul.f32 1.442695, %v1991_v50 }
 0x2fe   : > { %3819 = vpow2.f32 %v2019_v22  ;;  %v2031_v19 = vmul.f32 1.442695, %v1992_v15  ;;  %v2033_v18 = vmul.f32 1.442695, %v1993_v9  ;;  %v2035_v43 = vmul.f32 1.442695, %v1994_v55 }
 0x2ff   : > { %3821 = vpow2.f32 %v2021_v44  ;;  %v2037_v33 = vmul.f32 1.442695, %v1995_v29  ;;  %v2039_v35 = vmul.f32 1.442695, %v1996_v31  ;;  %v2041_v12 = vmul.f32 1.442695, %v1997_v10 }
 0x300   : > { %3823 = vpow2.f32 %v2023_v54  ;;  %v2043_v24 = vmul.f32 1.442695, %v1998_v32  ;;  %v2045_v34 = vmul.f32 1.442695, %v1999_v53  ;;  %v2047_v40 = vmul.f32 1.442695, %v2000_v59 }
 0x301   : > { %3825 = vpow2.f32 %v2025_v5  ;;  %v2049_v61 = vmul.f32 1.442695, %v2001_v62  ;;  %v2051_v60 = vmul.f32 1.442695, %v2002_v42  ;;  %v2053_v11 = vmul.f32 1.442695, %v2003_v51 }
 0x302   : > { %3827 = vpow2.f32 %v2027_v23  ;;  %v2055_v38 = vmul.f32 1.442695, %v2004_v39  ;;  %v2057_v3 = vmul.f32 1.442695, %v2005_v49  ;;  %v2059_v50 = vmul.f32 1.442695, %v2006_v6 }
 0x303   : > { %3829 = vpow2.f32 %v2029_v13  ;;  %v5127_v15 = vmul.f32 1.442695, %v2007_v8  ;;  %v5129_v9 = vmul.f32 1.442695, %v2008_v0  ;;  %v5131_v55 = vmul.f32 1.442695, %v2009_v7 }
 0x304   : > { %3831 = vpow2.f32 %v2031_v19  ;;  %v2089_v29 = vrot.slane %v5041_v36, 7  ;;  %v2091_v31 = vrot.slane %v5043_v16, 6  ;;  %v5137_v32 = vmul.f32 1.442695, %v2010_v48 }
 0x305   : > { %3833 = vpow2.f32 %v2033_v18  ;;  %v5139_v53 = vmul.f32 1.442695, %v2011_v52  ;;  %v2093_v59 = vrot.slane %v5045_v17, 5  ;;  %v2095_v51 = vrot.slane %v5047_v2, 4 }
 0x306   : > { %3835 = vpow2.f32 %v2035_v43  ;;  %v2090_v42 = vsel %vm1262_vm1, %v2089_v29, %v5039_v20  ;;  %v2097_v36 = vrot.slane %v5049_v57, 3  ;;  %v2099_v2 = vrot.slane %v5051_v41, 2 }
 0x307   : > { %v5135_v10 = vpop.eup %3817  ;;  %3837 = vpow2.f32 %v2037_v33  ;;  %v2092_v39 = vsel %vm1264_vm2, %v2091_v31, %v2090_v42  ;;  %v2101_v7 = vrot.slane %v5053_v4, 1  ;;  %v2071_v33 = vmul.f32 1.442695, %v2012_v1 }
 0x308   : > { %v5142_v62 = vpop.eup %3819  ;;  %3839 = vpow2.f32 %v2039_v35  ;;  %v2107_v49 = vsel %vm1824_vm8, %v5135_v10, 0.0  ;;  %v2094_v20 = vsel %vm1266_vm3, %v2093_v59, %v2092_v39  ;;  %v2073_v25 = vmul.f32 1.442695, %v2013_v58 }
 0x309   : > { %v5148_v16 = vpop.eup %3821  ;;  %3841 = vpow2.f32 %v2041_v12  ;;  %v2108_v17 = vsel %vm1824_vm8, %v5142_v62, 0.0  ;;  %v2096_v0 = vsel %vm1268_vm4, %v2095_v51, %v2094_v20  ;;  %v2075_v14 = vmul.f32 1.442695, %v2014_v63 }
 0x30a   : > { %v5155_v6 = vpop.eup %3823  ;;  %3843 = vpow2.f32 %v2043_v24  ;;  %v2109_v8 = vadd.f32 %v2108_v17, %v2107_v49  ;;  %v2110_v48 = vsel %vm1824_vm8, %v5148_v16, 0.0  ;;  %v2098_v28 = vsel %vm1270_vm5, %v2097_v36, %v2096_v0 }
 0x30b   : > { %v5159_v57 = vpop.eup %3825  ;;  %3845 = vpow2.f32 %v2045_v34  ;;  %v2100_v54 = vsel %vm1272_vm6, %v2099_v2, %v2098_v28  ;;  %v2112_v4 = vsel %vm1824_vm8, %v5155_v6, 0.0  ;;  %v2077_v58 = vmul.f32 1.442695, %v2015_v26 }
 0x30c   : > { %v5165_v52 = vpop.eup %3827  ;;  %3847 = vpow2.f32 %v2047_v40  ;;  %v2111_v22 = vadd.f32 %v2110_v48, %v2109_v8  ;;  %v2120_v41 = vsel %vm1824_vm8, %v5159_v57, 0.0  ;;  %v5180_v13 = vsel %vm1274_vm7, %v2101_v7, %v2100_v54 }
 0x30d   : > { %v5170_v44 = vpop.eup %3829  ;;  %3849 = vpow2.f32 %v2049_v61  ;;  %v2121_v5 = vsel %vm1824_vm8, %v5165_v52, 0.0  ;;  %v2104_v35 = vsub.f32 %v5029_v45, %v5180_v13 }
 0x30e   : > { %v5177_v23 = vpop.eup %3831  ;;  %3851 = vpow2.f32 %v2051_v60  ;;  %v2113_v19 = vadd.f32 %v2112_v4, %v2111_v22  ;;  %v2122_v18 = vadd.f32 %v2121_v5, %v2120_v41  ;;  %v2123_v12 = vsel %vm1824_vm8, %v5170_v44, 0.0 }
 0x30f   : > { %v5182_v43 = vpop.eup %3833  ;;  %3853 = vpow2.f32 %v2053_v11  ;;  %v2125_v47 = vsel %vm1824_vm8, %v5177_v23, 0.0 }
 0x310   : > { %v5191_v24 = vpop.eup %3835  ;;  %3855 = vpow2.f32 %v2055_v38  ;;  %v2114_v34 = vrot.slane %v2113_v19, 4  ;;  %v2124_v40 = vadd.f32 %v2123_v12, %v2122_v18  ;;  %v2133_v61 = vsel %vm1824_vm8, %v5182_v43, 0.0 }
 0x311   : > { %v5195_v60 = vpop.eup %3837  ;;  %3857 = vpow2.f32 %v2057_v3  ;;  %v2134_v1 = vsel %vm1824_vm8, %v5191_v24, 0.0 }
 0x312   : > { %v5204_v11 = vpop.eup %3839  ;;  %3859 = vpow2.f32 %v2059_v50  ;;  %v2115_v38 = vadd.f32 %v2114_v34, %v2113_v19  ;;  %v2126_v29 = vadd.f32 %v2125_v47, %v2124_v40  ;;  %v2135_v31 = vadd.f32 %v2134_v1, %v2133_v61 }
 0x313   : > { %v5206_v59 = vpop.eup %3841  ;;  %3861 = vpow2.f32 %v5127_v15  ;;  %v2136_v3 = vsel %vm1824_vm8, %v5195_v60, 0.0  ;;  %v2138_v56 = vsel %vm1824_vm8, %v5204_v11, 0.0 }
 0x314   : > { %v5217_v42 = vpop.eup %3843  ;;  %3863 = vpow2.f32 %v5129_v9  ;;  %v2116_v50 = vrot.slane %v2115_v38, 2  ;;  %v2127_v51 = vrot.slane %v2126_v29, 4  ;;  %v2137_v36 = vadd.f32 %v2136_v3, %v2135_v31 }
 0x315   : > { %v5220_v39 = vpop.eup %3845  ;;  %3865 = vpow2.f32 %v5131_v55  ;;  %v2146_v63 = vsel %vm1824_vm8, %v5206_v59, 0.0  ;;  %v2147_v27 = vsel %vm1824_vm8, %v5217_v42, 0.0  ;;  %v2079_v55 = vmul.f32 1.442695, %v2016_v21 }
 0x316   : > { %v5229_v26 = vpop.eup %3847  ;;  %3867 = vpow2.f32 %v5137_v32  ;;  %v2117_v15 = vadd.f32 %v2116_v50, %v2115_v38  ;;  %v2128_v9 = vadd.f32 %v2127_v51, %v2126_v29  ;;  %v2139_v49 = vadd.f32 %v2138_v56, %v2137_v36 }
 0x317   : > { %v5232_v17 = vpop.eup %3849  ;;  %3869 = vpow2.f32 %v5139_v53  ;;  %v2148_v20 = vadd.f32 %v2147_v27, %v2146_v63  ;;  %v2149_v2 = vsel %vm1824_vm8, %v5220_v39, 0.0  ;;  %v2151_v41 = vsel %vm1824_vm8, %v5229_v26, 0.0 }
 0x318   : > { %v5240_v8 = vpop.eup %3851  ;;  %3871 = vpow2.f32 %v2071_v33  ;;  %v2118_v0 = vrot.slane %v2117_v15, 1  ;;  %v2129_v32 = vrot.slane %v2128_v9, 2  ;;  %v2140_v7 = vrot.slane %v2139_v49, 4 }
 0x319   : > { %v5242_v48 = vpop.eup %3853  ;;  %3873 = vpow2.f32 %v2073_v25  ;;  %v2150_v28 = vadd.f32 %v2149_v2, %v2148_v20  ;;  %v2159_v53 = vsel %vm1824_vm8, %v5232_v17, 0.0  ;;  %v2160_v30 = vsel %vm1824_vm8, %v5240_v8, 0.0 }
 0x31a   : > { %v5248_v37 = vpop.eup %3855  ;;  %3875 = vpow2.f32 %v2075_v14  ;;  %v2130_v21 = vadd.f32 %v2129_v32, %v2128_v9  ;;  %v2141_v22 = vadd.f32 %v2140_v7, %v2139_v49  ;;  %v2161_v5 = vadd.f32 %v2160_v30, %v2159_v53 }
 0x31b   : > { %v5252_v54 = vpop.eup %3857  ;;  %3877 = vpow2.f32 %v2077_v58  ;;  %v2152_v4 = vadd.f32 %v2151_v41, %v2150_v28  ;;  %v2162_v12 = vsel %vm1824_vm8, %v5242_v48, 0.0  ;;  %v2119_v40 = vadd.f32 %v2118_v0, %v2117_v15 }
 0x31c   : > { %v5254_v19 = vpop.eup %3859  ;;  %3879 = vpow2.f32 %v2079_v55  ;;  %v2131_v18 = vrot.slane %v2130_v21, 1  ;;  %v2142_v33 = vrot.slane %v2141_v22, 2  ;;  %v2163_v25 = vadd.f32 %v2162_v12, %v2161_v5 }
 0x31d   : > { %v5258_v34 = vpop.eup %3861  ;;  %v2153_v61 = vrot.slane %v2152_v4, 4  ;;  %v2172_v47 = vsel %vm1824_vm8, %v5252_v54, 0.0  ;;  %v2164_v31 = vsel %vm1824_vm8, %v5248_v37, 0.0  ;;  %v2173_v14 = vsel %vm1824_vm8, %v5254_v19, 0.0 }
 0x31e   : > { %v5262_v1 = vpop.eup %3863  ;;  %v2132_v38 = vadd.f32 %v2131_v18, %v2130_v21  ;;  %v2143_v29 = vadd.f32 %v2142_v33, %v2141_v22  ;;  %v2165_v50 = vadd.f32 %v2164_v31, %v2163_v25  ;;  %v2174_v51 = vadd.f32 %v2173_v14, %v2172_v47 }
 0x31f   : > { %v5268_v58 = vpop.eup %3865  ;;  %v2154_v3 = vadd.f32 %v2153_v61, %v2152_v4  ;;  %v2175_v63 = vsel %vm1824_vm8, %v5258_v34, 0.0  ;;  %v2177_v7 = vsel %vm1824_vm8, %v5262_v1, 0.0 }
 0x320   : > { %v5270_v36 = vpop.eup %3867  ;;  %v2144_v56 = vrot.slane %v2143_v29, 1  ;;  %v2185_v27 = vsel %vm1824_vm8, %v5268_v58, 0.0  ;;  %v2219_v15 = vsel %vm1262_vm1, %v2132_v38, %v2119_v40  ;;  %v2166_v55 = vrot.slane %v2165_v50, 4 }
 0x321   : > { %v5277_v9 = vpop.eup %3869  ;;  %v2155_v49 = vrot.slane %v2154_v3, 2  ;;  %v2176_v20 = vadd.f32 %v2175_v63, %v2174_v51  ;;  %v2186_v2 = vsel %vm1824_vm8, %v5270_v36, 0.0 }
 0x322   : > { %v5281_v0 = vpop.eup %3871  ;;  %v2145_v32 = vadd.f32 %v2144_v56, %v2143_v29  ;;  %v2187_v28 = vadd.f32 %v2186_v2, %v2185_v27  ;;  %v2167_v21 = vadd.f32 %v2166_v55, %v2165_v50  ;;  %v2188_v41 = vsel %vm1824_vm8, %v5277_v9, 0.0 }
 0x323   : > { %v5285_v53 = vpop.eup %3873  ;;  %v2156_v30 = vadd.f32 %v2155_v49, %v2154_v3  ;;  %v2178_v22 = vadd.f32 %v2177_v7, %v2176_v20  ;;  %v2190_v18 = vsel %vm1824_vm8, %v5281_v0, 0.0  ;;  %v2105_v2 = vmul.f32 1.442695, %v2104_v35 }
 0x324   : > { %v5289_v4 = vpop.eup %3875  ;;  %v2189_v5 = vadd.f32 %v2188_v41, %v2187_v28  ;;  %v2198_v33 = vsel %vm1824_vm8, %v5285_v53, 0.0  ;;  %v2220_v12 = vsel %vm1264_vm2, %v2145_v32, %v2219_v15  ;;  %v2168_v25 = vrot.slane %v2167_v21, 2 }
 0x325   : > { %v5296_v40 = vpop.eup %3877  ;;  %v2157_v61 = vrot.slane %v2156_v30, 1  ;;  %v2179_v47 = vrot.slane %v2178_v22, 4  ;;  %v2199_v38 = vsel %vm1824_vm8, %v5289_v4, 0.0  ;;  %3881 = vpow2.f32 %v2105_v2 }
 0x326   : > { %v5300_v29 = vpop.eup %3879  ;;  %v2191_v31 = vadd.f32 %v2190_v18, %v2189_v5  ;;  %v2200_v14 = vadd.f32 %v2199_v38, %v2198_v33  ;;  %v2169_v50 = vadd.f32 %v2168_v25, %v2167_v21  ;;  %v2201_v56 = vsel %vm1824_vm8, %v5296_v40, 0.0 }
 0x327   : > { %v2158_v3 = vadd.f32 %v2157_v61, %v2156_v30  ;;  %v2180_v51 = vadd.f32 %v2179_v47, %v2178_v22  ;;  %v2203_v55 = vsel %vm1824_vm8, %v5300_v29, 0.0  ;;  %v5685_v2 = vmov 0.0  }
 0x328   : > { %v2192_v63 = vrot.slane %v2191_v31, 4  ;;  %v2202_v27 = vadd.f32 %v2201_v56, %v2200_v14  ;;  %v2170_v15 = vrot.slane %v2169_v50, 1 }
 0x329   : > { %v2181_v49 = vrot.slane %v2180_v51, 2  ;;  %v2221_v20 = vsel %vm1266_vm3, %v2158_v3, %v2220_v12 }
 0x32a   : > { %v2193_v32 = vadd.f32 %v2192_v63, %v2191_v31  ;;  %v2204_v7 = vadd.f32 %v2203_v55, %v2202_v27  ;;  %v2171_v28 = vadd.f32 %v2170_v15, %v2169_v50  ;;  %v5684_v63 = vld [vmem:[#allocation23_spill] sm:$0xff] }
 0x32b   : > { %v2182_v30 = vadd.f32 %v2181_v49, %v2180_v51 }
 0x32c   : > { %v2194_v21 = vrot.slane %v2193_v32, 2  ;;  %v2205_v22 = vrot.slane %v2204_v7, 4  ;;  %v2222_v5 = vsel %vm1268_vm4, %v2171_v28, %v2221_v20 }
 0x32d   : > { %v2183_v41 = vrot.slane %v2182_v30, 1 }
 0x32e   : > { %v2195_v18 = vadd.f32 %v2194_v21, %v2193_v32  ;;  %v2206_v33 = vadd.f32 %v2205_v22, %v2204_v7 }
 0x32f   : > { %v2184_v61 = vadd.f32 %v2183_v41, %v2182_v30  ;;  %v3882_v14 = vpop.eup %3881 }
 0x330   : > { %v2196_v25 = vrot.slane %v2195_v18, 1  ;;  %v2207_v47 = vrot.slane %v2206_v33, 2 }
 0x331   : > { %v2223_v12 = vsel %vm1270_vm5, %v2184_v61, %v2222_v5 }
 0x332   : > { %v2197_v38 = vadd.f32 %v2196_v25, %v2195_v18  ;;  %v2208_v45 = vadd.f32 %v2207_v47, %v2206_v33 }
 0x334   : > { %v2209_v13 = vrot.slane %v2208_v45, 1  ;;  %v2224_v35 = vsel %vm1272_vm6, %v2197_v38, %v2223_v12 }
 0x336   : > { %v2210_v31 = vadd.f32 %v2209_v13, %v2208_v45 }
 0x338   : > { %v2225_v3 = vsel %vm1274_vm7, %v2210_v31, %v2224_v35 }
 0x339   : > { %v2227_v50 = vadd.f32 %v3882_v14, %v2225_v3 }
 0x33b   : > { %3883 = vrcp.f32 %v2227_v50 }
 0x345   : > { %v3884_v51 = vpop.eup %3883 }
 0x346   : > { %v2351_v56 = vmul.f32 %v3884_v51, %v3882_v14  ;;  %v2237_v27 = vrot.slane %v3884_v51, %v5684_v63  ;;  %v2230_v15 = vcombine.high %v3884_v51, %v3884_v51 }
 0x348   : > { %3581 = vmatmul.mubr.msk.f32.vlgmr.msra.gmra.mrb[64].mxu0 %vm1824_vm8, %v2351_v56  ;;  %v2253_v49 = vrot.slane %v2237_v27, %v5684_v63  ;;  %v2245_v55 = vcombine.high %v2237_v27, %v2237_v27  ;;  %v2244_v20 = vrot.slane %v2230_v15, %v5684_v63 }
 0x349   : > { %3599 = vmatprep.mubr.msk.bf16.mxu0 %vm4085_vm0, %v5685_v2 }
 0x34a   : > { %v2282_v32 = vrot.slane %v2253_v49, %v4674_v46  ;;  %v2267_v7 = vrot.slane %v2245_v55, %v5684_v63  ;;  %v2275_v28 = vcombine.high %v2253_v49, %v2253_v49  ;;  %v2260_v30 = vrot.slane %v2244_v20, %v5684_v63  ;;  %v5405_v49 = vld [vmem:[#allocation7 + $0x18] sm:$0xff]  ;;  %v5407_v55 = vld [vmem:[#allocation7 + $0x8] sm:$0xff] }
 0x34b   : > { %v2246_v21 = vcombine.high %v2244_v20, %v2244_v20  ;;  %v5687_v20 = vld [vmem:[#allocation18_spill] sm:$0xff] }
 0x34c   : > { %v2319_v22 = vmul.f32 %v5135_v10, %v2282_v32  ;;  %v2320_v41 = vmul.f32 %v5142_v62, %v2282_v32  ;;  %v2321_v5 = vmul.f32 %v5148_v16, %v2282_v32  ;;  %v2322_v18 = vmul.f32 %v5155_v6, %v2282_v32 }
 0x34d   : > { %v2286_v33 = vrot.slane %v2267_v7, %v4674_v46  ;;  %v2290_v61 = vrot.slane %v2275_v28, %v4674_v46  ;;  %v2277_v25 = vcombine.high %v2267_v7, %v2267_v7  ;;  %v2298_v47 = vrot.slane %v2260_v30, %v4674_v46  ;;  %v5688_v7 = vld [vmem:[#allocation17_spill] sm:$0xff] }
 0x34e   : > { %3530 = vmatprep.mubr.msk.f32.mxu1 %vm1824_vm8, %v2319_v22  ;;  %v2274_v12 = vrot.slane %v2246_v21, %v5684_v63  ;;  %v2276_v38 = vcombine.high %v2260_v30, %v2260_v30  ;;  %v5686_v63 = vld [vmem:[#allocation50_spill] sm:$0xff]  ;;  %v1042_v32 = vadd.f32 %v5405_v49, %v5687_v20  ;;  %v1040_v28 = vadd.f32 %v5407_v55, %v5688_v7 }
 0x34f   : > { %3531 = vmatmul.mubr.msk.f32.vlgmr.msra.gmra.mrb[38].mxu1 %vm1824_vm8, %v2320_v41  ;;  %v2323_v10 = vmul.f32 %v5159_v57, %v2286_v33  ;;  %v2324_v62 = vmul.f32 %v5165_v52, %v2286_v33  ;;  %v2325_v16 = vmul.f32 %v5170_v44, %v2286_v33  ;;  %v2326_v6 = vmul.f32 %v5177_v23, %v2286_v33  ;;  %v5413_v30 = vld [vmem:[#allocation7 + $0x38] sm:$0xff] }
 0x350   : > { %3533 = vmatprep.mubr.msk.f32.mxu1 %vm1824_vm8, %v2321_v5  ;;  %v2327_v45 = vmul.f32 %v5182_v43, %v2290_v61  ;;  %v2328_v13 = vmul.f32 %v5191_v24, %v2290_v61  ;;  %v2329_v35 = vmul.f32 %v5195_v60, %v2290_v61  ;;  %v2330_v31 = vmul.f32 %v5204_v11, %v2290_v61  ;;  %v5690_v61 = vld [vmem:[#allocation19_spill] sm:$0xff] }
 0x351   : > { %v2294_v14 = vrot.slane %v2277_v25, %v4674_v46  ;;  %v2335_v57 = vmul.f32 %v5232_v17, %v2298_v47  ;;  %v2336_v52 = vmul.f32 %v5240_v8, %v2298_v47  ;;  %v2337_v44 = vmul.f32 %v5242_v48, %v2298_v47 }
 0x352   : > { %v2338_v23 = vmul.f32 %v5248_v37, %v2298_v47  ;;  %v2302_v3 = vrot.slane %v2274_v12, %v4674_v46  ;;  %v2306_v43 = vrot.slane %v2276_v38, %v4674_v46  ;;  %v2278_v50 = vcombine.high %v2274_v12, %v2274_v12 }
 0x353   : > { %3534 = vmatmul.mubr.msk.f32.gmra.mrb[40].mxu1 %vm1824_vm8, %v2322_v18  ;;  %v2331_v24 = vmul.f32 %v5206_v59, %v2294_v14  ;;  %v2332_v60 = vmul.f32 %v5217_v42, %v2294_v14  ;;  %v2333_v11 = vmul.f32 %v5220_v39, %v2294_v14  ;;  %v2334_v17 = vmul.f32 %v5229_v26, %v2294_v14  ;;  %v5689_v18 = vld [vmem:[#allocation20_spill] sm:$0xff] }
 0x354   : > { %3536 = vmatprep.mubr.msk.f32.mxu1 %vm1824_vm8, %v2323_v10  ;;  %v2339_v8 = vmul.f32 %v5252_v54, %v2302_v3  ;;  %v2340_v48 = vmul.f32 %v5254_v19, %v2302_v3  ;;  %v2341_v37 = vmul.f32 %v5258_v34, %v2302_v3  ;;  %v2342_v51 = vmul.f32 %v5262_v1, %v2302_v3 }
 0x355   : > { %v2343_v56 = vmul.f32 %v5268_v58, %v2306_v43  ;;  %v2344_v59 = vmul.f32 %v5270_v36, %v2306_v43  ;;  %v2345_v42 = vmul.f32 %v5277_v9, %v2306_v43  ;;  %v2346_v39 = vmul.f32 %v5281_v0, %v2306_v43  ;;  %v3794_v58 = vld [vmem:[#allocation8 + $0x8] sm:$0xff]   ;;  %v3795_v36 = vld [vmem:[#allocation8 + $0x10] sm:$0xff]   ;;  %v3796_v9 = vld [vmem:[#allocation8 + $0x18] sm:$0xff]  }
 0x356   : > { %v2310_v26 = vrot.slane %v2278_v50, %v4674_v46  ;;  %v3793_v46 = vld [vmem:[#allocation8] sm:$0xff]   ;;  %v1046_v33 = vadd.f32 %v5413_v30, %v5689_v18  ;;  %v5694_v43 = vld [vmem:[#allocation24_spill] sm:$0xff] }
 0x357   : > { %3537 = vmatmul.mubr.msk.f32.gmra.mrb[42].mxu1 %vm1824_vm8, %v2324_v62  ;;  %3584 = vmatpush3.bf16.msra.mxu0 %v3793_v46  ;;  %v3797_v0 = vld [vmem:[#allocation8 + $0x20] sm:$0xff]  }
 0x358   : > { %3539 = vmatprep.mubr.msk.f32.mxu1 %vm1824_vm8, %v2325_v16  ;;  %v2347_v54 = vmul.f32 %v5285_v53, %v2310_v26  ;;  %v2348_v19 = vmul.f32 %v5289_v4, %v2310_v26  ;;  %v2349_v34 = vmul.f32 %v5296_v40, %v2310_v26  ;;  %v2350_v1 = vmul.f32 %v5300_v29, %v2310_v26  ;;  %v3798_v53 = vld [vmem:[#allocation8 + $0x28] sm:$0xff]   ;;  %v3799_v4 = vld [vmem:[#allocation8 + $0x30] sm:$0xff]   ;;  %v3800_v40 = vld [vmem:[#allocation8 + $0x38] sm:$0xff]  }
 0x359   : > { %3585 = vmatprep.subr.bf16.mxu0 %v5685_v2  ;;  %v5691_v16 = vld [vmem:[#allocation22_spill] sm:$0xff] }
 0x35b   : > { %3540 = vmatmul.mubr.msk.f32.gmra.mrb[44].mxu1 %vm1824_vm8, %v2326_v6  ;;  %3586 = vmatpush3.bf16.msra.mxu0 %v3794_v58  ;;  %v1050_v6 = vadd.f32 %v5405_v49, %v5691_v16  ;;  %v5701_v16 = vld [vmem:[#allocation33_spill] sm:$0xff] }
 0x35c   : > { %3542 = vmatprep.mubr.msk.f32.mxu1 %vm1824_vm8, %v2327_v45  ;;  %3587 = vmatprep.subr.bf16.mxu0 %v5685_v2  ;;  %v5692_v45 = vld [vmem:[#allocation21_spill] sm:$0xff] }
 0x35f   : > { %3543 = vmatmul.mubr.msk.f32.gmra.mrb[46].mxu1 %vm1824_vm8, %v2328_v13  ;;  %3588 = vmatpush3.bf16.msra.mxu0 %v3795_v36  ;;  %v1048_v13 = vadd.f32 %v5407_v55, %v5692_v45  ;;  %v5697_v36 = vld [vmem:[#allocation29_spill] sm:$0xff]  ;;  %v5702_v45 = vld [vmem:[#allocation32_spill] sm:$0xff] }
 0x360   : > { %3545 = vmatprep.mubr.msk.f32.mxu1 %vm1824_vm8, %v2329_v35  ;;  %3589 = vmatprep.subr.bf16.mxu0 %v5685_v2 }
 0x363   : > { %3546 = vmatmul.mubr.msk.f32.gmra.mrb[48].mxu1 %vm1824_vm8, %v2330_v31  ;;  %3590 = vmatpush3.bf16.msra.mxu0 %v3796_v9  ;;  %v1062_v9 = vadd.f32 %v5413_v30, %v5697_v36 }
 0x364   : > { %3548 = vmatprep.mubr.msk.f32.mxu1 %vm1824_vm8, %v2331_v24  ;;  %3591 = vmatprep.subr.bf16.mxu0 %v5685_v2 }
 0x367   : > { %3549 = vmatmul.mubr.msk.f32.gmra.mrb[50].mxu1 %vm1824_vm8, %v2332_v60  ;;  %3592 = vmatpush3.bf16.msra.mxu0 %v3797_v0  ;;  %v5698_v0 = vld [vmem:[#allocation28_spill] sm:$0xff] }
 0x368   : > { %3551 = vmatprep.mubr.msk.f32.mxu1 %vm1824_vm8, %v2333_v11  ;;  %3593 = vmatprep.subr.bf16.mxu0 %v5685_v2 }
 0x36b   : > { %3552 = vmatmul.mubr.msk.f32.gmra.mrb[52].mxu1 %vm1824_vm8, %v2334_v17  ;;  %3594 = vmatpush3.bf16.msra.mxu0 %v3798_v53 }
 0x36c   : > { %3554 = vmatprep.mubr.msk.f32.mxu1 %vm1824_vm8, %v2335_v57  ;;  %3595 = vmatprep.subr.bf16.mxu0 %v5685_v2 }
 0x36f   : > { %3555 = vmatmul.mubr.msk.f32.gmra.mrb[54].mxu1 %vm1824_vm8, %v2336_v52  ;;  %3596 = vmatpush3.bf16.msra.mxu0 %v3799_v4 }
 0x370   : > { %3557 = vmatprep.mubr.msk.f32.mxu1 %vm1824_vm8, %v2337_v44  ;;  %3597 = vmatprep.subr.bf16.mxu0 %v5685_v2  ;;  %v5415_v2 = vld [vmem:[#allocation7 + $0x28] sm:$0xff] }
 0x371   : > { %v1044_v25 = vadd.f32 %v5415_v2, %v5690_v61  ;;  %v1052_v50 = vadd.f32 %v5415_v2, %v5694_v43  ;;  %v1060_v53 = vadd.f32 %v5415_v2, %v5698_v0 }
 0x373   : > { %3558 = vmatmul.mubr.msk.f32.gmra.mrb[56].mxu1 %vm1824_vm8, %v2338_v23  ;;  %3598 = vmatpush3.bf16.msra.mxu0 %v3800_v40  ;;  %v5693_v23 = vld [vmem:[#allocation25_spill] sm:$0xff] }
 0x374   : > { %3560 = vmatprep.mubr.msk.f32.mxu1 %vm1824_vm8, %v2339_v8  ;;  %v1054_v3 = vadd.f32 %v5413_v30, %v5693_v23 }
 0x377   : > { %3561 = vmatmul.mubr.msk.f32.gmra.mrb[58].mxu1 %vm1824_vm8, %v2340_v48 }
 0x378   : > { %3563 = vmatprep.mubr.msk.f32.mxu1 %vm1824_vm8, %v2341_v37 }
 0x37b   : > { %3564 = vmatmul.mubr.msk.f32.gmra.mrb[60].mxu1 %vm1824_vm8, %v2342_v51  ;;  %v5695_v51 = vld [vmem:[#allocation27_spill] sm:$0xff] }
 0x37c   : > { %3566 = vmatprep.mubr.msk.f32.mxu1 %vm1824_vm8, %v2343_v56  ;;  %v1058_v56 = vadd.f32 %v5405_v49, %v5695_v51 }
 0x37f   : > { %3567 = vmatmul.mubr.msk.f32.gmra.mrb[62].mxu1 %vm1824_vm8, %v2344_v59  ;;  %v5696_v59 = vld [vmem:[#allocation26_spill] sm:$0xff] }
 0x380   : > { %3569 = vmatprep.mubr.msk.f32.mxu1 %vm1824_vm8, %v2345_v42  ;;  %v1056_v42 = vadd.f32 %v5407_v55, %v5696_v59 }
 0x383   : > { %3570 = vmatmul.mubr.msk.f32.gmra.mrb[64].mxu1 %vm1824_vm8, %v2346_v39 }
 0x384   : > { %3572 = vmatprep.mubr.msk.f32.mxu1 %vm1824_vm8, %v2347_v54 }
 0x387   : > { %3573 = vmatmul.mubr.msk.f32.gmra.mrb[66].mxu1 %vm1824_vm8, %v2348_v19 }
 0x388   : > { %3575 = vmatprep.mubr.msk.f32.mxu1 %vm1824_vm8, %v2349_v34 }
 0x38b   : > { %3576 = vmatmul.mubr.msk.f32.gmra.mrb[68].mxu1 %vm1824_vm8, %v2350_v1 }
 0x41b   : > { %v2747_v29 = vpop.f32.mrb[64].mxu0 }
 0x41c   : > { %v5403_v27 = vmul.f32 %v5686_v63, %v2747_v29  ;;  %v3582_v15 = vpop.f32.mrb[65].mxu0 }
 0x422   : > { %v3532_v21 = vpop.f32.mrb[38].mxu1 }
 0x423   : > { %v2752_v22 = vmul.f32 %v3532_v21, %v1042_v32  ;;  %v2519_v41 = vpop.f32.mrb[39].mxu1  ;;  %v5699_v21 = vld [vmem:[#allocation31_spill] sm:$0xff] }
 0x424   : > { %v2751_v5 = vmul.f32 %v2519_v41, %v1040_v28  ;;  %v5700_v41 = vld [vmem:[#allocation30_spill] sm:$0xff] }
 0x426   : > { %v2783_v47 = vadd.f32 %v2752_v22, %v2751_v5  ;;  %v3535_v12 = vpop.f32.mrb[40].mxu1  ;;  %v1066_v22 = vadd.f32 %v5405_v49, %v5699_v21  ;;  %v1064_v5 = vadd.f32 %v5407_v55, %v5700_v41  ;;  %v5707_v21 = vld [vmem:[#allocation38_spill] sm:$0xff]  ;;  %v5708_v41 = vld [vmem:[#allocation39_spill] sm:$0xff] }
 0x427   : > { %v2754_v38 = vmul.f32 %v3535_v12, %v1046_v33  ;;  %v2529_v10 = vpop.f32.mrb[41].mxu1 }
 0x428   : > { %v2753_v62 = vmul.f32 %v2529_v10, %v1044_v25 }
 0x42a   : > { %v2784_v35 = vadd.f32 %v2783_v47, %v2753_v62  ;;  %v3538_v31 = vpop.f32.mrb[42].mxu1 }
 0x42b   : > { %v2756_v14 = vmul.f32 %v3538_v31, %v1050_v6  ;;  %v2539_v57 = vpop.f32.mrb[43].mxu1  ;;  %v1070_v6 = vadd.f32 %v5413_v30, %v5701_v16 }
 0x42c   : > { %v2785_v52 = vadd.f32 %v2784_v35, %v2754_v38  ;;  %v2755_v44 = vmul.f32 %v2539_v57, %v1048_v13  ;;  %v1068_v13 = vadd.f32 %v5415_v2, %v5702_v45  ;;  %v5709_v45 = vld [vmem:[#allocation40_spill] sm:$0xff] }
 0x42e   : > { %v2786_v24 = vrot.slane %v2785_v52, 4  ;;  %v2792_v60 = vadd.f32 %v2756_v14, %v2755_v44  ;;  %v3541_v11 = vpop.f32.mrb[44].mxu1 }
 0x42f   : > { %v2758_v17 = vmul.f32 %v3541_v11, %v1054_v3  ;;  %v2549_v8 = vpop.f32.mrb[45].mxu1  ;;  %v2880_v3 = vrot.slane %v5403_v27, 1  ;;  %v5704_v11 = vld [vmem:[#allocation34_spill] sm:$0xff] }
 0x430   : > { %v2787_v48 = vadd.f32 %v2786_v24, %v2785_v52  ;;  %v2757_v37 = vmul.f32 %v2549_v8, %v1052_v50  ;;  %v5703_v24 = vld [vmem:[#allocation35_spill] sm:$0xff] }
 0x432   : > { %v2788_v39 = vrot.slane %v2787_v48, 2  ;;  %v2793_v26 = vadd.f32 %v2792_v60, %v2757_v37  ;;  %v3544_v54 = vpop.f32.mrb[46].mxu1  ;;  %v1074_v60 = vadd.f32 %v5405_v49, %v5703_v24 }
 0x433   : > { %v2760_v19 = vmul.f32 %v3544_v54, %v1058_v56  ;;  %v2559_v34 = vpop.f32.mrb[47].mxu1 }
 0x434   : > { %v2789_v1 = vadd.f32 %v2788_v39, %v2787_v48  ;;  %v2794_v46 = vadd.f32 %v2793_v26, %v2758_v17  ;;  %v2759_v58 = vmul.f32 %v2559_v34, %v1056_v42  ;;  %v1072_v17 = vadd.f32 %v5407_v55, %v5704_v11  ;;  %v5705_v34 = vld [vmem:[#allocation36_spill] sm:$0xff] }
 0x436   : > { %v2790_v4 = vrot.slane %v2789_v1, 1  ;;  %v2795_v40 = vrot.slane %v2794_v46, 4  ;;  %v2801_v29 = vadd.f32 %v2760_v19, %v2759_v58  ;;  %v3547_v63 = vpop.f32.mrb[48].mxu1 }
 0x437   : > { %v2762_v15 = vmul.f32 %v3547_v63, %v1062_v9  ;;  %v2569_v20 = vpop.f32.mrb[49].mxu1 }
 0x438   : > { %v2791_v32 = vadd.f32 %v2790_v4, %v2789_v1  ;;  %v2796_v7 = vadd.f32 %v2795_v40, %v2794_v46  ;;  %v2761_v28 = vmul.f32 %v2569_v20, %v1060_v53  ;;  %v1076_v1 = vadd.f32 %v5415_v2, %v5705_v34  ;;  %v5706_v46 = vld [vmem:[#allocation37_spill] sm:$0xff] }
 0x439   : > { %v1078_v58 = vadd.f32 %v5413_v30, %v5706_v46 }
 0x43a   : > { %v2895_v18 = vadd.f32 %v5403_v27, %v2791_v32  ;;  %v2797_v33 = vrot.slane %v2796_v7, 2  ;;  %v2802_v61 = vadd.f32 %v2801_v29, %v2761_v28  ;;  %v3550_v25 = vpop.f32.mrb[50].mxu1  ;;  %v2881_v29 = vrot.slane %v5403_v27, 2 }
 0x43b   : > { %v2764_v47 = vmul.f32 %v3550_v25, %v1066_v22  ;;  %v2579_v12 = vpop.f32.mrb[51].mxu1  ;;  %v1080_v22 = vadd.f32 %v5407_v55, %v5707_v21 }
 0x43c   : > { %v2798_v38 = vadd.f32 %v2797_v33, %v2796_v7  ;;  %v2803_v10 = vadd.f32 %v2802_v61, %v2762_v15  ;;  %v2763_v62 = vmul.f32 %v2579_v12, %v1064_v5  ;;  %v2903_v56 = vpack.c.bf16 %v2895_v18, %v2895_v18 }
 0x43d   : > { %v1082_v5 = vadd.f32 %v5405_v49, %v5708_v41 }
 0x43e   : > { %v2799_v35 = vrot.slane %v2798_v38, 1  ;;  %v2804_v31 = vrot.slane %v2803_v10, 4  ;;  %v2810_v14 = vadd.f32 %v2764_v47, %v2763_v62  ;;  %v3553_v57 = vpop.f32.mrb[52].mxu1  ;;  %v2942_v40 = vunpack.c.l.b16 %v2903_v56 }
 0x43f   : > { %v2766_v52 = vmul.f32 %v3553_v57, %v1070_v6  ;;  %v2589_v44 = vpop.f32.mrb[53].mxu1 }
 0x440   : > { %v2800_v23 = vadd.f32 %v2799_v35, %v2798_v38  ;;  %v2805_v43 = vadd.f32 %v2804_v31, %v2803_v10  ;;  %v2765_v50 = vmul.f32 %v2589_v44, %v1068_v13  ;;  %v1084_v13 = vadd.f32 %v5415_v2, %v5709_v45  ;;  %v5710_v35 = vld [vmem:[#allocation41_spill] sm:$0xff] }
 0x441   : > { %v1086_v31 = vadd.f32 %v5413_v30, %v5710_v35 }
 0x442   : > { %v2896_v8 = vadd.f32 %v2880_v3, %v2800_v23  ;;  %v2806_v48 = vrot.slane %v2805_v43, 2  ;;  %v2811_v37 = vadd.f32 %v2810_v14, %v2765_v50  ;;  %v3556_v51 = vpop.f32.mrb[54].mxu1  ;;  %v2882_v3 = vrot.slane %v5403_v27, 3 }
 0x443   : > { %v2768_v59 = vmul.f32 %v3556_v51, %v1074_v60  ;;  %v2599_v42 = vpop.f32.mrb[55].mxu1 }
 0x444   : > { %v2904_v39 = vpack.c.bf16 %v2896_v8, %v2896_v8  ;;  %v2807_v26 = vadd.f32 %v2806_v48, %v2805_v43  ;;  %v2812_v54 = vadd.f32 %v2811_v37, %v2766_v52  ;;  %v2767_v19 = vmul.f32 %v2599_v42, %v1072_v17  ;;  %v5711_v8 = vld [vmem:[#allocation42_spill] sm:$0xff]  ;;  %v5712_v37 = vld [vmem:[#allocation43_spill] sm:$0xff] }
 0x445   : > { %v1088_v48 = vadd.f32 %v5407_v55, %v5711_v8  ;;  %v1090_v51 = vadd.f32 %v5405_v49, %v5712_v37 }
 0x446   : > { %v2943_v36 = vunpack.c.l.b16 %v2904_v39  ;;  %v2808_v9 = vrot.slane %v2807_v26, 1  ;;  %v2813_v0 = vrot.slane %v2812_v54, 4  ;;  %v2819_v53 = vadd.f32 %v2768_v59, %v2767_v19  ;;  %v3559_v4 = vpop.f32.mrb[56].mxu1 }
 0x447   : > { %v2770_v63 = vmul.f32 %v3559_v4, %v1078_v58  ;;  %v2609_v15 = vpop.f32.mrb[57].mxu1 }
 0x448   : > { %v2950_v20 = vrot.slane %v2943_v36, 7  ;;  %v2809_v32 = vadd.f32 %v2808_v9, %v2807_v26  ;;  %v2814_v7 = vadd.f32 %v2813_v0, %v2812_v54  ;;  %v2769_v28 = vmul.f32 %v2609_v15, %v1076_v1  ;;  %v5713_v36 = vld [vmem:[#allocation44_spill] sm:$0xff]  ;;  %v5714_v0 = vld [vmem:[#allocation45_spill] sm:$0xff] }
 0x449   : > { %v1092_v9 = vadd.f32 %v5415_v2, %v5713_v36 }
 0x44a   : > { %v2951_v18 = vsel %vm1262_vm1, %v2950_v20, %v2942_v40  ;;  %v2897_v33 = vadd.f32 %v2881_v29, %v2809_v32  ;;  %v2815_v61 = vrot.slane %v2814_v7, 2  ;;  %v2820_v25 = vadd.f32 %v2819_v53, %v2769_v28  ;;  %v3562_v47 = vpop.f32.mrb[58].mxu1 }
 0x44b   : > { %v2772_v12 = vmul.f32 %v3562_v47, %v1082_v5  ;;  %v2619_v38 = vpop.f32.mrb[59].mxu1  ;;  %v1094_v53 = vadd.f32 %v5413_v30, %v5714_v0  ;;  %v2883_v20 = vrot.slane %v5403_v27, 4  ;;  %v5715_v5 = vld [vmem:[#allocation46_spill] sm:$0xff] }
 0x44c   : > { %v2905_v10 = vpack.c.bf16 %v2897_v33, %v2897_v33  ;;  %v2816_v62 = vadd.f32 %v2815_v61, %v2814_v7  ;;  %v2821_v16 = vadd.f32 %v2820_v25, %v2770_v63  ;;  %v2771_v6 = vmul.f32 %v2619_v38, %v1080_v22  ;;  %v5716_v33 = vld [vmem:[#allocation47_spill] sm:$0xff] }
 0x44d   : > { %v1098_v61 = vadd.f32 %v5405_v49, %v5716_v33 }
 0x44e   : > { %v2944_v14 = vunpack.c.l.b16 %v2905_v10  ;;  %v2817_v57 = vrot.slane %v2816_v62, 1  ;;  %v2822_v52 = vrot.slane %v2821_v16, 4  ;;  %v2828_v44 = vadd.f32 %v2772_v12, %v2771_v6  ;;  %v3565_v23 = vpop.f32.mrb[60].mxu1 }
 0x44f   : > { %v2774_v43 = vmul.f32 %v3565_v23, %v1086_v31  ;;  %v2629_v50 = vpop.f32.mrb[61].mxu1  ;;  %v5717_v31 = vld [vmem:[#allocation48_spill] sm:$0xff] }
 0x450   : > { %v2952_v24 = vrot.slane %v2944_v14, 6  ;;  %v2818_v60 = vadd.f32 %v2817_v57, %v2816_v62  ;;  %v2823_v11 = vadd.f32 %v2822_v52, %v2821_v16  ;;  %v2773_v17 = vmul.f32 %v2629_v50, %v1084_v13  ;;  %v5718_v57 = vld [vmem:[#allocation49_spill] sm:$0xff] }
 0x451   : > { %v1100_v14 = vadd.f32 %v5415_v2, %v5717_v31 }
 0x452   : > { %v2953_v56 = vsel %vm1264_vm2, %v2952_v24, %v2951_v18  ;;  %v2898_v59 = vadd.f32 %v2882_v3, %v2818_v60  ;;  %v2824_v42 = vrot.slane %v2823_v11, 2  ;;  %v2829_v39 = vadd.f32 %v2828_v44, %v2773_v17  ;;  %v3568_v26 = vpop.f32.mrb[62].mxu1 }
 0x453   : > { %v2776_v54 = vmul.f32 %v3568_v26, %v1090_v51  ;;  %v2639_v19 = vpop.f32.mrb[63].mxu1  ;;  %v1096_v18 = vadd.f32 %v5407_v55, %v5715_v5  ;;  %v1102_v55 = vadd.f32 %v5413_v30, %v5718_v57 }
 0x454   : > { %v2906_v34 = vpack.c.bf16 %v2898_v59, %v2898_v59  ;;  %v2825_v1 = vadd.f32 %v2824_v42, %v2823_v11  ;;  %v2830_v46 = vadd.f32 %v2829_v39, %v2774_v43  ;;  %v2775_v58 = vmul.f32 %v2639_v19, %v1088_v48 }
 0x455   : > { %v2884_v43 = vrot.slane %v5403_v27, 5 }
 0x456   : > { %v2945_v4 = vunpack.c.l.b16 %v2906_v34  ;;  %v2826_v40 = vrot.slane %v2825_v1, 1  ;;  %v2831_v29 = vrot.slane %v2830_v46, 4  ;;  %v2837_v63 = vadd.f32 %v2776_v54, %v2775_v58  ;;  %v3571_v15 = vpop.f32.mrb[64].mxu1 }
 0x457   : > { %v2778_v32 = vmul.f32 %v3571_v15, %v1094_v53  ;;  %v2649_v7 = vpop.f32.mrb[65].mxu1  ;;  %v2885_v34 = vrot.slane %v5403_v27, 6 }
 0x458   : > { %v2954_v28 = vrot.slane %v2945_v4, 5  ;;  %v2827_v21 = vadd.f32 %v2826_v40, %v2825_v1  ;;  %v2832_v22 = vadd.f32 %v2831_v29, %v2830_v46  ;;  %v2777_v41 = vmul.f32 %v2649_v7, %v1092_v9 }
 0x45a   : > { %v2899_v25 = vadd.f32 %v2883_v20, %v2827_v21  ;;  %v2833_v47 = vrot.slane %v2832_v22, 2  ;;  %v2838_v12 = vadd.f32 %v2837_v63, %v2777_v41  ;;  %v3574_v38 = vpop.f32.mrb[66].mxu1  ;;  %v2955_v10 = vsel %vm1266_vm3, %v2954_v28, %v2953_v56  ;;  %v3260_v41 = vld [vmem:[%s5719_s19] ss:$0 sm:$0xff] }
 0x45b   : > { %v2780_v62 = vmul.f32 %v3574_v38, %v1098_v61  ;;  %v2659_v16 = vpop.f32.mrb[67].mxu1  ;;  %v2886_v63 = vrot.slane %v5403_v27, 7 }
 0x45c   : > { %v2907_v6 = vpack.c.bf16 %v2899_v25, %v2899_v25  ;;  %v2834_v45 = vadd.f32 %v2833_v47, %v2832_v22  ;;  %v2839_v13 = vadd.f32 %v2838_v12, %v2778_v32  ;;  %v2779_v35 = vmul.f32 %v2659_v16, %v1096_v18 }
 0x45e   : > { %v2946_v52 = vunpack.c.l.b16 %v2907_v6  ;;  %v2835_v49 = vrot.slane %v2834_v45, 1  ;;  %v2840_v44 = vrot.slane %v2839_v13, 4  ;;  %v2846_v23 = vadd.f32 %v2780_v62, %v2779_v35  ;;  %v3577_v3 = vpop.f32.mrb[68].mxu1 }
 0x45f   : > { %v2782_v50 = vmul.f32 %v3577_v3, %v1102_v55  ;;  %v2669_v24 = vpop.f32.mrb[69].mxu1 }
 0x460   : > { %v2956_v60 = vrot.slane %v2946_v52, 4  ;;  %v2836_v11 = vadd.f32 %v2835_v49, %v2834_v45  ;;  %v2841_v17 = vadd.f32 %v2840_v44, %v2839_v13  ;;  %v2781_v8 = vmul.f32 %v2669_v24, %v1100_v14 }
 0x462   : > { %v2900_v48 = vadd.f32 %v2884_v43, %v2836_v11  ;;  %v2842_v37 = vrot.slane %v2841_v17, 2  ;;  %v2847_v51 = vadd.f32 %v2846_v23, %v2781_v8  ;;  %v2957_v2 = vsel %vm1268_vm4, %v2956_v60, %v2955_v10 }
 0x464   : > { %v2908_v56 = vpack.c.bf16 %v2900_v48, %v2900_v48  ;;  %v2843_v30 = vadd.f32 %v2842_v37, %v2841_v17  ;;  %v2848_v59 = vadd.f32 %v2847_v51, %v2782_v50 }
 0x466   : > { %v2947_v42 = vunpack.c.l.b16 %v2908_v56  ;;  %v2844_v39 = vrot.slane %v2843_v30, 1  ;;  %v2849_v26 = vrot.slane %v2848_v59, 4 }
 0x468   : > { %v2958_v54 = vrot.slane %v2947_v42, 3  ;;  %v2845_v19 = vadd.f32 %v2844_v39, %v2843_v30  ;;  %v2850_v1 = vadd.f32 %v2849_v26, %v2848_v59 }
 0x46a   : > { %v2901_v46 = vadd.f32 %v2885_v34, %v2845_v19  ;;  %v2851_v58 = vrot.slane %v2850_v1, 2  ;;  %v2959_v36 = vsel %vm1270_vm5, %v2958_v54, %v2957_v2 }
 0x46c   : > { %v2909_v9 = vpack.c.bf16 %v2901_v46, %v2901_v46  ;;  %v2852_v0 = vadd.f32 %v2851_v58, %v2850_v1 }
 0x46e   : > { %v2948_v53 = vunpack.c.l.b16 %v2909_v9  ;;  %v2853_v4 = vrot.slane %v2852_v0, 1 }
 0x470   : > { %v2960_v40 = vrot.slane %v2948_v53, 2  ;;  %v2854_v29 = vadd.f32 %v2853_v4, %v2852_v0 }
 0x472   : > { %v2902_v15 = vadd.f32 %v2886_v63, %v2854_v29  ;;  %v2961_v20 = vsel %vm1272_vm6, %v2960_v40, %v2959_v36 }
 0x474   : > { %v2910_v32 = vpack.c.bf16 %v2902_v15, %v2902_v15 }
 0x476   : > { %v2949_v7 = vunpack.c.l.b16 %v2910_v32 }
 0x478   : > { %v2962_v28 = vrot.slane %v2949_v7, 1 }
 0x47a   : > { %v2963_v21 = vsel %vm1274_vm7, %v2962_v28, %v2961_v20 }
 0x47b   : > { %v2964_v22 = vpack.c.b16 %v2963_v21, %v2963_v21 }
 0x47d   : > { %3600 = vmatmul.mubr.bf16.vlgmr.msra.gmra.mrb[68].mxu0 %v2964_v22 }
 0x550   : > { %v3048_v27 = vpop.f32.mrb[68].mxu0 }
 0x551   : > { %v3049_v5 = vadd.f32 %v3260_v41, %v3048_v27  ;;  %v3601_v18 = vpop.f32.mrb[69].mxu0 }
 0x552   : > { %v3051_v33 = vpop.f32.mrb[70].mxu0 }
 0x553   : > { %3054 = vst [vmem:[%s422_s25] sm:$0xff] %v3049_v5  ;;  %v3602_v61 = vpop.f32.mrb[71].mxu0 }
 0x554   : > { %4012 = shalt.err (!%p4009_p4)
}
 0x555   : > { %s4013_s12 = scalar_lea.hbm %s5500_s1, 128  ;;  %s4017_s22 = scalar_lea.hbm %s5720_s26, 256 }
 0x556   : > { %p4014_p9 = scmp.ne.s32.totalorder %s5500_s1, %s4013_s12  ;;  %p4018_p8 = scmp.lt.u32.totalorder %s5500_s1, %s5720_s26 }
 0x557   : > { %p4019_p13 = scmp.lt.u32.totalorder %s4017_s22, %s4013_s12  ;;  %p4021_p10 = scmp.lt.u32.totalorder %s4013_s12, %s5500_s1 }
 0x558   : > { %p4015_p0 = pnand %p4014_p9, %p4292_p5 }
 0x559   : > { %p4020_p6 = por %p4019_p13, %p4018_p8 }
 0x55a   : > { %p4016_p11 = pneg %p4015_p0 }
 0x55b   : > { %p4022_p3 = por %p4021_p10, %p4020_p6 }
 0x55d   : > { %p4023_p7 = pnand %p4022_p3, %p4016_p11 }
 0x55f   : > { %4026 = shalt.err (!%p4023_p7)
}
 0x560   : > { %3673 = dma.vmem_to_hbm [thread:$0]  (%p4292_p5), %s5502_s27, 128, %s5500_s1, %s3056_s9  }
 0x561 PF: > { %s5721_s25 = sld [smem:[#allocation15_spill]]  ;;  %s5722_s28 = sld [smem:[#allocation16_spill]] }
 0x562   : > { %p5724_p1 = scmp.ge.s32.totalorder %s4073_s16, 2 }
 0x567   : > { %s3081_s11 = sand.u32 1, %s5721_s25   ;;  %p5723_p12 = scmp.ne.s32.totalorder %s5722_s28, 0 }
 0x568   : > { %s3082_s17 = scalar_lea.sflag [#allocation4], %s3081_s11 }
 0x569   : > { %p3690_p2 = pnand %p5724_p1, %p5723_p12 }
 0x56b   : > { %4056 = dma.done.wait (!%p3690_p2), %s3082_s17, 128  }
 0x56c   : > { %4058 = vsyncadd (!%p3690_p2), %s3082_s17, 4294967168  ;;  %p25_p4 = scmp.ge.s32.totalorder %s4257_s18, 4   ;;  %s5725_s13 = smov %s4065_s14 }
 0x56d   : > { %s5726_s14 = smov %s4069_s15  ;;  %s5727_s15 = smov %s4288_s20 }
 0x56e   : > { %s5728_s16 = smov %s4257_s18  ;;  %27 = sbr.rel (!%p25_p4) target bundleno = 11 (0xb), region = 117 }
 0x575   :  { %3087 = vsyncpa [#allocation3], 1 }
 0x576   :  { %3089 = vsyncpa [#allocation3 + $0x1], 1 }
 0x577   :  { %3090 = vsyncpa [#allocation6], 1 }
 0x578   :  { %3091 = vsyncpa [#allocation9], 1 }
 0x579   :  { %3092 = vsyncpa [#allocation4], 1 }
 0x57a   :  { %3094 = vsyncpa [#allocation4 + $0x1], 1 }

// kernel: tpu_custom_call.1
= control target key start
LH: loop header
LB: loop body
LE: loop exit
PB: predicated region body
PF: predicated region fallthrough
CT: control target
= control target key end

     0   :  { %s5544_s0 = inlined_call_operand.hbm [shape: bf16[16,32,128], index: 0, kind: input, shape index: {}]   ;;  %s5545_s1 = inlined_call_operand.hbm [shape: bf16[128,128], index: 1, kind: input, shape index: {}]   ;;  %s5546_s2 = inlined_call_operand.vmem [shape: bf16[128,256], index: 2, kind: input, shape index: {}]   ;;  %s5547_s3 = inlined_call_operand.vmem [shape: f32[1,128], index: 3, kind: input, shape index: {}]   ;;  %s5548_s4 = inlined_call_operand.hbm [shape: f32[32,256], index: 4, kind: input, shape index: {}]   ;;  %s5549_s5 = inlined_call_operand.vmem [shape: f32[1,256], index: 5, kind: input, shape index: {}]   ;;  %s5550_s6 = inlined_call_operand.vmem [shape: f32[128,4], index: 6, kind: input, shape index: {}]   ;;  %s5551_s7 = inlined_call_operand.vmem [shape: f32[4,128], index: 7, kind: input, shape index: {}]   ;;  %s5552_s8 = inlined_call_operand.hbm [shape: bf16[128,128], index: 8, kind: input, shape index: {}]   ;;  %s5553_s9 = inlined_call_operand.vmem [shape: f32[1,128], index: 9, kind: input, shape index: {}]   ;;  %s5554_s10 = inlined_call_operand.hbm [shape: f32[16,128], index: 10, kind: output, shape index: {}]  }
   0x1   :  { %5614 = sst [smem:[#allocation56_spill]] %s5545_s1 }
   0x2   :  { %5615 = sst [smem:[#allocation57_spill]] %s5553_s9 }
   0x3   :  { %5616 = sst [smem:[#allocation58_spill]] %s5554_s10 }
   0x4   :  { %15 = vsyncpa [#allocation3], 0 }
   0x5   :  { %17 = vsyncpa [#allocation3 + $0x1], 0 }
   0x6   :  { %18 = vsyncpa [#allocation6], 0 }
   0x7   :  { %19 = vsyncpa [#allocation9], 0 }
   0x8   :  { %20 = vsyncpa [#allocation4], 0 }
   0x9   :  { %22 = vsyncpa [#allocation4 + $0x1], 0  ;;  %s4144_s13 = smov 0   ;;  %s4146_s14 = smov 0  }
   0xa   :  { %s4148_s15 = smov 0   ;;  %s4150_s16 = smov 0  }
   0xb LB: > { %5617 = sst [smem:[#allocation15_spill]] %s4061_s13  ;;  %s4165_s17 = sadd.s32 4294967295, %s4073_s16   ;;  %s4073_s16 = sphi %s4150_s16, %s5728_s16   ;;  %s4069_s15 = sphi %s4148_s15, %s5727_s15   ;;  %s4065_s14 = sphi %s4146_s14, %s5726_s14   ;;  %s4061_s13 = sphi %s4144_s13, %s5725_s13  }
   0xc   : > { %s3168_s18 = sadd.s32 4294967294, %s4073_s16   ;;  %p48_p0 = scmp.ne.s32.totalorder %s4065_s14, %s4061_s13 }
   0xd   : > { %p5555_p1 = scmp.eq.s32.totalorder %s4165_s17, 0  ;;  %p267_p3 = scmp.eq.s32.totalorder %s3168_s18, 1 }
   0xe   : > { %p3169_p5 = scmp.ge.s32.totalorder %s4073_s16, 1  ;;  %p274_p7 = scmp.lt.s32.totalorder %s4073_s16, 3 }
   0xf   : > { %p4174_p4 = por %p5555_p1, %p48_p0  ;;  %p4179_p6 = por %p267_p3, %p48_p0 }
  0x10   : > { %p4184_p8 = pnand %p3169_p5, %p274_p7  ;;  %s4075_s22 = smov [#allocation5]  }
  0x11   : > { %s5618_s19 = scalar_select %p4174_p4, 1, 0 }
  0x12   : > { %s5619_s20 = scalar_select %p4179_p6, 1, 0 }
  0x13   : > { %s5621_s21 = scalar_select %p4184_p8, 1, 0 }
  0x14   : > { %5620 = sst [smem:[#allocation16_spill]] %s5619_s20  ;;  %s286_s23 = sshll.u32 %s4075_s22, 4  ;;  %s4188_s23 = int_to_ptr.vmem [resolvable:$true] %s286_s23 }
  0x15   : > { %p3675_p9 = pneg %p4184_p8  ;;  %s4076_s25 = smov [#allocation7]  }
  0x16   : > { %s305_s26 = sshll.u32 %s4076_s25, 4  ;;  %s5623_s1 = sld [smem:[#allocation56_spill]]  ;;  %s4199_s26 = int_to_ptr.vmem [resolvable:$true] %s305_s26 }
  0x17   : > { %p4195_p11 = pnand %p3675_p9, %p5555_p1 }
  0x19   : > { %p4209_p13 = pneg %p4195_p11 }
  0x1c   : > { %s3885_s29 = scalar_lea.hbm %s5623_s1, 1024 }
  0x1d   : > { %p3886_p12 = scmp.ne.s32.totalorder %s5623_s1, %s3885_s29  ;;  %p3892_p5 = scmp.lt.u32.totalorder %s3885_s29, %s5623_s1 }
  0x1f   : > { %p3888_p0 = pnand %p4209_p13, %p3886_p12 }
  0x21   : > { %p3889_p3 = pneg %p3888_p0 }
  0x23   : > { %p3894_p7 = pnand %p3892_p5, %p3889_p3 }
  0x25   : > { %3897 = shalt.err (!%p3894_p7)
}
  0x26   : > { %s3898_s25 = scalar_lea.vmem %s4188_s23, 1024  ;;  %p3906_p2 = scmp.lt.s32.totalorder %s4188_s23, %s4188_s23 }
  0x27   : > { %p3899_p9 = scmp.ne.s32.totalorder %s4188_s23, %s3898_s25  ;;  %p3907_p6 = scmp.lt.s32.totalorder %s3898_s25, %s3898_s25 }
  0x29   : > { %p3901_p10 = pnand %p3899_p9, %p4209_p13  ;;  %p3908_p12 = por %p3907_p6, %p3906_p2 }
  0x2b   : > { %p3902_p1 = pneg %p3901_p10 }
  0x2d   : > { %p3909_p0 = pnand %p3908_p12, %p3902_p1 }
  0x2f   : > { %3912 = shalt.err (!%p3909_p0)
}
  0x30   : > { %s5559_s27 = smov 64   ;;  %s5561_s28 = smov 4  }
  0x31   : > { %3678 = dma.hbm_to_vmem [thread:$0]  (!%p4195_p11), %s5623_s1, 1024, %s4188_s23, [#allocation6], %s5559_s27, %s5559_s27, %s5561_s28  }
  0x32   : > { %s3913_s22 = scalar_lea.hbm %s5548_s4, 1024 }
  0x33   : > { %p3914_p1 = scmp.ne.s32.totalorder %s5548_s4, %s3913_s22  ;;  %p3920_p10 = scmp.lt.u32.totalorder %s3913_s22, %s5548_s4 }
  0x35   : > { %p3916_p2 = pnand %p3914_p1, %p4209_p13 }
  0x37   : > { %p3917_p6 = pneg %p3916_p2 }
  0x39   : > { %p3922_p3 = pnand %p3920_p10, %p3917_p6 }
  0x3b   : > { %3925 = shalt.err (!%p3922_p3)
}
  0x3c   : > { %s3926_s23 = scalar_lea.vmem %s4199_s26, 1024  ;;  %p3934_p12 = scmp.lt.s32.totalorder %s4199_s26, %s4199_s26 }
  0x3d   : > { %p3927_p5 = scmp.ne.s32.totalorder %s4199_s26, %s3926_s23  ;;  %p3935_p0 = scmp.lt.s32.totalorder %s3926_s23, %s3926_s23 }
  0x3f   : > { %p3929_p7 = pnand %p3927_p5, %p4209_p13  ;;  %p3936_p1 = por %p3935_p0, %p3934_p12 }
  0x41   : > { %p3930_p9 = pneg %p3929_p7 }
  0x43   : > { %p3937_p2 = pnand %p3936_p1, %p3930_p9 }
  0x45   : > { %3940 = shalt.err (!%p3937_p2)
}
  0x46   : > { %s4079_s20 = smov 256   ;;  %s4080_s10 = smov 16  }
  0x47   : > { %3681 = dma.hbm_to_vmem [thread:$0]  (!%p4195_p11), %s5548_s4, 1024, %s4199_s26, [#allocation6], %s4079_s20, %s4079_s20, %s4080_s10  }
  0x48   : > { %s4081_s30 = smov [#allocation8]   ;;  %s4257_s18 = sadd.s32 1, %s4073_s16  }
  0x49   : > { %s327_s11 = sshll.u32 %s4081_s30, 4  ;;  %s3941_s23 = scalar_lea.hbm %s5552_s8, 1024  ;;  %s328_s11 = int_to_ptr.vmem [resolvable:$true] %s327_s11 }
  0x4a   : > { %p3942_p6 = scmp.ne.s32.totalorder %s5552_s8, %s3941_s23  ;;  %p3948_p5 = scmp.lt.u32.totalorder %s3941_s23, %s5552_s8 }
  0x4c   : > { %p3944_p10 = pnand %p3942_p6, %p4209_p13 }
  0x4e   : > { %p3945_p3 = pneg %p3944_p10 }
  0x50   : > { %p3950_p7 = pnand %p3948_p5, %p3945_p3 }
  0x52   : > { %3953 = shalt.err (!%p3950_p7)
}
  0x53   : > { %s3954_s26 = scalar_lea.vmem %s328_s11, 1024  ;;  %p3962_p1 = scmp.lt.s32.totalorder %s328_s11, %s328_s11 }
  0x54   : > { %p3955_p9 = scmp.ne.s32.totalorder %s328_s11, %s3954_s26  ;;  %p3963_p2 = scmp.lt.s32.totalorder %s3954_s26, %s3954_s26 }
  0x56   : > { %p3957_p12 = pnand %p3955_p9, %p4209_p13  ;;  %p3964_p4 = por %p3963_p2, %p3962_p1 }
  0x58   : > { %p3958_p0 = pneg %p3957_p12 }
  0x5a   : > { %p3965_p8 = pnand %p3964_p4, %p3958_p0 }
  0x5c   : > { %3968 = shalt.err (!%p3965_p8)
}
  0x5d   : > { %s5625_s27 = smov 4   ;;  %s5626_s28 = smov 64  }
  0x5e   : > { %3684 = dma.hbm_to_vmem [thread:$0]  (!%p4195_p11), %s5552_s8, 1024, %s328_s11, [#allocation9], %s5626_s28, %s5626_s28, %s5625_s27  }
  0x5f   : > { %s32_s12 = ssub.s32 %s4073_s16, %s4257_s18  ;;  %s35_s24 = sadd.s32 1, %s4069_s15 }
  0x60   : > { %p33_p4 = scmp.eq.s32.totalorder %s32_s12, 0  ;;  %p42_p8 = scmp.ne.s32.totalorder %s4069_s15, %s4065_s14 }
  0x61   : > { %p43_p13 = scmp.eq.s32.totalorder %s4073_s16, 0  ;;  %p3696_p6 = scmp.lt.s32.totalorder %s4073_s16, 2 }
  0x62   : > { %s4288_s20 = scalar_select %p33_p4, %s4069_s15, %s35_s24  }
  0x63   : > { %p44_p10 = por %p43_p13, %p42_p8  ;;  %p5627_p3 = scmp.eq.s32.totalorder %s4165_s17, 1 }
  0x64   : > { %s344_s13 = sand.u32 1, %s4069_s15   ;;  %s3274_s29 = sshll.u32 %s4073_s16, 11 }
  0x65   : > { %p4292_p5 = por %p5627_p3, %p42_p8  ;;  %s3174_s30 = sshll.u32 %s344_s13, 7 }
  0x66   : > { %s4301_s11 = scalar_lea.hbm %s5544_s0, %s3274_s29  ;;  %s348_s23 = scalar_lea.vmem [#allocation2], %s3174_s30 }
  0x67   : > { %s356_s26 = sshll.u32 %s348_s23, 4  ;;  %p4303_p11 = pnand %p3696_p6, %p44_p10  ;;  %s4307_s26 = int_to_ptr.vmem [resolvable:$true] %s356_s26 }
  0x68   : > { %s4309_s9 = scalar_lea.sflag [#allocation3], %s344_s13  ;;  %s3969_s12 = scalar_lea.hbm %s4301_s11, 2048 }
  0x69   : > { %p3970_p7 = scmp.ne.s32.totalorder %s4301_s11, %s3969_s12  ;;  %p3971_p9 = pneg %p4303_p11 }
  0x6a   : > { %s3974_s30 = scalar_lea.hbm %s5544_s0, 4096  ;;  %p3975_p1 = scmp.lt.u32.totalorder %s4301_s11, %s5544_s0 }
  0x6b   : > { %p3972_p12 = pnand %p3971_p9, %p3970_p7  ;;  %p3976_p2 = scmp.lt.u32.totalorder %s3974_s30, %s3969_s12 }
  0x6c   : > { %p3978_p8 = scmp.lt.u32.totalorder %s3969_s12, %s4301_s11 }
  0x6d   : > { %p3973_p0 = pneg %p3972_p12  ;;  %p3977_p4 = por %p3976_p2, %p3975_p1 }
  0x6f   : > { %p3979_p13 = por %p3978_p8, %p3977_p4 }
  0x71   : > { %p3980_p6 = pnand %p3979_p13, %p3973_p0 }
  0x73   : > { %3983 = shalt.err (!%p3980_p6)
}
  0x74   : > { %s3984_s13 = scalar_lea.vmem %s4307_s26, 2048  ;;  %s4082_s23 = smov [#allocation2]  }
  0x75   : > { %p3985_p10 = scmp.ne.s32.totalorder %s4307_s26, %s3984_s13  ;;  %s3989_s24 = sshll.u32 %s4082_s23, 4  ;;  %s3990_s24 = int_to_ptr.vmem [resolvable:$false] %s3989_s24 }
  0x76   : > { %s3991_s29 = scalar_lea.vmem %s3990_s24, 4096  ;;  %p3992_p12 = scmp.lt.s32.totalorder %s4307_s26, %s3990_s24 }
  0x77   : > { %p3987_p3 = pnand %p3985_p10, %p3971_p9  ;;  %p3993_p1 = scmp.lt.s32.totalorder %s3991_s29, %s3984_s13 }
  0x79   : > { %p3988_p7 = pneg %p3987_p3  ;;  %p3994_p2 = por %p3993_p1, %p3992_p12 }
  0x7b   : > { %p3995_p4 = pnand %p3994_p2, %p3988_p7 }
  0x7d   : > { %3998 = shalt.err (!%p3995_p4)
}
  0x7e   : > { %3688 = dma.hbm_to_vmem [thread:$0]  (!%p4303_p11), %s4301_s11, 2048, %s4307_s26, %s4309_s9, %s5626_s28, %s5626_s28, %s5625_s27  }
  0x7f   : > { %p5630_p9 = scmp.ne.s32.totalorder %s5621_s21, 0 }
  0x81   : > { %368 = sbr.rel (%p5630_p9) target bundleno = 1377 (0x561), region = 60 }
  0x88   : > { %s4343_s12 = sand.u32 1, %s4065_s14   ;;  %p5631_p0 = scmp.ne.s32.totalorder %s5618_s19, 0 }
  0x89   : > { %s3179_s30 = sshll.u32 %s4343_s12, 7  ;;  %s371_s22 = scalar_lea.sflag [#allocation3], %s4343_s12 }
  0x8a   : > { %s4347_s25 = scalar_lea.vmem [#allocation2], %s3179_s30 }
  0x8b   : > { %4044 = dma.done.wait (%p5631_p0), %s371_s22, 2048  }
  0x8c   : > { %4046 = vsyncadd (%p5631_p0), %s371_s22, 4294965248  ;;  %p5632_p11 = scmp.eq.s32.totalorder %s4165_s17, 0 }
  0x8e   : > { %4048 = dma.done.wait (%p5632_p11), [#allocation6], 2048   ;;  %p5633_p8 = pmov %p5632_p11 }
  0x90   : > { %4050 = vsyncadd (%p5633_p8), [#allocation6], 4294965248  ;;  %p5634_p13 = pmov %p5633_p8 }
  0x91   : > { %p5635_p6 = pmov %p5633_p8 }
  0x92   : > { %4052 = dma.done.wait (%p5634_p13), [#allocation9], 1024  }
  0x93   : > { %4054 = vsyncadd (%p5635_p6), [#allocation9], 4294966272  ;;  %v5568_v0 = vmov 0.0   ;;  %v5565_v1 = vmov 0   ;;  %vm4085_vm0 = vmmov 0   ;;  %v3748_v4 = vld [vmem:[#allocation5] sm:$0xff]  }
  0x94   : > { %3393 = vmatprep.subr.bf16.mxu1 %v5568_v0  ;;  %681 = vmatprep.mubr.bf16.mxu0 %v5565_v1  ;;  %v3745_v2 = vld [vmem:[%s5546_s2 + $0x4] ss:$8 sps:$4 sm:$0xff]   ;;  %v3747_v3 = vld [vmem:[%s5546_s2] ss:$8 sps:$4 sm:$0xff]   ;;  %v3749_v5 = vld [vmem:[%s5546_s2 + $0x14] ss:$8 sps:$4 sm:$0xff]  }
  0x95   : > { %3409 = vmatprep.mubr.msk.bf16.mxu1 %vm4085_vm0, %v5568_v0  ;;  %649 = vmatprep.subr.bf16.mxu0 %v3745_v2  ;;  %v3751_v6 = vld [vmem:[%s5546_s2 + $0x10] ss:$8 sps:$4 sm:$0xff]   ;;  %v3752_v7 = vld [vmem:[#allocation5 + $0x8] sm:$0xff]   ;;  %v3757_v11 = vld [vmem:[%s5546_s2 + $0x34] ss:$8 sps:$4 sm:$0xff]   ;;  %vm1262_vm1 = vcmask 1041409  }
  0x96   : > { %650 = vmatpush1.bf16.msra.mxu0 %v3747_v3  ;;  %3394 = vmatpush3.bf16.msra.mxu1 %v3748_v4  ;;  %v3753_v8 = vld [vmem:[%s5546_s2 + $0x24] ss:$8 sps:$4 sm:$0xff]   ;;  %v3755_v9 = vld [vmem:[%s5546_s2 + $0x20] ss:$8 sps:$4 sm:$0xff]   ;;  %v3756_v10 = vld [vmem:[#allocation5 + $0x10] sm:$0xff]   ;;  %vm1264_vm2 = vcmask 1042434  }
  0x97   : > { %651 = vmatprep.subr.bf16.mxu0 %v3749_v5  ;;  %3395 = vmatprep.subr.bf16.mxu1 %v5568_v0  ;;  %v3759_v12 = vld [vmem:[%s5546_s2 + $0x30] ss:$8 sps:$4 sm:$0xff]   ;;  %v3761_v14 = vld [vmem:[%s5546_s2 + $0x44] ss:$8 sps:$4 sm:$0xff]   ;;  %v3763_v15 = vld [vmem:[%s5546_s2 + $0x40] ss:$8 sps:$4 sm:$0xff]  }
  0x98   : > { %v3760_v13 = vld [vmem:[#allocation5 + $0x18] sm:$0xff]   ;;  %v3764_v16 = vld [vmem:[#allocation5 + $0x20] sm:$0xff]   ;;  %v3768_v19 = vld [vmem:[#allocation5 + $0x28] sm:$0xff]   ;;  %vm1266_vm3 = vcmask 1043459   ;;  %vm1268_vm4 = vcmask 1044484   ;;  %vm1270_vm5 = vcmask 1045509  }
  0x99   : > { %v3765_v17 = vld [vmem:[%s5546_s2 + $0x54] ss:$8 sps:$4 sm:$0xff]   ;;  %v3767_v18 = vld [vmem:[%s5546_s2 + $0x50] ss:$8 sps:$4 sm:$0xff]   ;;  %v3769_v20 = vld [vmem:[%s5546_s2 + $0x64] ss:$8 sps:$4 sm:$0xff]  }
  0x9a   : > { %652 = vmatpush1.bf16.msra.mxu0 %v3751_v6  ;;  %3396 = vmatpush3.bf16.msra.mxu1 %v3752_v7  ;;  %v4409_v21 = vld [vmem:[%s4347_s25] sm:$0xff]   ;;  %v4412_v22 = vld [vmem:[%s4347_s25 + $0x8] sm:$0xff]   ;;  %v4417_v25 = vld [vmem:[%s4347_s25 + $0x10] sm:$0xff]   ;;  %vm1272_vm6 = vcmask 1046534   ;;  %vm1274_vm7 = vcmask 1047559   ;;  %vm1824_vm8 = vcmask 31744  }
  0x9b   : > { %653 = vmatprep.subr.bf16.mxu0 %v3753_v8  ;;  %3397 = vmatprep.subr.bf16.mxu1 %v5568_v0  ;;  %v1103_v23 = vunpack.c.l.bf16 %v4409_v21  ;;  %v1104_v24 = vunpack.c.h.bf16 %v4409_v21  ;;  %v4420_v26 = vld [vmem:[%s4347_s25 + $0x18] sm:$0xff]   ;;  %v1105_v27 = vunpack.c.l.bf16 %v4412_v22  ;;  %v1106_v28 = vunpack.c.h.bf16 %v4412_v22  ;;  %v4425_v29 = vld [vmem:[%s4347_s25 + $0x20] sm:$0xff]   ;;  %v4428_v30 = vld [vmem:[%s4347_s25 + $0x28] sm:$0xff]   ;;  %s3183_s29 = sshll.u32 %s4343_s12, 3  ;;  %s5719_s19 = sld [smem:[#allocation57_spill]] }
  0x9c   : > { %v4431_v31 = vld [vmem:[%s4347_s25 + $0x30] sm:$0xff]   ;;  %v1107_v32 = vunpack.c.l.bf16 %v4417_v25  ;;  %v1108_v33 = vunpack.c.h.bf16 %v4417_v25  ;;  %v3771_v34 = vld [vmem:[%s5546_s2 + $0x60] ss:$8 sps:$4 sm:$0xff]   ;;  %v4440_v36 = vld [vmem:[%s4347_s25 + $0x38] sm:$0xff]   ;;  %v1109_v39 = vunpack.c.l.bf16 %v4420_v26  ;;  %v1110_v40 = vunpack.c.h.bf16 %v4420_v26  ;;  %s3270_s21 = sshll.u32 %s4165_s17, 7  ;;  %s5720_s26 = sld [smem:[#allocation58_spill]] }
  0x9d   : > { %v1135_v35 = vadd.f32 %v1104_v24, %v1103_v23  ;;  %v4443_v37 = vld [vmem:[%s4347_s25 + $0x40] sm:$0xff]   ;;  %v4446_v38 = vld [vmem:[%s4347_s25 + $0x48] sm:$0xff]   ;;  %v1111_v41 = vunpack.c.l.bf16 %v4425_v29  ;;  %v3772_v42 = vld [vmem:[#allocation5 + $0x30] sm:$0xff]   ;;  %v1112_v47 = vunpack.c.h.bf16 %v4425_v29  ;;  %v1113_v48 = vunpack.c.l.bf16 %v4428_v30  ;;  %s3056_s9 = scalar_lea.sflag [#allocation4], %s4343_s12  ;;  %s4088_s13 = smov [#allocation10]  }
  0x9e   : > { %654 = vmatpush1.bf16.msra.mxu0 %v3755_v9  ;;  %3398 = vmatpush3.bf16.msra.mxu1 %v3756_v10  ;;  %v3773_v43 = vld [vmem:[%s5546_s2 + $0x74] ss:$8 sps:$4 sm:$0xff]   ;;  %v4461_v46 = vld [vmem:[%s4347_s25 + $0x60] sm:$0xff]   ;;  %v1114_v49 = vunpack.c.h.bf16 %v4428_v30  ;;  %v1115_v50 = vunpack.c.l.bf16 %v4431_v31  ;;  %v4468_v52 = vld [vmem:[%s4347_s25 + $0x68] sm:$0xff]   ;;  %v1116_v55 = vunpack.c.h.bf16 %v4431_v31  ;;  %v1117_v56 = vunpack.c.l.bf16 %v4440_v36  ;;  %s4003_s23 = sshll.u32 %s4088_s13, 4  ;;  %s4004_s23 = int_to_ptr.vmem [resolvable:$false] %s4003_s23 }
  0x9f   : > { %655 = vmatprep.subr.bf16.mxu0 %v3757_v11  ;;  %3399 = vmatprep.subr.bf16.mxu1 %v5568_v0  ;;  %v4455_v44 = vld [vmem:[%s4347_s25 + $0x50] sm:$0xff]   ;;  %v4458_v45 = vld [vmem:[%s4347_s25 + $0x58] sm:$0xff]   ;;  %v1136_v51 = vadd.f32 %v1135_v35, %v1105_v27  ;;  %v1118_v57 = vunpack.c.h.bf16 %v4440_v36  ;;  %v1119_v58 = vunpack.c.l.bf16 %v4443_v37  ;;  %v1120_v59 = vunpack.c.h.bf16 %v4443_v37  ;;  %s4005_s24 = scalar_lea.vmem %s4004_s23, 256 }
  0xa0   : > { %v4471_v53 = vld [vmem:[%s4347_s25 + $0x70] sm:$0xff]   ;;  %v4474_v54 = vld [vmem:[%s4347_s25 + $0x78] sm:$0xff]   ;;  %v1121_v60 = vunpack.c.l.bf16 %v4446_v38  ;;  %v1122_v61 = vunpack.c.h.bf16 %v4446_v38  ;;  %v1123_v2 = vunpack.c.l.bf16 %v4455_v44  ;;  %v1124_v3 = vunpack.c.h.bf16 %v4455_v44  ;;  %s422_s25 = scalar_lea.vmem [#allocation10], %s3183_s29 }
  0xa1   : > { %5636 = vst [vmem:[#allocation17_spill] sm:$0xff] %v4474_v54  ;;  %v3775_v62 = vld [vmem:[%s5546_s2 + $0x70] ss:$8 sps:$4 sm:$0xff]   ;;  %v1137_v63 = vadd.f32 %v1136_v51, %v1106_v28  ;;  %v1125_v4 = vunpack.c.l.bf16 %v4458_v45  ;;  %v1126_v5 = vunpack.c.h.bf16 %v4458_v45  ;;  %v1127_v6 = vunpack.c.l.bf16 %v4461_v46  ;;  %s3069_s27 = sshll.u32 %s422_s25, 4  ;;  %s5502_s27 = int_to_ptr.vmem [resolvable:$true] %s3069_s27 }
  0xa2   : > { %656 = vmatpush1.bf16.msra.mxu0 %v3759_v12  ;;  %3400 = vmatpush3.bf16.msra.mxu1 %v3760_v13  ;;  %v1128_v7 = vunpack.c.h.bf16 %v4461_v46  ;;  %v1129_v8 = vunpack.c.l.bf16 %v4468_v52  ;;  %v3776_v9 = vld [vmem:[#allocation5 + $0x38] sm:$0xff]   ;;  %v1130_v11 = vunpack.c.h.bf16 %v4468_v52  ;;  %v1131_v12 = vunpack.c.l.bf16 %v4471_v53  ;;  %s5500_s1 = scalar_lea.hbm %s5720_s26, %s3270_s21  ;;  %s3999_s17 = scalar_lea.vmem %s5502_s27, 128 }
  0xa3   : > { %657 = vmatprep.subr.bf16.mxu0 %v3761_v14  ;;  %3401 = vmatprep.subr.bf16.mxu1 %v5568_v0  ;;  %v1138_v10 = vrot.slane %v1137_v63, 4  ;;  %v1132_v13 = vunpack.c.h.bf16 %v4471_v53  ;;  %v1133_v14 = vunpack.c.l.bf16 %v4474_v54  ;;  %v1180_v23 = vadd.f32 %v1124_v3, %v1123_v2  ;;  %p4000_p10 = scmp.ne.s32.totalorder %s5502_s27, %s3999_s17  ;;  %p4006_p12 = scmp.lt.s32.totalorder %s5502_s27, %s4004_s23 }
  0xa4   : > { %v1189_v28 = vadd.f32 %v1128_v7, %v1127_v6  ;;  %vm2449_vm9 = vcmask 1043456   ;;  %p4007_p1 = scmp.lt.s32.totalorder %s4005_s24, %s3999_s17 }
  0xa5   : > { %v1181_v51 = vadd.f32 %v1180_v23, %v1125_v4  ;;  %p4001_p3 = pnand %p4000_p10, %p4292_p5 }
  0xa6   : > { %658 = vmatpush1.bf16.msra.mxu0 %v3763_v15  ;;  %3402 = vmatpush3.bf16.msra.mxu1 %v3764_v16  ;;  %v1134_v15 = vunpack.c.h.bf16 %v4474_v54  ;;  %v1144_v16 = vadd.f32 %v1108_v33, %v1107_v32  ;;  %v1190_v32 = vadd.f32 %v1189_v28, %v1129_v8  ;;  %p4008_p2 = por %p4007_p1, %p4006_p12 }
  0xa7   : > { %659 = vmatprep.subr.bf16.mxu0 %v3765_v17  ;;  %3403 = vmatprep.subr.bf16.mxu1 %v5568_v0  ;;  %v1153_v17 = vadd.f32 %v1112_v47, %v1111_v41  ;;  %p4002_p7 = pneg %p4001_p3 }
  0xa8   : > { %v1145_v24 = vadd.f32 %v1144_v16, %v1109_v39 }
  0xa9   : > { %v1154_v27 = vadd.f32 %v1153_v17, %v1113_v48  ;;  %p4009_p4 = pnand %p4008_p2, %p4002_p7 }
  0xaa   : > { %660 = vmatpush1.bf16.msra.mxu0 %v3767_v18  ;;  %3404 = vmatpush3.bf16.msra.mxu1 %v3768_v19  ;;  %v1139_v18 = vadd.f32 %v1138_v10, %v1137_v63  ;;  %v1162_v19 = vadd.f32 %v1116_v55, %v1115_v50  ;;  %v1146_v1 = vadd.f32 %v1145_v24, %v1110_v40  ;;  %v5637_v40 = vmov 0  }
  0xab   : > { %661 = vmatprep.subr.bf16.mxu0 %v3769_v20  ;;  %3405 = vmatprep.subr.bf16.mxu1 %v5568_v0  ;;  %v1171_v20 = vadd.f32 %v1120_v59, %v1119_v58  ;;  %v1155_v54 = vadd.f32 %v1154_v27, %v1114_v49  ;;  %v1182_v50 = vadd.f32 %v1181_v51, %v1126_v5 }
  0xac   : > { %v1140_v35 = vrot.slane %v1139_v18, 2  ;;  %v1147_v39 = vrot.slane %v1146_v1, 4  ;;  %v1191_v55 = vadd.f32 %v1190_v32, %v1130_v11 }
  0xad   : > { %v1156_v48 = vrot.slane %v1155_v54, 4 }
  0xae   : > { %662 = vmatpush1.bf16.msra.mxu0 %v3771_v34  ;;  %3406 = vmatpush3.bf16.msra.mxu1 %v3772_v42  ;;  %v1198_v34 = vadd.f32 %v1132_v13, %v1131_v12  ;;  %v1163_v42 = vadd.f32 %v1162_v19, %v1117_v56  ;;  %v1141_v41 = vadd.f32 %v1140_v35, %v1139_v18  ;;  %v1192_v3 = vrot.slane %v1191_v55, 4 }
  0xaf   : > { %663 = vmatprep.subr.bf16.mxu0 %v3773_v43  ;;  %3407 = vmatprep.subr.bf16.mxu1 %v5568_v0  ;;  %v1172_v43 = vadd.f32 %v1171_v20, %v1121_v60  ;;  %v1148_v49 = vadd.f32 %v1147_v39, %v1146_v1  ;;  %v1157_v2 = vadd.f32 %v1156_v48, %v1155_v54 }
  0xb0   : > { %v1199_v33 = vadd.f32 %v1198_v34, %v1133_v14  ;;  %v1164_v47 = vadd.f32 %v1163_v42, %v1118_v57  ;;  %v1142_v56 = vrot.slane %v1141_v41, 1  ;;  %v1193_v8 = vadd.f32 %v1192_v3, %v1191_v55 }
  0xb1   : > { %v1173_v63 = vadd.f32 %v1172_v43, %v1122_v61  ;;  %v1149_v7 = vrot.slane %v1148_v49, 2 }
  0xb2   : > { %664 = vmatpush1.bf16.msra.mxu0 %v3775_v62  ;;  %3408 = vmatpush3.bf16.msra.mxu1 %v3776_v9  ;;  %v1200_v58 = vadd.f32 %v1199_v33, %v1134_v15  ;;  %v1165_v59 = vrot.slane %v1164_v47, 4  ;;  %v1183_v62 = vrot.slane %v1182_v50, 4  ;;  %v1143_v61 = vadd.f32 %v1142_v56, %v1141_v41 }
  0xb3   : > { %3578 = vmatprep.subr.mxu0 %v5568_v0  ;;  %v1174_v60 = vrot.slane %v1173_v63, 4  ;;  %v1150_v14 = vadd.f32 %v1149_v7, %v1148_v49  ;;  %v1194_v16 = vrot.slane %v1193_v8, 2 }
  0xb4   : > { %v1201_v57 = vrot.slane %v1200_v58, 4  ;;  %v1166_v4 = vadd.f32 %v1165_v59, %v1164_v47  ;;  %v1184_v6 = vadd.f32 %v1183_v62, %v1182_v50  ;;  %v1207_v10 = vmul.f32 0.03125, %v1143_v61 }
  0xb5   : > { %682 = vmatmul.mubr.bf16.vlgmr.msra.gmra.mrb[0].mxu0 %v4409_v21  ;;  %v1175_v5 = vadd.f32 %v1174_v60, %v1173_v63  ;;  %v1158_v21 = vrot.slane %v1157_v2, 2  ;;  %v1151_v19 = vrot.slane %v1150_v14, 1  ;;  %v1195_v23 = vadd.f32 %v1194_v16, %v1193_v8 }
  0xb6   : > { %691 = vmatprep.mubr.bf16.mxu0 %v5637_v40  ;;  %v1202_v9 = vadd.f32 %v1201_v57, %v1200_v58  ;;  %v1167_v11 = vrot.slane %v1166_v4, 2  ;;  %v1185_v13 = vrot.slane %v1184_v6, 2  ;;  %v1215_v27 = vpack.c.bf16 %v1207_v10, %v1207_v10 }
  0xb7   : > { %v1176_v12 = vrot.slane %v1175_v5, 2  ;;  %v1159_v15 = vadd.f32 %v1158_v21, %v1157_v2  ;;  %v1152_v42 = vadd.f32 %v1151_v19, %v1150_v14  ;;  %v1196_v51 = vrot.slane %v1195_v23, 1 }
  0xb8   : > { %v1203_v17 = vrot.slane %v1202_v9, 2  ;;  %v1168_v1 = vadd.f32 %v1167_v11, %v1166_v4  ;;  %v1186_v18 = vadd.f32 %v1185_v13, %v1184_v6  ;;  %v1254_v55 = vunpack.c.l.b16 %v1215_v27  ;;  %v1490_v13 = vld [vmem:[%s5550_s6 + $0x8] sm:$0xff] }
  0xb9   : > { %v1177_v54 = vadd.f32 %v1176_v12, %v1175_v5  ;;  %v1160_v20 = vrot.slane %v1159_v15, 1  ;;  %v1197_v63 = vadd.f32 %v1196_v51, %v1195_v23  ;;  %v1208_v39 = vmul.f32 0.03125, %v1152_v42  ;;  %v1489_v12 = vld [vmem:[%s5550_s6] sm:$0xff]  ;;  %v1494_v27 = vld [vmem:[%s5550_s6 + $0x28] sm:$0xff] }
  0xba   : > { %v1204_v24 = vadd.f32 %v1203_v17, %v1202_v9  ;;  %v1169_v28 = vrot.slane %v1168_v1, 1  ;;  %v1187_v35 = vrot.slane %v1186_v18, 1 }
  0xbb   : > { %v1178_v34 = vrot.slane %v1177_v54, 1  ;;  %v1161_v43 = vadd.f32 %v1160_v20, %v1159_v15  ;;  %v1213_v60 = vmul.f32 0.03125, %v1197_v63  ;;  %v1216_v49 = vpack.c.bf16 %v1208_v39, %v1208_v39 }
  0xbc   : > { %v1205_v32 = vrot.slane %v1204_v24, 1  ;;  %v1170_v33 = vadd.f32 %v1169_v28, %v1168_v1  ;;  %v1188_v47 = vadd.f32 %v1187_v35, %v1186_v18  ;;  %v4518_v1 = vpack.c.bf16 %v1490_v13, %v1489_v12  ;;  %v1492_v18 = vld [vmem:[%s5550_s6 + $0x18] sm:$0xff]  ;;  %v3216_v12 = vld [vmem:[%s5547_s3] ss:$0 sm:$0xff] }
  0xbd   : > { %v1179_v41 = vadd.f32 %v1178_v34, %v1177_v54  ;;  %v1209_v48 = vmul.f32 0.03125, %v1161_v43  ;;  %692 = vmatmul.mubr.bf16.gmra.mrb[4].mxu0 %v4412_v22  ;;  %v1221_v4 = vpack.c.bf16 %v1213_v60, %v1213_v60  ;;  %v1255_v6 = vunpack.c.l.b16 %v1216_v49  ;;  %v1491_v54 = vld [vmem:[%s5550_s6 + $0x10] sm:$0xff]  ;;  %v1496_v35 = vld [vmem:[%s5550_s6 + $0x38] sm:$0xff]  ;;  %v1498_v43 = vld [vmem:[%s5550_s6 + $0x48] sm:$0xff] }
  0xbe   : > { %v1206_v50 = vadd.f32 %v1205_v32, %v1204_v24  ;;  %v1210_v58 = vmul.f32 0.03125, %v1170_v33  ;;  %v1212_v59 = vmul.f32 0.03125, %v1188_v47  ;;  %701 = vmatprep.mubr.bf16.mxu0 %v5637_v40  ;;  %3604 = vmatprep.subr.bf16.mxu1 %v4518_v1  ;;  %v4529_v23 = vpack.c.bf16 %v1492_v18, %v1491_v54  ;;  %v1493_v24 = vld [vmem:[%s5550_s6 + $0x20] sm:$0xff]  ;;  %v1495_v34 = vld [vmem:[%s5550_s6 + $0x30] sm:$0xff] }
  0xbf   : > { %v1211_v56 = vmul.f32 0.03125, %v1179_v41  ;;  %v1217_v2 = vpack.c.bf16 %v1209_v48, %v1209_v48  ;;  %v1263_v22 = vsel %vm1262_vm1, %v1255_v6, %v1254_v55  ;;  %v1260_v10 = vunpack.c.l.b16 %v1221_v4  ;;  %v5638_v33 = vld [vmem:[#allocation17_spill] sm:$0xff] }
  0xc0   : > { %v1214_v62 = vmul.f32 0.03125, %v1206_v50  ;;  %v1218_v3 = vpack.c.bf16 %v1210_v58, %v1210_v58  ;;  %v1220_v61 = vpack.c.bf16 %v1212_v59, %v1212_v59  ;;  %v4540_v28 = vpack.c.bf16 %v1494_v27, %v1493_v24 }
  0xc1   : > { %v1219_v57 = vpack.c.bf16 %v1211_v56, %v1211_v56  ;;  %v1256_v7 = vunpack.c.l.b16 %v1217_v2  ;;  %v4551_v42 = vpack.c.bf16 %v1496_v35, %v1495_v34  ;;  %v4086_v47 = vmov 0.0|0.0  }
  0xc2   : > { %v1222_v5 = vpack.c.bf16 %v1214_v62, %v1214_v62  ;;  %v1257_v21 = vunpack.c.l.b16 %v1218_v3  ;;  %v1259_v9 = vunpack.c.l.b16 %v1220_v61  ;;  %v4087_v4 = vmov 1966171168  }
  0xc3   : > { %v1258_v8 = vunpack.c.l.b16 %v1219_v57  ;;  %v1265_v11 = vsel %vm1264_vm2, %v1256_v7, %v1263_v22 }
  0xc4   : > { %v1261_v14 = vunpack.c.l.b16 %v1222_v5  ;;  %v1267_v15 = vsel %vm1266_vm3, %v1257_v21, %v1265_v11  ;;  %v1370_v5 = vunpack.c.l.s4 %v4087_v4 }
  0xc5   : > { %v1269_v16 = vsel %vm1268_vm4, %v1258_v8, %v1267_v15  ;;  %702 = vmatmul.mubr.bf16.gmra.mrb[8].mxu0 %v4417_v25 }
  0xc6   : > { %v1271_v17 = vsel %vm1270_vm5, %v1259_v9, %v1269_v16  ;;  %711 = vmatprep.mubr.bf16.mxu0 %v5637_v40  ;;  %v1371_v22 = vunpack.c.0.s8 %v1370_v5 }
  0xc7   : > { %v1273_v19 = vsel %vm1272_vm6, %v1260_v10, %v1271_v17 }
  0xc8   : > { %v1275_v20 = vsel %vm1274_vm7, %v1261_v14, %v1273_v19 }
  0xc9   : > { %v1276_v25 = vpack.c.b16 %v1275_v20, %v1275_v20 }
  0xcb   : > { %3410 = vmatmul.mubr.bf16.vlgmr.msra.gmra.mrb[0].mxu1 %v1276_v25 }
  0xcc   : > { %3606 = vmatpush3.bf16.msra.mxu1 %v4518_v1 }
  0xcd   : > { %712 = vmatmul.mubr.bf16.gmra.mrb[12].mxu0 %v4420_v26  ;;  %3608 = vmatprep.subr.bf16.mxu1 %v4529_v23  ;;  %v1497_v26 = vld [vmem:[%s5550_s6 + $0x40] sm:$0xff] }
  0xce   : > { %721 = vmatprep.mubr.bf16.mxu0 %v5637_v40  ;;  %v4562_v51 = vpack.c.bf16 %v1498_v43, %v1497_v26 }
  0xd0   : > { %3610 = vmatpush3.bf16.msra.mxu1 %v4529_v23 }
  0xd1   : > { %3612 = vmatprep.subr.bf16.mxu1 %v4540_v28 }
  0xd4   : > { %3614 = vmatpush3.bf16.msra.mxu1 %v4540_v28 }
  0xd5   : > { %722 = vmatmul.mubr.bf16.gmra.mrb[16].mxu0 %v4425_v29  ;;  %3616 = vmatprep.subr.bf16.mxu1 %v4551_v42  ;;  %v1499_v29 = vld [vmem:[%s5550_s6 + $0x50] sm:$0xff] }
  0xd6   : > { %731 = vmatprep.mubr.bf16.mxu0 %v5637_v40 }
  0xd8   : > { %3618 = vmatpush3.bf16.msra.mxu1 %v4551_v42 }
  0xd9   : > { %3620 = vmatprep.subr.bf16.mxu1 %v4562_v51 }
  0xdc   : > { %3622 = vmatpush3.bf16.msra.mxu1 %v4562_v51 }
  0xdd   : > { %732 = vmatmul.mubr.bf16.gmra.mrb[20].mxu0 %v4428_v30  ;;  %v1500_v30 = vld [vmem:[%s5550_s6 + $0x58] sm:$0xff] }
  0xde   : > { %741 = vmatprep.mubr.bf16.mxu0 %v5637_v40 }
  0xe5   : > { %742 = vmatmul.mubr.bf16.gmra.mrb[24].mxu0 %v4431_v31  ;;  %v4592_v31 = vpack.c.bf16 %v1500_v30, %v1499_v29 }
  0xe6   : > { %751 = vmatprep.mubr.bf16.mxu0 %v5637_v40 }
  0xe7   : > { %3624 = vmatprep.subr.bf16.mxu1 %v4592_v31 }
  0xe8   : > { %3626 = vmatpush3.bf16.msra.mxu1 %v4592_v31 }
  0xed   : > { %752 = vmatmul.mubr.bf16.gmra.mrb[28].mxu0 %v4440_v36  ;;  %v1501_v36 = vld [vmem:[%s5550_s6 + $0x60] sm:$0xff] }
  0xee   : > { %761 = vmatprep.mubr.bf16.mxu0 %v5637_v40 }
  0xf5   : > { %762 = vmatmul.mubr.bf16.gmra.mrb[32].mxu0 %v4443_v37  ;;  %v1502_v37 = vld [vmem:[%s5550_s6 + $0x68] sm:$0xff] }
  0xf6   : > { %771 = vmatprep.mubr.bf16.mxu0 %v5637_v40 }
  0xfd   : > { %772 = vmatmul.mubr.bf16.gmra.mrb[36].mxu0 %v4446_v38  ;;  %v4602_v38 = vpack.c.bf16 %v1502_v37, %v1501_v36 }
  0xfe   : > { %781 = vmatprep.mubr.bf16.mxu0 %v5637_v40 }
  0xff   : > { %3628 = vmatprep.subr.bf16.mxu1 %v4602_v38 }
 0x100   : > { %3630 = vmatpush3.bf16.msra.mxu1 %v4602_v38 }
 0x105   : > { %782 = vmatmul.mubr.bf16.gmra.mrb[40].mxu0 %v4455_v44  ;;  %v1005_v44 = vlaneseq }
 0x106   : > { %791 = vmatprep.mubr.bf16.mxu0 %v5637_v40 }
 0x107   : > { %v1006_v32 = vshrl.u32 %v1005_v44, 7 }
 0x109   : > { %v4663_v18 = vsub.s32 %v1371_v22, %v1006_v32 }
 0x10b   : > { %5645 = vst [vmem:[#allocation23_spill] sm:$0xff] %v4663_v18 }
 0x10d   : > { %792 = vmatmul.mubr.bf16.gmra.mrb[44].mxu0 %v4458_v45  ;;  %v1503_v45 = vld [vmem:[%s5550_s6 + $0x70] sm:$0xff] }
 0x10e   : > { %801 = vmatprep.mubr.bf16.mxu0 %v5637_v40 }
 0x115   : > { %802 = vmatmul.mubr.bf16.gmra.mrb[48].mxu0 %v4461_v46  ;;  %v1504_v46 = vld [vmem:[%s5550_s6 + $0x78] sm:$0xff] }
 0x116   : > { %811 = vmatprep.mubr.bf16.mxu0 %v5637_v40 }
 0x11d   : > { %812 = vmatmul.mubr.bf16.gmra.mrb[52].mxu0 %v4468_v52  ;;  %v4614_v52 = vpack.c.bf16 %v1504_v46, %v1503_v45  ;;  %v4674_v46 = vsub.s32 0, %v1006_v32 }
 0x11e   : > { %821 = vmatprep.mubr.bf16.mxu0 %v5637_v40 }
 0x11f   : > { %3632 = vmatprep.subr.bf16.mxu1 %v4614_v52 }
 0x120   : > { %3634 = vmatpush3.bf16.msra.mxu1 %v4614_v52 }
 0x121   : > { %3635 = vmatprep.subr.bf16.mxu1 %v4086_v47 }
 0x125   : > { %822 = vmatmul.mubr.bf16.gmra.mrb[56].mxu0 %v4471_v53  ;;  %v4620_v53 = vld [vmem:[%s5549_s5] sm:$0x3] }
 0x126   : > { %831 = vmatprep.mubr.bf16.mxu0 %v5637_v40  ;;  %v1011_v40 = vsub.s32 1, %v1006_v32 }
 0x128   : > { %v4625_v41 = vrot.slane %v4620_v53, %v1011_v40 }
 0x12d   : > { %832 = vmatmul.mubr.bf16.gmra.mrb[60].mxu0 %v5638_v33 }
 0x12e   : > { %3580 = vmatprep.mubr.msk.f32.mxu0 %vm4085_vm0, %v5568_v0 }
 0x188   : > { %v4630_v63 = vpop.f32.mrb[0].mxu0 }
 0x189   : > { %v4632_v50 = vpop.f32.mrb[1].mxu0 }
 0x18a   : > { %5639 = vst [vmem:[#allocation17_spill] sm:$0xff] %v4632_v50  ;;  %v687_v39 = vpop.f32.mrb[2].mxu0 }
 0x18b   : > { %v842_v48 = vadd.f32 %v687_v39, %v4630_v63  ;;  %v4635_v55 = vpop.f32.mrb[3].mxu0 }
 0x18c   : > { %5640 = vst [vmem:[#allocation18_spill] sm:$0xff] %v4635_v55  ;;  %v851_v58 = vadd.f32 %v4635_v55, %v4632_v50 }
 0x190   : > { %v4639_v56 = vpop.f32.mrb[4].mxu0 }
 0x191   : > { %v843_v59 = vadd.f32 %v842_v48, %v4639_v56  ;;  %v4642_v60 = vpop.f32.mrb[5].mxu0 }
 0x192   : > { %5641 = vst [vmem:[#allocation19_spill] sm:$0xff] %v4642_v60  ;;  %v852_v62 = vadd.f32 %v851_v58, %v4642_v60  ;;  %v4645_v49 = vpop.f32.mrb[6].mxu0 }
 0x193   : > { %v844_v2 = vadd.f32 %v843_v59, %v4645_v49  ;;  %v4648_v3 = vpop.f32.mrb[7].mxu0 }
 0x194   : > { %5642 = vst [vmem:[#allocation20_spill] sm:$0xff] %v4648_v3  ;;  %v853_v57 = vadd.f32 %v852_v62, %v4648_v3  ;;  %v4681_v62 = vld [vmem:[#allocation7 + $0x10] sm:$0xff] }
 0x195   : > { %v845_v13 = vrot.slane %v844_v2, 4  ;;  %v1041_v5 = vadd.f32 %v4681_v62, %v687_v39 }
 0x196   : > { %v854_v61 = vrot.slane %v853_v57, 4 }
 0x197   : > { %v846_v20 = vadd.f32 %v845_v13, %v844_v2  ;;  %v4694_v13 = vld [vmem:[#allocation7 + $0x30] sm:$0xff] }
 0x198   : > { %v855_v6 = vadd.f32 %v854_v61, %v853_v57  ;;  %v703_v7 = vpop.f32.mrb[8].mxu0  ;;  %v4683_v57 = vld [vmem:[#allocation7] sm:$0xff] }
 0x199   : > { %v4651_v21 = vpop.f32.mrb[9].mxu0  ;;  %v847_v40 = vrot.slane %v846_v20, 2 }
 0x19a   : > { %5643 = vst [vmem:[#allocation21_spill] sm:$0xff] %v4651_v21  ;;  %v856_v8 = vrot.slane %v855_v6, 2  ;;  %v4653_v9 = vpop.f32.mrb[10].mxu0 }
 0x19b   : > { %v860_v10 = vadd.f32 %v4653_v9, %v703_v7  ;;  %v4656_v11 = vpop.f32.mrb[11].mxu0 }
 0x19c   : > { %5644 = vst [vmem:[#allocation22_spill] sm:$0xff] %v4656_v11  ;;  %v857_v14 = vadd.f32 %v856_v8, %v855_v6  ;;  %v869_v15 = vadd.f32 %v4656_v11, %v4651_v21  ;;  %v4690_v6 = vld [vmem:[#allocation7 + $0x20] sm:$0xff]  ;;  %v848_v8 = vadd.f32 %v847_v40, %v846_v20  ;;  %v1047_v20 = vadd.f32 %v4683_v57, %v703_v7 }
 0x19d   : > { %v1043_v39 = vadd.f32 %v4690_v6, %v4639_v56 }
 0x19e   : > { %v1360_v16 = vpop.f32.mrb[0].mxu1  ;;  %v858_v17 = vrot.slane %v857_v14, 1 }
 0x19f   : > { %v1361_v54 = vadd.f32 %v3216_v12, %v1360_v16  ;;  %v3411_v19 = vpop.f32.mrb[1].mxu1  ;;  %v1039_v12 = vadd.f32 %v4683_v57, %v4630_v63  ;;  %v1045_v63 = vadd.f32 %v4694_v13, %v4645_v49 }
 0x1a0   : > { %v859_v25 = vadd.f32 %v858_v17, %v857_v14  ;;  %v713_v24 = vpop.f32.mrb[12].mxu0  ;;  %v1363_v27 = vpop.f32.mrb[2].mxu1 }
 0x1a1   : > { %v4665_v34 = vmul.f32 0.17677669, %v1361_v54  ;;  %v861_v35 = vadd.f32 %v860_v10, %v713_v24  ;;  %v4667_v26 = vpop.f32.mrb[13].mxu0  ;;  %v3412_v43 = vpop.f32.mrb[3].mxu1  ;;  %v849_v27 = vrot.slane %v848_v8, 1 }
 0x1a2   : > { %5646 = vst [vmem:[#allocation24_spill] sm:$0xff] %v4667_v26  ;;  %v988_v29 = vmul.f32 0.03125, %v859_v25  ;;  %v870_v30 = vadd.f32 %v869_v15, %v4667_v26  ;;  %v717_v36 = vpop.f32.mrb[14].mxu0 }
 0x1a3   : > { %v1375_v37 = vrot.slane %v4665_v34, %v4663_v18  ;;  %v862_v44 = vadd.f32 %v861_v35, %v717_v36  ;;  %v4672_v45 = vpop.f32.mrb[15].mxu0  ;;  %v850_v49 = vadd.f32 %v849_v27, %v848_v8 }
 0x1a4   : > { %5647 = vst [vmem:[#allocation25_spill] sm:$0xff] %v4672_v45  ;;  %v4677_v33 = vadd.f32 %v4625_v41, %v988_v29  ;;  %v871_v48 = vadd.f32 %v870_v30, %v4672_v45 }
 0x1a5   : > { %v1383_v58 = vcombine.high %v1375_v37, %v1375_v37  ;;  %v1391_v59 = vrot.slane %v1375_v37, %v4663_v18  ;;  %v863_v2 = vrot.slane %v862_v44, 4  ;;  %v987_v27 = vmul.f32 0.03125, %v850_v49 }
 0x1a6   : > { %v872_v61 = vrot.slane %v871_v48, 4 }
 0x1a7   : > { %v4686_v4 = vrot.slane %v1383_v58, %v4663_v18  ;;  %v1420_v32 = vrot.slane %v1391_v59, %v4674_v46  ;;  %v864_v22 = vadd.f32 %v863_v2, %v862_v44  ;;  %v1413_v37 = vcombine.high %v1391_v59, %v1391_v59 }
 0x1a8   : > { %v723_v10 = vpop.f32.mrb[16].mxu0  ;;  %v873_v14 = vadd.f32 %v872_v61, %v871_v48  ;;  %v1049_v44 = vadd.f32 %v4681_v62, %v4653_v9  ;;  %v1051_v48 = vadd.f32 %v4690_v6, %v713_v24  ;;  %v1053_v59 = vadd.f32 %v4694_v13, %v717_v36 }
 0x1a9   : > { %v4696_v15 = vpop.f32.mrb[17].mxu0  ;;  %v1458_v16 = vmul.f32 %v1420_v32, %v1041_v5  ;;  %v1424_v54 = vrot.slane %v4686_v4, %v4674_v46  ;;  %v1457_v19 = vmul.f32 %v1420_v32, %v1039_v12  ;;  %v865_v35 = vrot.slane %v864_v22, 2 }
 0x1aa   : > { %5648 = vst [vmem:[#allocation26_spill] sm:$0xff] %v4696_v15  ;;  %v727_v17 = vpop.f32.mrb[18].mxu0  ;;  %v1459_v43 = vmul.f32 %v1420_v32, %v1043_v39  ;;  %v874_v29 = vrot.slane %v873_v14, 2  ;;  %v1460_v2 = vmul.f32 %v1420_v32, %v1045_v63  ;;  %v4724_v63 = vrot.slane %v4620_v53, %v4674_v46 }
 0x1ab   : > { %v4703_v25 = vpop.f32.mrb[19].mxu0  ;;  %3445 = vmatprep.mubr.f32.mxu1 %v1457_v19  ;;  %v878_v30 = vadd.f32 %v727_v17, %v723_v10  ;;  %v866_v56 = vadd.f32 %v865_v35, %v864_v22  ;;  %v1461_v40 = vmul.f32 %v1424_v54, %v1047_v20  ;;  %v1428_v22 = vrot.slane %v1413_v37, %v4674_v46 }
 0x1ac   : > { %5649 = vst [vmem:[#allocation27_spill] sm:$0xff] %v4703_v25  ;;  %3446 = vmatmul.mubr.f32.vlgmr.msra.gmra.mrb[4].mxu1 %v1458_v16  ;;  %v887_v7 = vadd.f32 %v4703_v25, %v4696_v15  ;;  %v875_v58 = vadd.f32 %v874_v29, %v873_v14  ;;  %v1462_v39 = vmul.f32 %v1424_v54, %v1049_v44 }
 0x1ad   : > { %3448 = vmatprep.mubr.f32.mxu1 %v1459_v43  ;;  %v867_v61 = vrot.slane %v866_v56, 1  ;;  %3637 = vmatpush3.bf16.msra.mxu1 %v4518_v1  ;;  %v1463_v14 = vmul.f32 %v1424_v54, %v1051_v48  ;;  %v1055_v1 = vadd.f32 %v4683_v57, %v723_v10  ;;  %v1415_v29 = vcombine.high %v4686_v4, %v4686_v4 }
 0x1ae   : > { %v876_v12 = vrot.slane %v875_v58, 1  ;;  %3638 = vmatprep.subr.bf16.mxu1 %v4086_v47  ;;  %v1464_v44 = vmul.f32 %v1424_v54, %v1053_v59  ;;  %v1015_v4 = vadd.f32 %v4724_v63, %v987_v27  ;;  %v1368_v54 = vcombine.high %v4665_v34, %v4665_v34 }
 0x1af   : > { %v868_v24 = vadd.f32 %v867_v61, %v866_v56  ;;  %v1057_v56 = vadd.f32 %v4681_v62, %v727_v17  ;;  %v1432_v59 = vrot.slane %v1415_v29, %v4674_v46 }
 0x1b0   : > { %v733_v5 = vpop.f32.mrb[20].mxu0  ;;  %3449 = vmatmul.mubr.f32.gmra.mrb[6].mxu1 %v1460_v2  ;;  %v877_v19 = vadd.f32 %v876_v12, %v875_v58  ;;  %v4755_v29 = vrot.slane %v1368_v54, %v4663_v18 }
 0x1b1   : > { %v879_v16 = vadd.f32 %v878_v30, %v733_v5  ;;  %v4714_v9 = vpop.f32.mrb[21].mxu0  ;;  %3451 = vmatprep.mubr.f32.mxu1 %v1461_v40  ;;  %v989_v35 = vmul.f32 0.03125, %v868_v24  ;;  %3640 = vmatpush3.bf16.msra.mxu1 %v4529_v23  ;;  %v1465_v40 = vmul.f32 %v1428_v22, %v1055_v1  ;;  %v1059_v23 = vadd.f32 %v4690_v6, %v733_v5 }
 0x1b2   : > { %5650 = vst [vmem:[#allocation28_spill] sm:$0xff] %v4714_v9  ;;  %v888_v8 = vadd.f32 %v887_v7, %v4714_v9  ;;  %v737_v32 = vpop.f32.mrb[22].mxu0  ;;  %v990_v30 = vmul.f32 0.03125, %v877_v19  ;;  %3641 = vmatprep.subr.bf16.mxu1 %v4086_v47 }
 0x1b3   : > { %v880_v36 = vadd.f32 %v879_v16, %v737_v32  ;;  %v4720_v20 = vpop.f32.mrb[23].mxu0  ;;  %v1017_v10 = vadd.f32 %v4724_v63, %v989_v35  ;;  %v1466_v16 = vmul.f32 %v1428_v22, %v1057_v56 }
 0x1b4   : > { %5651 = vst [vmem:[#allocation29_spill] sm:$0xff] %v4720_v20  ;;  %v889_v43 = vadd.f32 %v888_v8, %v4720_v20  ;;  %3452 = vmatmul.mubr.f32.gmra.mrb[8].mxu1 %v1462_v39  ;;  %v1018_v7 = vadd.f32 %v4625_v41, %v990_v30  ;;  %v1061_v39 = vadd.f32 %v4694_v13, %v737_v32 }
 0x1b5   : > { %v881_v37 = vrot.slane %v880_v36, 4  ;;  %3454 = vmatprep.mubr.f32.mxu1 %v1463_v14  ;;  %v1738_v58 = vrot.slane %v1017_v10, 7  ;;  %3643 = vmatpush3.bf16.msra.mxu1 %v4540_v28  ;;  %v1467_v28 = vmul.f32 %v1428_v22, %v1059_v23 }
 0x1b6   : > { %v890_v53 = vrot.slane %v889_v43, 4  ;;  %v2863_v61 = vrot.slane %v1018_v7, 7  ;;  %3644 = vmatprep.subr.bf16.mxu1 %v4086_v47  ;;  %v1468_v30 = vmul.f32 %v1428_v22, %v1061_v39  ;;  %v4765_v22 = vrot.slane %v4755_v29, %v4663_v18 }
 0x1b7   : > { %v882_v48 = vadd.f32 %v881_v37, %v880_v36  ;;  %v1739_v5 = vsel %vm1262_vm1, %v1738_v58, %v1015_v4 }
 0x1b8   : > { %v891_v49 = vadd.f32 %v890_v53, %v889_v43  ;;  %v743_v2 = vpop.f32.mrb[24].mxu0  ;;  %3455 = vmatmul.mubr.f32.gmra.mrb[10].mxu1 %v1464_v44  ;;  %v2864_v43 = vsel %vm1262_vm1, %v2863_v61, %v4677_v33 }
 0x1b9   : > { %v883_v17 = vrot.slane %v882_v48, 2  ;;  %v4740_v12 = vpop.f32.mrb[25].mxu0  ;;  %3457 = vmatprep.mubr.f32.mxu1 %v1465_v40  ;;  %v1063_v19 = vadd.f32 %v4683_v57, %v743_v2  ;;  %3646 = vmatpush3.bf16.msra.mxu1 %v4551_v42 }
 0x1ba   : > { %5652 = vst [vmem:[#allocation30_spill] sm:$0xff] %v4740_v12  ;;  %v892_v24 = vrot.slane %v891_v49, 2  ;;  %v747_v8 = vpop.f32.mrb[26].mxu0  ;;  %3647 = vmatprep.subr.bf16.mxu1 %v4086_v47 }
 0x1bb   : > { %v884_v14 = vadd.f32 %v883_v17, %v882_v48  ;;  %v896_v1 = vadd.f32 %v747_v8, %v743_v2  ;;  %v4746_v36 = vpop.f32.mrb[27].mxu0  ;;  %v1065_v10 = vadd.f32 %v4681_v62, %v747_v8  ;;  %v1469_v56 = vmul.f32 %v1432_v59, %v1063_v19 }
 0x1bc   : > { %5653 = vst [vmem:[#allocation31_spill] sm:$0xff] %v4746_v36  ;;  %v893_v27 = vadd.f32 %v892_v24, %v891_v49  ;;  %v905_v35 = vadd.f32 %v4746_v36, %v4740_v12  ;;  %3458 = vmatmul.mubr.f32.gmra.mrb[12].mxu1 %v1466_v16 }
 0x1bd   : > { %v885_v32 = vrot.slane %v884_v14, 1  ;;  %3460 = vmatprep.mubr.f32.mxu1 %v1467_v28  ;;  %3649 = vmatpush3.bf16.msra.mxu1 %v4562_v51  ;;  %v1470_v4 = vmul.f32 %v1432_v59, %v1065_v10 }
 0x1be   : > { %v894_v37 = vrot.slane %v893_v27, 1  ;;  %3650 = vmatprep.subr.bf16.mxu1 %v4086_v47 }
 0x1bf   : > { %v886_v44 = vadd.f32 %v885_v32, %v884_v14 }
 0x1c0   : > { %v895_v53 = vadd.f32 %v894_v37, %v893_v27  ;;  %v753_v7 = vpop.f32.mrb[28].mxu0  ;;  %3461 = vmatmul.mubr.f32.gmra.mrb[14].mxu1 %v1468_v30 }
 0x1c1   : > { %v991_v42 = vmul.f32 0.03125, %v886_v44  ;;  %v897_v33 = vadd.f32 %v896_v1, %v753_v7  ;;  %v1067_v40 = vadd.f32 %v4690_v6, %v753_v7  ;;  %v4760_v23 = vpop.f32.mrb[29].mxu0  ;;  %3463 = vmatprep.mubr.f32.mxu1 %v1469_v56  ;;  %3652 = vmatpush3.bf16.msra.mxu1 %v4592_v31  ;;  %v1436_v1 = vrot.slane %v4765_v22, %v4674_v46 }
 0x1c2   : > { %5654 = vst [vmem:[#allocation32_spill] sm:$0xff] %v4760_v23  ;;  %v992_v48 = vmul.f32 0.03125, %v895_v53  ;;  %v906_v58 = vadd.f32 %v905_v35, %v4760_v23  ;;  %v757_v49 = vpop.f32.mrb[30].mxu0  ;;  %3653 = vmatprep.subr.bf16.mxu1 %v4086_v47 }
 0x1c3   : > { %v1019_v51 = vadd.f32 %v4724_v63, %v991_v42  ;;  %v1471_v2 = vmul.f32 %v1432_v59, %v1067_v40  ;;  %v898_v54 = vadd.f32 %v897_v33, %v757_v49  ;;  %v1069_v61 = vadd.f32 %v4694_v13, %v757_v49  ;;  %v4770_v17 = vpop.f32.mrb[31].mxu0 }
 0x1c4   : > { %5655 = vst [vmem:[#allocation33_spill] sm:$0xff] %v4770_v17  ;;  %v1020_v16 = vadd.f32 %v4625_v41, %v992_v48  ;;  %v907_v39 = vadd.f32 %v906_v58, %v4770_v17  ;;  %3464 = vmatmul.mubr.f32.gmra.mrb[16].mxu1 %v1470_v4 }
 0x1c5   : > { %v1740_v24 = vrot.slane %v1019_v51, 6  ;;  %v899_v8 = vrot.slane %v898_v54, 4  ;;  %v1472_v14 = vmul.f32 %v1432_v59, %v1069_v61  ;;  %3466 = vmatprep.mubr.f32.mxu1 %v1471_v2  ;;  %3655 = vmatpush3.bf16.msra.mxu1 %v4602_v38  ;;  %v1384_v51 = vcombine.high %v4755_v29, %v4755_v29 }
 0x1c6   : > { %v2865_v28 = vrot.slane %v1020_v16, 6  ;;  %v908_v19 = vrot.slane %v907_v39, 4  ;;  %3656 = vmatprep.subr.bf16.mxu1 %v4086_v47 }
 0x1c7   : > { %v1741_v27 = vsel %vm1264_vm2, %v1740_v24, %v1739_v5  ;;  %v900_v35 = vadd.f32 %v899_v8, %v898_v54 }
 0x1c8   : > { %v909_v32 = vadd.f32 %v908_v19, %v907_v39  ;;  %v763_v30 = vpop.f32.mrb[32].mxu0  ;;  %v2866_v31 = vsel %vm1264_vm2, %v2865_v28, %v2864_v43  ;;  %3467 = vmatmul.mubr.f32.gmra.mrb[18].mxu1 %v1472_v14 }
 0x1c9   : > { %v901_v37 = vrot.slane %v900_v35, 2  ;;  %v1071_v10 = vadd.f32 %v4683_v57, %v763_v30  ;;  %v4782_v44 = vpop.f32.mrb[33].mxu0  ;;  %3658 = vmatpush3.bf16.msra.mxu1 %v4614_v52 }
 0x1ca   : > { %5656 = vst [vmem:[#allocation34_spill] sm:$0xff] %v4782_v44  ;;  %v910_v59 = vrot.slane %v909_v32, 2  ;;  %v767_v56 = vpop.f32.mrb[34].mxu0 }
 0x1cb   : > { %v902_v53 = vadd.f32 %v901_v37, %v900_v35  ;;  %v1473_v5 = vmul.f32 %v1436_v1, %v1071_v10  ;;  %v914_v7 = vadd.f32 %v767_v56, %v763_v30  ;;  %v1073_v42 = vadd.f32 %v4681_v62, %v767_v56  ;;  %v4786_v33 = vpop.f32.mrb[35].mxu0 }
 0x1cc   : > { %5657 = vst [vmem:[#allocation35_spill] sm:$0xff] %v4786_v33  ;;  %v911_v38 = vadd.f32 %v910_v59, %v909_v32  ;;  %v923_v43 = vadd.f32 %v4786_v33, %v4782_v44  ;;  %v4804_v30 = vrot.slane %v1384_v51, %v4663_v18 }
 0x1cd   : > { %v903_v40 = vrot.slane %v902_v53, 1  ;;  %v1474_v48 = vmul.f32 %v1436_v1, %v1073_v42  ;;  %3469 = vmatprep.mubr.f32.mxu1 %v1473_v5 }
 0x1ce   : > { %v912_v47 = vrot.slane %v911_v38, 1 }
 0x1cf   : > { %v904_v4 = vadd.f32 %v903_v40, %v902_v53  ;;  %3470 = vmatmul.mubr.f32.gmra.mrb[20].mxu1 %v1474_v48 }
 0x1d0   : > { %v913_v58 = vadd.f32 %v912_v47, %v911_v38  ;;  %v773_v49 = vpop.f32.mrb[36].mxu0  ;;  %v1440_v47 = vrot.slane %v4804_v30, %v4674_v46 }
 0x1d1   : > { %v993_v2 = vmul.f32 0.03125, %v904_v4  ;;  %v915_v54 = vadd.f32 %v914_v7, %v773_v49  ;;  %v1075_v61 = vadd.f32 %v4690_v6, %v773_v49  ;;  %v4794_v16 = vpop.f32.mrb[37].mxu0 }
 0x1d2   : > { %5658 = vst [vmem:[#allocation36_spill] sm:$0xff] %v4794_v16  ;;  %v994_v39 = vmul.f32 0.03125, %v913_v58  ;;  %v924_v52 = vadd.f32 %v923_v43, %v4794_v16  ;;  %v777_v24 = vpop.f32.mrb[38].mxu0 }
 0x1d3   : > { %v1021_v8 = vadd.f32 %v4724_v63, %v993_v2  ;;  %v1475_v28 = vmul.f32 %v1436_v1, %v1075_v61  ;;  %v916_v14 = vadd.f32 %v915_v54, %v777_v24  ;;  %v1077_v19 = vadd.f32 %v4694_v13, %v777_v24  ;;  %v4799_v35 = vpop.f32.mrb[39].mxu0 }
 0x1d4   : > { %5659 = vst [vmem:[#allocation37_spill] sm:$0xff] %v4799_v35  ;;  %v1022_v29 = vadd.f32 %v4625_v41, %v994_v39  ;;  %v925_v32 = vadd.f32 %v924_v52, %v4799_v35 }
 0x1d5   : > { %v1742_v37 = vrot.slane %v1021_v8, 5  ;;  %v917_v10 = vrot.slane %v916_v14, 4  ;;  %v1476_v59 = vmul.f32 %v1436_v1, %v1077_v19  ;;  %3472 = vmatprep.mubr.f32.mxu1 %v1475_v28 }
 0x1d6   : > { %v2867_v56 = vrot.slane %v1022_v29, 5  ;;  %v926_v53 = vrot.slane %v925_v32, 4 }
 0x1d7   : > { %v1743_v5 = vsel %vm1266_vm3, %v1742_v37, %v1741_v27  ;;  %v918_v7 = vadd.f32 %v917_v10, %v916_v14  ;;  %3473 = vmatmul.mubr.f32.gmra.mrb[22].mxu1 %v1476_v59 }
 0x1d8   : > { %v927_v42 = vadd.f32 %v926_v53, %v925_v32  ;;  %v783_v38 = vpop.f32.mrb[40].mxu0  ;;  %v2868_v43 = vsel %vm1266_vm3, %v2867_v56, %v2866_v31 }
 0x1d9   : > { %v919_v40 = vrot.slane %v918_v7, 2  ;;  %v1079_v48 = vadd.f32 %v4683_v57, %v783_v38  ;;  %v4811_v4 = vpop.f32.mrb[41].mxu0 }
 0x1da   : > { %5660 = vst [vmem:[#allocation38_spill] sm:$0xff] %v4811_v4  ;;  %v928_v1 = vrot.slane %v927_v42, 2  ;;  %v787_v58 = vpop.f32.mrb[42].mxu0 }
 0x1db   : > { %v920_v49 = vadd.f32 %v919_v40, %v918_v7  ;;  %v1477_v51 = vmul.f32 %v1440_v47, %v1079_v48  ;;  %v932_v2 = vadd.f32 %v787_v58, %v783_v38  ;;  %v1081_v27 = vadd.f32 %v4681_v62, %v787_v58  ;;  %v4814_v54 = vpop.f32.mrb[43].mxu0 }
 0x1dc   : > { %5661 = vst [vmem:[#allocation39_spill] sm:$0xff] %v4814_v54  ;;  %v929_v61 = vadd.f32 %v928_v1, %v927_v42  ;;  %v941_v31 = vadd.f32 %v4814_v54, %v4811_v4  ;;  %v1414_v58 = vcombine.high %v4765_v22, %v4765_v22 }
 0x1dd   : > { %v921_v39 = vrot.slane %v920_v49, 1  ;;  %v1478_v52 = vmul.f32 %v1440_v47, %v1081_v27  ;;  %3475 = vmatprep.mubr.f32.mxu1 %v1477_v51 }
 0x1de   : > { %v930_v24 = vrot.slane %v929_v61, 1 }
 0x1df   : > { %v922_v8 = vadd.f32 %v921_v39, %v920_v49  ;;  %3476 = vmatmul.mubr.f32.gmra.mrb[24].mxu1 %v1478_v52 }
 0x1e0   : > { %v931_v28 = vadd.f32 %v930_v24, %v929_v61  ;;  %v793_v14 = vpop.f32.mrb[44].mxu0 }
 0x1e1   : > { %v995_v19 = vmul.f32 0.03125, %v922_v8  ;;  %v933_v29 = vadd.f32 %v932_v2, %v793_v14  ;;  %v1083_v32 = vadd.f32 %v4690_v6, %v793_v14  ;;  %v4819_v37 = vpop.f32.mrb[45].mxu0 }
 0x1e2   : > { %5662 = vst [vmem:[#allocation40_spill] sm:$0xff] %v4819_v37  ;;  %v996_v10 = vmul.f32 0.03125, %v931_v28  ;;  %v942_v59 = vadd.f32 %v941_v31, %v4819_v37  ;;  %v797_v56 = vpop.f32.mrb[46].mxu0 }
 0x1e3   : > { %v1023_v53 = vadd.f32 %v4724_v63, %v995_v19  ;;  %v1479_v7 = vmul.f32 %v1440_v47, %v1083_v32  ;;  %v934_v42 = vadd.f32 %v933_v29, %v797_v56  ;;  %v1085_v38 = vadd.f32 %v4694_v13, %v797_v56  ;;  %v4824_v40 = vpop.f32.mrb[47].mxu0 }
 0x1e4   : > { %5663 = vst [vmem:[#allocation41_spill] sm:$0xff] %v4824_v40  ;;  %v1024_v48 = vadd.f32 %v4625_v41, %v996_v10  ;;  %v943_v1 = vadd.f32 %v942_v59, %v4824_v40  ;;  %v1444_v19 = vrot.slane %v1414_v58, %v4674_v46 }
 0x1e5   : > { %v1744_v49 = vrot.slane %v1023_v53, 4  ;;  %v935_v51 = vrot.slane %v934_v42, 4  ;;  %v1480_v2 = vmul.f32 %v1440_v47, %v1085_v38  ;;  %3478 = vmatprep.mubr.f32.mxu1 %v1479_v7 }
 0x1e6   : > { %v2869_v27 = vrot.slane %v1024_v48, 4  ;;  %v944_v61 = vrot.slane %v943_v1, 4 }
 0x1e7   : > { %v1745_v31 = vsel %vm1268_vm4, %v1744_v49, %v1743_v5  ;;  %v936_v39 = vadd.f32 %v935_v51, %v934_v42  ;;  %3479 = vmatmul.mubr.f32.gmra.mrb[26].mxu1 %v1480_v2 }
 0x1e8   : > { %v945_v52 = vadd.f32 %v944_v61, %v943_v1  ;;  %v803_v24 = vpop.f32.mrb[48].mxu0  ;;  %v2870_v8 = vsel %vm1268_vm4, %v2869_v27, %v2868_v43 }
 0x1e9   : > { %v937_v28 = vrot.slane %v936_v39, 2  ;;  %v1087_v14 = vadd.f32 %v4683_v57, %v803_v24  ;;  %v4834_v22 = vpop.f32.mrb[49].mxu0 }
 0x1ea   : > { %5664 = vst [vmem:[#allocation42_spill] sm:$0xff] %v4834_v22  ;;  %v946_v29 = vrot.slane %v945_v52, 2  ;;  %v807_v47 = vpop.f32.mrb[50].mxu0 }
 0x1eb   : > { %v938_v32 = vadd.f32 %v937_v28, %v936_v39  ;;  %v1481_v10 = vmul.f32 %v1444_v19, %v1087_v14  ;;  %v950_v59 = vadd.f32 %v807_v47, %v803_v24  ;;  %v1089_v5 = vadd.f32 %v4681_v62, %v807_v47  ;;  %v4837_v56 = vpop.f32.mrb[51].mxu0 }
 0x1ec   : > { %5665 = vst [vmem:[#allocation43_spill] sm:$0xff] %v4837_v56  ;;  %v947_v53 = vadd.f32 %v946_v29, %v945_v52  ;;  %v959_v43 = vadd.f32 %v4837_v56, %v4834_v22 }
 0x1ed   : > { %v939_v7 = vrot.slane %v938_v32, 1  ;;  %v1482_v42 = vmul.f32 %v1444_v19, %v1089_v5  ;;  %3481 = vmatprep.mubr.f32.mxu1 %v1481_v10 }
 0x1ee   : > { %v948_v38 = vrot.slane %v947_v53, 1 }
 0x1ef   : > { %v940_v48 = vadd.f32 %v939_v7, %v938_v32  ;;  %3482 = vmatmul.mubr.f32.gmra.mrb[28].mxu1 %v1482_v42 }
 0x1f0   : > { %v949_v1 = vadd.f32 %v948_v38, %v947_v53  ;;  %v813_v58 = vpop.f32.mrb[52].mxu0 }
 0x1f1   : > { %v997_v49 = vmul.f32 0.03125, %v940_v48  ;;  %v951_v51 = vadd.f32 %v950_v59, %v813_v58  ;;  %v1091_v2 = vadd.f32 %v4690_v6, %v813_v58  ;;  %v4842_v27 = vpop.f32.mrb[53].mxu0  ;;  %v1416_v59 = vcombine.high %v4804_v30, %v4804_v30 }
 0x1f2   : > { %5666 = vst [vmem:[#allocation44_spill] sm:$0xff] %v4842_v27  ;;  %v998_v61 = vmul.f32 0.03125, %v949_v1  ;;  %v960_v39 = vadd.f32 %v959_v43, %v4842_v27  ;;  %v817_v52 = vpop.f32.mrb[54].mxu0 }
 0x1f3   : > { %v1025_v24 = vadd.f32 %v4724_v63, %v997_v49  ;;  %v1483_v28 = vmul.f32 %v1444_v19, %v1091_v2  ;;  %v952_v14 = vadd.f32 %v951_v51, %v817_v52  ;;  %v1093_v29 = vadd.f32 %v4694_v13, %v817_v52  ;;  %v4847_v47 = vpop.f32.mrb[55].mxu0 }
 0x1f4   : > { %5667 = vst [vmem:[#allocation45_spill] sm:$0xff] %v4847_v47  ;;  %v1026_v32 = vadd.f32 %v4625_v41, %v998_v61  ;;  %v961_v10 = vadd.f32 %v960_v39, %v4847_v47  ;;  %v1448_v61 = vrot.slane %v1416_v59, %v4674_v46 }
 0x1f5   : > { %v1746_v5 = vrot.slane %v1025_v24, 3  ;;  %v953_v53 = vrot.slane %v952_v14, 4  ;;  %v1484_v7 = vmul.f32 %v1444_v19, %v1093_v29  ;;  %3484 = vmatprep.mubr.f32.mxu1 %v1483_v28 }
 0x1f6   : > { %v962_v43 = vrot.slane %v961_v10, 4  ;;  %v2871_v42 = vrot.slane %v1026_v32, 3 }
 0x1f7   : > { %v1747_v38 = vsel %vm1270_vm5, %v1746_v5, %v1745_v31  ;;  %v954_v48 = vadd.f32 %v953_v53, %v952_v14  ;;  %3485 = vmatmul.mubr.f32.gmra.mrb[30].mxu1 %v1484_v7 }
 0x1f8   : > { %v963_v1 = vadd.f32 %v962_v43, %v961_v10  ;;  %v823_v58 = vpop.f32.mrb[56].mxu0  ;;  %v2872_v49 = vsel %vm1270_vm5, %v2871_v42, %v2870_v8 }
 0x1f9   : > { %v955_v51 = vrot.slane %v954_v48, 2  ;;  %v1095_v2 = vadd.f32 %v4683_v57, %v823_v58  ;;  %v4857_v30 = vpop.f32.mrb[57].mxu0 }
 0x1fa   : > { %5668 = vst [vmem:[#allocation46_spill] sm:$0xff] %v4857_v30  ;;  %v964_v39 = vrot.slane %v963_v1, 2  ;;  %v827_v19 = vpop.f32.mrb[58].mxu0 }
 0x1fb   : > { %v956_v52 = vadd.f32 %v955_v51, %v954_v48  ;;  %v1485_v24 = vmul.f32 %v1448_v61, %v1095_v2  ;;  %v968_v28 = vadd.f32 %v827_v19, %v823_v58  ;;  %v1097_v31 = vadd.f32 %v4681_v62, %v827_v19  ;;  %v4860_v14 = vpop.f32.mrb[59].mxu0 }
 0x1fc   : > { %5669 = vst [vmem:[#allocation47_spill] sm:$0xff] %v4860_v14  ;;  %v965_v29 = vadd.f32 %v964_v39, %v963_v1  ;;  %v977_v8 = vadd.f32 %v4860_v14, %v4857_v30 }
 0x1fd   : > { %v957_v32 = vrot.slane %v956_v52, 1  ;;  %v1486_v10 = vmul.f32 %v1448_v61, %v1097_v31  ;;  %3487 = vmatprep.mubr.f32.mxu1 %v1485_v24 }
 0x1fe   : > { %v966_v57 = vrot.slane %v965_v29, 1 }
 0x1ff   : > { %v958_v59 = vadd.f32 %v957_v32, %v956_v52  ;;  %3488 = vmatmul.mubr.f32.gmra.mrb[32].mxu1 %v1486_v10 }
 0x200   : > { %v967_v5 = vadd.f32 %v966_v57, %v965_v29  ;;  %v833_v53 = vpop.f32.mrb[60].mxu0 }
 0x201   : > { %v999_v7 = vmul.f32 0.03125, %v958_v59  ;;  %v969_v43 = vadd.f32 %v968_v28, %v833_v53  ;;  %v1099_v42 = vadd.f32 %v4690_v6, %v833_v53  ;;  %v4865_v48 = vpop.f32.mrb[61].mxu0 }
 0x202   : > { %5670 = vst [vmem:[#allocation48_spill] sm:$0xff] %v4865_v48  ;;  %v1000_v62 = vmul.f32 0.03125, %v967_v5  ;;  %v978_v1 = vadd.f32 %v977_v8, %v4865_v48  ;;  %v837_v58 = vpop.f32.mrb[62].mxu0 }
 0x203   : > { %v1027_v51 = vadd.f32 %v4724_v63, %v999_v7  ;;  %v1487_v2 = vmul.f32 %v1448_v61, %v1099_v42  ;;  %v970_v39 = vadd.f32 %v969_v43, %v837_v58  ;;  %v1101_v19 = vadd.f32 %v4694_v13, %v837_v58  ;;  %v4870_v52 = vpop.f32.mrb[63].mxu0 }
 0x204   : > { %5671 = vst [vmem:[#allocation49_spill] sm:$0xff] %v4870_v52  ;;  %v979_v24 = vadd.f32 %v978_v1, %v4870_v52  ;;  %v1028_v28 = vadd.f32 %v4625_v41, %v1000_v62 }
 0x205   : > { %v1748_v31 = vrot.slane %v1027_v51, 2  ;;  %v971_v6 = vrot.slane %v970_v39, 4  ;;  %v1488_v29 = vmul.f32 %v1448_v61, %v1101_v19  ;;  %3490 = vmatprep.mubr.f32.mxu1 %v1487_v2 }
 0x206   : > { %v980_v32 = vrot.slane %v979_v24, 4  ;;  %v2873_v10 = vrot.slane %v1028_v28, 2 }
 0x207   : > { %v972_v8 = vadd.f32 %v971_v6, %v970_v39  ;;  %3491 = vmatmul.mubr.f32.gmra.mrb[34].mxu1 %v1488_v29  ;;  %v1749_v57 = vsel %vm1272_vm6, %v1748_v31, %v1747_v38 }
 0x208   : > { %v981_v59 = vadd.f32 %v980_v32, %v979_v24  ;;  %3525 = vmatprep.mubr.msk.f32.mxu1 %vm4085_vm0, %v5568_v0  ;;  %v2874_v13 = vsel %vm1272_vm6, %v2873_v10, %v2872_v49 }
 0x209   : > { %v973_v5 = vrot.slane %v972_v8, 2 }
 0x20a   : > { %v982_v53 = vrot.slane %v981_v59, 2 }
 0x20b   : > { %v974_v7 = vadd.f32 %v973_v5, %v972_v8 }
 0x20c   : > { %v983_v43 = vadd.f32 %v982_v53, %v981_v59 }
 0x20d   : > { %v975_v42 = vrot.slane %v974_v7, 1 }
 0x20e   : > { %v984_v62 = vrot.slane %v983_v43, 1 }
 0x20f   : > { %v976_v61 = vadd.f32 %v975_v42, %v974_v7 }
 0x210   : > { %v985_v1 = vadd.f32 %v984_v62, %v983_v43 }
 0x211   : > { %v1001_v58 = vmul.f32 0.03125, %v976_v61 }
 0x212   : > { %v1002_v51 = vmul.f32 0.03125, %v985_v1 }
 0x213   : > { %v1029_v2 = vadd.f32 %v4724_v63, %v1001_v58 }
 0x214   : > { %v1030_v38 = vadd.f32 %v4625_v41, %v1002_v51 }
 0x215   : > { %v1750_v39 = vrot.slane %v1029_v2, 1 }
 0x216   : > { %v2875_v19 = vrot.slane %v1030_v38, 1 }
 0x217   : > { %v1751_v24 = vsel %vm1274_vm7, %v1750_v39, %v1749_v57 }
 0x218   : > { %v1753_v49 = vmul.f32 %v1751_v24, %v4665_v34  ;;  %v4883_v28 = vsel %vm1274_vm7, %v2875_v19, %v2874_v13 }
 0x219   : > { %5672 = vst [vmem:[#allocation50_spill] sm:$0xff] %v4883_v28 }
 0x21a   : > { %3526 = vmatmul.mubr.f32.vlgmr.msra.gmra.mrb[36].mxu1 %v1753_v49 }
 0x27f   : > { %v4885_v31 = vpop.f32.mrb[4].mxu1 }
 0x280   : > { %v1826_v6 = vsel %vm1824_vm8, %v4885_v31, -inf  ;;  %v4889_v29 = vpop.f32.mrb[5].mxu1 }
 0x281   : > { %v1825_v41 = vsel %vm1824_vm8, %v4889_v29, -inf }
 0x282   : > { %v1827_v63 = vmax.f32 %v1825_v41, %v1826_v6 }
 0x283   : > { %v4893_v32 = vpop.f32.mrb[6].mxu1 }
 0x284   : > { %v4895_v10 = vpop.f32.mrb[7].mxu1  ;;  %v1830_v57 = vsel %vm1824_vm8, %v4893_v32, -inf }
 0x285   : > { %v1828_v34 = vsel %vm1824_vm8, %v4895_v10, -inf }
 0x286   : > { %v1829_v8 = vmax.f32 %v1827_v63, %v1828_v34 }
 0x287   : > { %v4901_v59 = vpop.f32.mrb[8].mxu1 }
 0x288   : > { %v4903_v13 = vmax.f32 %v1829_v8, %v1830_v57  ;;  %v1839_v5 = vsel %vm1824_vm8, %v4901_v59, -inf  ;;  %v4907_v53 = vpop.f32.mrb[9].mxu1 }
 0x289   : > { %v1838_v7 = vsel %vm1824_vm8, %v4907_v53, -inf }
 0x28a   : > { %v1840_v43 = vmax.f32 %v1838_v7, %v1839_v5  ;;  %v1832_v23 = vrot.slane %v4903_v13, 4 }
 0x28b   : > { %v4911_v42 = vpop.f32.mrb[10].mxu1 }
 0x28c   : > { %v4913_v62 = vpop.f32.mrb[11].mxu1  ;;  %v1843_v58 = vsel %vm1824_vm8, %v4911_v42, -inf  ;;  %v1833_v9 = vmax.f32 %v4903_v13, %v1832_v23 }
 0x28d   : > { %v1841_v61 = vsel %vm1824_vm8, %v4913_v62, -inf }
 0x28e   : > { %v1842_v1 = vmax.f32 %v1840_v43, %v1841_v61  ;;  %v1834_v50 = vrot.slane %v1833_v9, 2 }
 0x28f   : > { %v4919_v51 = vpop.f32.mrb[12].mxu1 }
 0x290   : > { %v4921_v2 = vmax.f32 %v1842_v1, %v1843_v58  ;;  %v1852_v38 = vsel %vm1824_vm8, %v4919_v51, -inf  ;;  %v4925_v39 = vpop.f32.mrb[13].mxu1 }
 0x291   : > { %v1851_v19 = vsel %vm1824_vm8, %v4925_v39, -inf }
 0x292   : > { %v1853_v24 = vmax.f32 %v1851_v19, %v1852_v38  ;;  %v1845_v17 = vrot.slane %v4921_v2, 4 }
 0x293   : > { %v4929_v49 = vpop.f32.mrb[14].mxu1 }
 0x294   : > { %v4931_v6 = vpop.f32.mrb[15].mxu1  ;;  %v1856_v34 = vsel %vm1824_vm8, %v4929_v49, -inf  ;;  %v1846_v15 = vmax.f32 %v4921_v2, %v1845_v17 }
 0x295   : > { %v1854_v41 = vsel %vm1824_vm8, %v4931_v6, -inf }
 0x296   : > { %v1855_v63 = vmax.f32 %v1853_v24, %v1854_v41  ;;  %v1847_v23 = vrot.slane %v1846_v15, 2 }
 0x297   : > { %v4937_v8 = vpop.f32.mrb[16].mxu1 }
 0x298   : > { %v4939_v57 = vmax.f32 %v1855_v63, %v1856_v34  ;;  %v1865_v5 = vsel %vm1824_vm8, %v4937_v8, -inf  ;;  %v4943_v7 = vpop.f32.mrb[17].mxu1 }
 0x299   : > { %v1864_v43 = vsel %vm1824_vm8, %v4943_v7, -inf }
 0x29a   : > { %v1866_v61 = vmax.f32 %v1864_v43, %v1865_v5 }
 0x29b   : > { %v4947_v1 = vpop.f32.mrb[18].mxu1 }
 0x29c   : > { %v4949_v58 = vpop.f32.mrb[19].mxu1  ;;  %v1869_v24 = vsel %vm1824_vm8, %v4947_v1, -inf }
 0x29d   : > { %v1867_v38 = vsel %vm1824_vm8, %v4949_v58, -inf }
 0x29e   : > { %v1868_v19 = vmax.f32 %v1866_v61, %v1867_v38 }
 0x2a0   : > { %v1870_v41 = vmax.f32 %v1868_v19, %v1869_v24 }
 0x2a2   : > { %v4955_v63 = vpop.f32.mrb[20].mxu1 }
 0x2a3   : > { %v1878_v34 = vsel %vm1824_vm8, %v4955_v63, -inf  ;;  %v4959_v0 = vpop.f32.mrb[21].mxu1 }
 0x2a4   : > { %v1877_v5 = vsel %vm1824_vm8, %v4959_v0, -inf }
 0x2a5   : > { %v1879_v43 = vmax.f32 %v1877_v5, %v1878_v34 }
 0x2aa   : > { %v4963_v52 = vpop.f32.mrb[22].mxu1 }
 0x2ab   : > { %v4965_v48 = vpop.f32.mrb[23].mxu1  ;;  %v1882_v19 = vsel %vm1824_vm8, %v4963_v52, -inf }
 0x2ac   : > { %v1880_v61 = vsel %vm1824_vm8, %v4965_v48, -inf }
 0x2ad   : > { %v1881_v38 = vmax.f32 %v1879_v43, %v1880_v61  ;;  %v2352_v43 = vld [vmem:[%s5551_s7] sm:$0xf] }
 0x2ae   : > { %3579 = vmatpush3.msk.msra.mxu0 %vm2449_vm9, %v2352_v43  ;;  %3528 = vmatprep.subr.msk.mxu1 %vm2449_vm9, %v2352_v43 }
 0x2af   : > { %v1883_v24 = vmax.f32 %v1881_v38, %v1882_v19  ;;  %3529 = vmatpush3.msk.msra.mxu1 %vm2449_vm9, %v2352_v43  ;;  %v5673_v19 = vmov 0.0  }
 0x2b0   : > { %3583 = vmatprep.subr.bf16.mxu0 %v5673_v19 }
 0x2b1   : > { %v1884_v12 = vrot.slane %v1883_v24, 4 }
 0x2b2   : > { %v4971_v14 = vpop.f32.mrb[24].mxu1 }
 0x2b3   : > { %v1891_v30 = vsel %vm1824_vm8, %v4971_v14, -inf  ;;  %v4975_v47 = vpop.f32.mrb[25].mxu1  ;;  %v1885_v26 = vmax.f32 %v1883_v24, %v1884_v12 }
 0x2b4   : > { %v1890_v34 = vsel %vm1824_vm8, %v4975_v47, -inf }
 0x2b5   : > { %v1892_v5 = vmax.f32 %v1890_v34, %v1891_v30  ;;  %v1886_v28 = vrot.slane %v1885_v26, 2 }
 0x2b7   : > { %v1887_v24 = vmax.f32 %v1885_v26, %v1886_v28 }
 0x2b9   : > { %v1888_v18 = vrot.slane %v1887_v24, 1 }
 0x2ba   : > { %v4979_v27 = vpop.f32.mrb[26].mxu1 }
 0x2bb   : > { %v4981_v56 = vpop.f32.mrb[27].mxu1  ;;  %v1895_v30 = vsel %vm1824_vm8, %v4979_v27, -inf }
 0x2bc   : > { %v1893_v61 = vsel %vm1824_vm8, %v4981_v56, -inf }
 0x2bd   : > { %v1894_v38 = vmax.f32 %v1892_v5, %v1893_v61 }
 0x2bf   : > { %v1896_v34 = vmax.f32 %v1894_v38, %v1895_v30 }
 0x2c2   : > { %v4991_v22 = vpop.f32.mrb[28].mxu1 }
 0x2c3   : > { %v1904_v40 = vsel %vm1824_vm8, %v4991_v22, -inf  ;;  %v4995_v37 = vpop.f32.mrb[29].mxu1 }
 0x2c4   : > { %v1903_v54 = vsel %vm1824_vm8, %v4995_v37, -inf }
 0x2c5   : > { %v1905_v4 = vmax.f32 %v1903_v54, %v1904_v40 }
 0x2ca   : > { %v4999_v35 = vpop.f32.mrb[30].mxu1 }
 0x2cb   : > { %5674 = vst [vmem:[#allocation51_spill] sm:$0xff] %v4999_v35  ;;  %v5001_v5 = vpop.f32.mrb[31].mxu1  ;;  %v1908_v38 = vsel %vm1824_vm8, %v4999_v35, -inf }
 0x2cc   : > { %v1906_v43 = vsel %vm1824_vm8, %v5001_v5, -inf }
 0x2cd   : > { %v1907_v61 = vmax.f32 %v1905_v4, %v1906_v43  ;;  %v1858_v4 = vrot.slane %v4939_v57, 4  ;;  %v1871_v43 = vrot.slane %v1870_v41, 4 }
 0x2cf   : > { %v1909_v30 = vmax.f32 %v1907_v61, %v1908_v38  ;;  %v1897_v61 = vrot.slane %v1896_v34, 4 }
 0x2d1   : > { %v1910_v38 = vrot.slane %v1909_v30, 4  ;;  %v1898_v45 = vmax.f32 %v1896_v34, %v1897_v61 }
 0x2d2   : > { %v5007_v16 = vpop.f32.mrb[32].mxu1 }
 0x2d3   : > { %5675 = vst [vmem:[#allocation52_spill] sm:$0xff] %v5007_v16  ;;  %v1917_v44 = vsel %vm1824_vm8, %v5007_v16, -inf  ;;  %v5011_v33 = vpop.f32.mrb[33].mxu1  ;;  %v1911_v21 = vmax.f32 %v1909_v30, %v1910_v38  ;;  %v1899_v17 = vrot.slane %v1898_v45, 2 }
 0x2d4   : > { %5676 = vst [vmem:[#allocation53_spill] sm:$0xff] %v5011_v33  ;;  %v1916_v54 = vsel %vm1824_vm8, %v5011_v33, -inf }
 0x2d5   : > { %v1918_v40 = vmax.f32 %v1916_v54, %v1917_v44  ;;  %v1859_v44 = vmax.f32 %v4939_v57, %v1858_v4  ;;  %v1872_v54 = vmax.f32 %v1870_v41, %v1871_v43  ;;  %v1912_v2 = vrot.slane %v1911_v21, 2 }
 0x2d6   : > { %v1835_v4 = vmax.f32 %v1833_v9, %v1834_v50  ;;  %v1848_v43 = vmax.f32 %v1846_v15, %v1847_v23  ;;  %v1900_v34 = vmax.f32 %v1898_v45, %v1899_v17  ;;  %v1889_v15 = vmax.f32 %v1887_v24, %v1888_v18 }
 0x2d7   : > { %v1860_v13 = vrot.slane %v1859_v44, 2  ;;  %v1873_v55 = vrot.slane %v1872_v54, 2 }
 0x2d8   : > { %v1836_v61 = vrot.slane %v1835_v4, 1 }
 0x2d9   : > { %v1861_v19 = vmax.f32 %v1859_v44, %v1860_v13  ;;  %v1874_v12 = vmax.f32 %v1872_v54, %v1873_v55 }
 0x2da   : > { %v5018_v36 = vpop.f32.mrb[34].mxu1  ;;  %v1837_v33 = vmax.f32 %v1835_v4, %v1836_v61 }
 0x2db   : > { %5677 = vst [vmem:[#allocation54_spill] sm:$0xff] %v5018_v36  ;;  %v5021_v20 = vpop.f32.mrb[35].mxu1  ;;  %v1921_v60 = vsel %vm1824_vm8, %v5018_v36, -inf  ;;  %v1875_v38 = vrot.slane %v1874_v12, 1  ;;  %v1901_v36 = vrot.slane %v1900_v34, 1 }
 0x2dc   : > { %5678 = vst [vmem:[#allocation55_spill] sm:$0xff] %v5021_v20  ;;  %v1919_v25 = vsel %vm1824_vm8, %v5021_v20, -inf }
 0x2dd   : > { %v1920_v11 = vmax.f32 %v1918_v40, %v1919_v25  ;;  %v1913_v25 = vmax.f32 %v1911_v21, %v1912_v2  ;;  %v1876_v50 = vmax.f32 %v1874_v12, %v1875_v38  ;;  %v1902_v9 = vmax.f32 %v1900_v34, %v1901_v36 }
 0x2df   : > { %v1922_v3 = vmax.f32 %v1920_v11, %v1921_v60  ;;  %v1849_v60 = vrot.slane %v1848_v43, 1  ;;  %v1862_v11 = vrot.slane %v1861_v19, 1  ;;  %v1914_v20 = vrot.slane %v1913_v25, 1 }
 0x2e1   : > { %v1923_v57 = vrot.slane %v1922_v3, 4  ;;  %v1850_v35 = vmax.f32 %v1848_v43, %v1849_v60  ;;  %v1915_v55 = vmax.f32 %v1913_v25, %v1914_v20 }
 0x2e3   : > { %v1924_v41 = vmax.f32 %v1922_v3, %v1923_v57  ;;  %v1863_v3 = vmax.f32 %v1861_v19, %v1862_v11 }
 0x2e5   : > { %v1925_v30 = vrot.slane %v1924_v41, 2 }
 0x2e7   : > { %v1926_v40 = vmax.f32 %v1924_v41, %v1925_v30 }
 0x2e9   : > { %v1927_v16 = vrot.slane %v1926_v40, 1 }
 0x2eb   : > { %v1928_v26 = vmax.f32 %v1926_v40, %v1927_v16 }
 0x2ed   : > { %v5029_v45 = vpop.f32.mrb[36].mxu1 }
 0x2ee   : > { %v1930_v21 = vrot.slane %v5029_v45, 1  ;;  %v1931_v28 = vrot.slane %v5029_v45, 2  ;;  %v1932_v44 = vrot.slane %v5029_v45, 3  ;;  %v1933_v54 = vrot.slane %v5029_v45, 4  ;;  %v3527_v23 = vpop.f32.mrb[37].mxu1 }
 0x2ef   : > { %v1934_v13 = vrot.slane %v5029_v45, 5  ;;  %v1935_v19 = vrot.slane %v5029_v45, 6  ;;  %v1936_v18 = vrot.slane %v5029_v45, 7  ;;  %v5039_v20 = vmax.f32 %v1837_v33, %v5029_v45 }
 0x2f0   : > { %v5041_v36 = vmax.f32 %v1850_v35, %v1930_v21  ;;  %v5043_v16 = vmax.f32 %v1863_v3, %v1931_v28  ;;  %v5045_v17 = vmax.f32 %v1876_v50, %v1932_v44  ;;  %v5047_v2 = vmax.f32 %v1889_v15, %v1933_v54 }
 0x2f1   : > { %v5049_v57 = vmax.f32 %v1902_v9, %v1934_v13  ;;  %v5051_v41 = vmax.f32 %v1915_v55, %v1935_v19  ;;  %v5053_v4 = vmax.f32 %v1928_v26, %v1936_v18  ;;  %v1956_v43 = vrot.slane %v5039_v20, %v4674_v46 }
 0x2f2   : > { %v1960_v33 = vrot.slane %v5041_v36, %v4674_v46  ;;  %v1964_v35 = vrot.slane %v5043_v16, %v4674_v46  ;;  %v1968_v12 = vrot.slane %v5045_v17, %v4674_v46  ;;  %v5065_v24 = vrot.slane %v5047_v2, %v4674_v46 }
 0x2f3   : > { %v5069_v34 = vrot.slane %v5049_v57, %v4674_v46  ;;  %v5073_v25 = vrot.slane %v5051_v41, %v4674_v46  ;;  %v5077_v30 = vrot.slane %v5053_v4, %v4674_v46  ;;  %v1985_v40 = vsub.f32 %v4889_v29, %v1956_v43 }
 0x2f4   : > { %v1986_v61 = vsub.f32 %v4885_v31, %v1956_v43  ;;  %v1987_v60 = vsub.f32 %v4895_v10, %v1956_v43  ;;  %v1988_v11 = vsub.f32 %v4893_v32, %v1956_v43  ;;  %v1989_v38 = vsub.f32 %v4907_v53, %v1960_v33 }
 0x2f5   : > { %v1990_v3 = vsub.f32 %v4901_v59, %v1960_v33  ;;  %v1991_v50 = vsub.f32 %v4913_v62, %v1960_v33  ;;  %v1992_v15 = vsub.f32 %v4911_v42, %v1960_v33  ;;  %v1993_v9 = vsub.f32 %v4925_v39, %v1964_v35 }
 0x2f6   : > { %v1994_v55 = vsub.f32 %v4919_v51, %v1964_v35  ;;  %v1995_v29 = vsub.f32 %v4931_v6, %v1964_v35  ;;  %v1996_v31 = vsub.f32 %v4929_v49, %v1964_v35  ;;  %v1997_v10 = vsub.f32 %v4943_v7, %v1968_v12 }
 0x2f7   : > { %v1998_v32 = vsub.f32 %v4937_v8, %v1968_v12  ;;  %v1999_v53 = vsub.f32 %v4949_v58, %v1968_v12  ;;  %v2000_v59 = vsub.f32 %v4947_v1, %v1968_v12  ;;  %v2001_v62 = vsub.f32 %v4959_v0, %v5065_v24 }
 0x2f8   : > { %v2002_v42 = vsub.f32 %v4955_v63, %v5065_v24  ;;  %v2003_v51 = vsub.f32 %v4965_v48, %v5065_v24  ;;  %v2004_v39 = vsub.f32 %v4963_v52, %v5065_v24  ;;  %v2005_v49 = vsub.f32 %v4975_v47, %v5069_v34  ;;  %v5679_v47 = vld [vmem:[#allocation51_spill] sm:$0xff] }
 0x2f9   : > { %v2006_v6 = vsub.f32 %v4971_v14, %v5069_v34  ;;  %v2007_v8 = vsub.f32 %v4981_v56, %v5069_v34  ;;  %v2008_v0 = vsub.f32 %v4979_v27, %v5069_v34  ;;  %v2009_v7 = vsub.f32 %v4995_v37, %v5073_v25  ;;  %v5680_v14 = vld [vmem:[#allocation53_spill] sm:$0xff]  ;;  %v5681_v56 = vld [vmem:[#allocation52_spill] sm:$0xff]  ;;  %v5682_v27 = vld [vmem:[#allocation55_spill] sm:$0xff] }
 0x2fa   : > { %v2010_v48 = vsub.f32 %v4991_v22, %v5073_v25  ;;  %v2011_v52 = vsub.f32 %v5001_v5, %v5073_v25  ;;  %v2012_v1 = vsub.f32 %v5679_v47, %v5073_v25  ;;  %v2013_v58 = vsub.f32 %v5680_v14, %v5077_v30  ;;  %v5683_v37 = vld [vmem:[#allocation54_spill] sm:$0xff] }
 0x2fb   : > { %v2014_v63 = vsub.f32 %v5681_v56, %v5077_v30  ;;  %v2015_v26 = vsub.f32 %v5682_v27, %v5077_v30  ;;  %v2016_v21 = vsub.f32 %v5683_v37, %v5077_v30  ;;  %v2017_v28 = vmul.f32 1.442695, %v1985_v40 }
 0x2fc   : > { %v2019_v22 = vmul.f32 1.442695, %v1986_v61  ;;  %v2021_v44 = vmul.f32 1.442695, %v1987_v60  ;;  %v2023_v54 = vmul.f32 1.442695, %v1988_v11 }
 0x2fd   : > { %3817 = vpow2.f32 %v2017_v28  ;;  %v2025_v5 = vmul.f32 1.442695, %v1989_v38  ;;  %v2027_v23 = vmul.f32 1.442695, %v1990_v3  ;;  %v2029_v13 = vmul.f32 1.442695, %v1991_v50 }
 0x2fe   : > { %3819 = vpow2.f32 %v2019_v22  ;;  %v2031_v19 = vmul.f32 1.442695, %v1992_v15  ;;  %v2033_v18 = vmul.f32 1.442695, %v1993_v9  ;;  %v2035_v43 = vmul.f32 1.442695, %v1994_v55 }
 0x2ff   : > { %3821 = vpow2.f32 %v2021_v44  ;;  %v2037_v33 = vmul.f32 1.442695, %v1995_v29  ;;  %v2039_v35 = vmul.f32 1.442695, %v1996_v31  ;;  %v2041_v12 = vmul.f32 1.442695, %v1997_v10 }
 0x300   : > { %3823 = vpow2.f32 %v2023_v54  ;;  %v2043_v24 = vmul.f32 1.442695, %v1998_v32  ;;  %v2045_v34 = vmul.f32 1.442695, %v1999_v53  ;;  %v2047_v40 = vmul.f32 1.442695, %v2000_v59 }
 0x301   : > { %3825 = vpow2.f32 %v2025_v5  ;;  %v2049_v61 = vmul.f32 1.442695, %v2001_v62  ;;  %v2051_v60 = vmul.f32 1.442695, %v2002_v42  ;;  %v2053_v11 = vmul.f32 1.442695, %v2003_v51 }
 0x302   : > { %3827 = vpow2.f32 %v2027_v23  ;;  %v2055_v38 = vmul.f32 1.442695, %v2004_v39  ;;  %v2057_v3 = vmul.f32 1.442695, %v2005_v49  ;;  %v2059_v50 = vmul.f32 1.442695, %v2006_v6 }
 0x303   : > { %3829 = vpow2.f32 %v2029_v13  ;;  %v5127_v15 = vmul.f32 1.442695, %v2007_v8  ;;  %v5129_v9 = vmul.f32 1.442695, %v2008_v0  ;;  %v5131_v55 = vmul.f32 1.442695, %v2009_v7 }
 0x304   : > { %3831 = vpow2.f32 %v2031_v19  ;;  %v2089_v29 = vrot.slane %v5041_v36, 7  ;;  %v2091_v31 = vrot.slane %v5043_v16, 6  ;;  %v5137_v32 = vmul.f32 1.442695, %v2010_v48 }
 0x305   : > { %3833 = vpow2.f32 %v2033_v18  ;;  %v5139_v53 = vmul.f32 1.442695, %v2011_v52  ;;  %v2093_v59 = vrot.slane %v5045_v17, 5  ;;  %v2095_v51 = vrot.slane %v5047_v2, 4 }
 0x306   : > { %3835 = vpow2.f32 %v2035_v43  ;;  %v2090_v42 = vsel %vm1262_vm1, %v2089_v29, %v5039_v20  ;;  %v2097_v36 = vrot.slane %v5049_v57, 3  ;;  %v2099_v2 = vrot.slane %v5051_v41, 2 }
 0x307   : > { %v5135_v10 = vpop.eup %3817  ;;  %3837 = vpow2.f32 %v2037_v33  ;;  %v2092_v39 = vsel %vm1264_vm2, %v2091_v31, %v2090_v42  ;;  %v2101_v7 = vrot.slane %v5053_v4, 1  ;;  %v2071_v33 = vmul.f32 1.442695, %v2012_v1 }
 0x308   : > { %v5142_v62 = vpop.eup %3819  ;;  %3839 = vpow2.f32 %v2039_v35  ;;  %v2107_v49 = vsel %vm1824_vm8, %v5135_v10, 0.0  ;;  %v2094_v20 = vsel %vm1266_vm3, %v2093_v59, %v2092_v39  ;;  %v2073_v25 = vmul.f32 1.442695, %v2013_v58 }
 0x309   : > { %v5148_v16 = vpop.eup %3821  ;;  %3841 = vpow2.f32 %v2041_v12  ;;  %v2108_v17 = vsel %vm1824_vm8, %v5142_v62, 0.0  ;;  %v2096_v0 = vsel %vm1268_vm4, %v2095_v51, %v2094_v20  ;;  %v2075_v14 = vmul.f32 1.442695, %v2014_v63 }
 0x30a   : > { %v5155_v6 = vpop.eup %3823  ;;  %3843 = vpow2.f32 %v2043_v24  ;;  %v2109_v8 = vadd.f32 %v2108_v17, %v2107_v49  ;;  %v2110_v48 = vsel %vm1824_vm8, %v5148_v16, 0.0  ;;  %v2098_v28 = vsel %vm1270_vm5, %v2097_v36, %v2096_v0 }
 0x30b   : > { %v5159_v57 = vpop.eup %3825  ;;  %3845 = vpow2.f32 %v2045_v34  ;;  %v2100_v54 = vsel %vm1272_vm6, %v2099_v2, %v2098_v28  ;;  %v2112_v4 = vsel %vm1824_vm8, %v5155_v6, 0.0  ;;  %v2077_v58 = vmul.f32 1.442695, %v2015_v26 }
 0x30c   : > { %v5165_v52 = vpop.eup %3827  ;;  %3847 = vpow2.f32 %v2047_v40  ;;  %v2111_v22 = vadd.f32 %v2110_v48, %v2109_v8  ;;  %v2120_v41 = vsel %vm1824_vm8, %v5159_v57, 0.0  ;;  %v5180_v13 = vsel %vm1274_vm7, %v2101_v7, %v2100_v54 }
 0x30d   : > { %v5170_v44 = vpop.eup %3829  ;;  %3849 = vpow2.f32 %v2049_v61  ;;  %v2121_v5 = vsel %vm1824_vm8, %v5165_v52, 0.0  ;;  %v2104_v35 = vsub.f32 %v5029_v45, %v5180_v13 }
 0x30e   : > { %v5177_v23 = vpop.eup %3831  ;;  %3851 = vpow2.f32 %v2051_v60  ;;  %v2113_v19 = vadd.f32 %v2112_v4, %v2111_v22  ;;  %v2122_v18 = vadd.f32 %v2121_v5, %v2120_v41  ;;  %v2123_v12 = vsel %vm1824_vm8, %v5170_v44, 0.0 }
 0x30f   : > { %v5182_v43 = vpop.eup %3833  ;;  %3853 = vpow2.f32 %v2053_v11  ;;  %v2125_v47 = vsel %vm1824_vm8, %v5177_v23, 0.0 }
 0x310   : > { %v5191_v24 = vpop.eup %3835  ;;  %3855 = vpow2.f32 %v2055_v38  ;;  %v2114_v34 = vrot.slane %v2113_v19, 4  ;;  %v2124_v40 = vadd.f32 %v2123_v12, %v2122_v18  ;;  %v2133_v61 = vsel %vm1824_vm8, %v5182_v43, 0.0 }
 0x311   : > { %v5195_v60 = vpop.eup %3837  ;;  %3857 = vpow2.f32 %v2057_v3  ;;  %v2134_v1 = vsel %vm1824_vm8, %v5191_v24, 0.0 }
 0x312   : > { %v5204_v11 = vpop.eup %3839  ;;  %3859 = vpow2.f32 %v2059_v50  ;;  %v2115_v38 = vadd.f32 %v2114_v34, %v2113_v19  ;;  %v2126_v29 = vadd.f32 %v2125_v47, %v2124_v40  ;;  %v2135_v31 = vadd.f32 %v2134_v1, %v2133_v61 }
 0x313   : > { %v5206_v59 = vpop.eup %3841  ;;  %3861 = vpow2.f32 %v5127_v15  ;;  %v2136_v3 = vsel %vm1824_vm8, %v5195_v60, 0.0  ;;  %v2138_v56 = vsel %vm1824_vm8, %v5204_v11, 0.0 }
 0x314   : > { %v5217_v42 = vpop.eup %3843  ;;  %3863 = vpow2.f32 %v5129_v9  ;;  %v2116_v50 = vrot.slane %v2115_v38, 2  ;;  %v2127_v51 = vrot.slane %v2126_v29, 4  ;;  %v2137_v36 = vadd.f32 %v2136_v3, %v2135_v31 }
 0x315   : > { %v5220_v39 = vpop.eup %3845  ;;  %3865 = vpow2.f32 %v5131_v55  ;;  %v2146_v63 = vsel %vm1824_vm8, %v5206_v59, 0.0  ;;  %v2147_v27 = vsel %vm1824_vm8, %v5217_v42, 0.0  ;;  %v2079_v55 = vmul.f32 1.442695, %v2016_v21 }
 0x316   : > { %v5229_v26 = vpop.eup %3847  ;;  %3867 = vpow2.f32 %v5137_v32  ;;  %v2117_v15 = vadd.f32 %v2116_v50, %v2115_v38  ;;  %v2128_v9 = vadd.f32 %v2127_v51, %v2126_v29  ;;  %v2139_v49 = vadd.f32 %v2138_v56, %v2137_v36 }
 0x317   : > { %v5232_v17 = vpop.eup %3849  ;;  %3869 = vpow2.f32 %v5139_v53  ;;  %v2148_v20 = vadd.f32 %v2147_v27, %v2146_v63  ;;  %v2149_v2 = vsel %vm1824_vm8, %v5220_v39, 0.0  ;;  %v2151_v41 = vsel %vm1824_vm8, %v5229_v26, 0.0 }
 0x318   : > { %v5240_v8 = vpop.eup %3851  ;;  %3871 = vpow2.f32 %v2071_v33  ;;  %v2118_v0 = vrot.slane %v2117_v15, 1  ;;  %v2129_v32 = vrot.slane %v2128_v9, 2  ;;  %v2140_v7 = vrot.slane %v2139_v49, 4 }
 0x319   : > { %v5242_v48 = vpop.eup %3853  ;;  %3873 = vpow2.f32 %v2073_v25  ;;  %v2150_v28 = vadd.f32 %v2149_v2, %v2148_v20  ;;  %v2159_v53 = vsel %vm1824_vm8, %v5232_v17, 0.0  ;;  %v2160_v30 = vsel %vm1824_vm8, %v5240_v8, 0.0 }
 0x31a   : > { %v5248_v37 = vpop.eup %3855  ;;  %3875 = vpow2.f32 %v2075_v14  ;;  %v2130_v21 = vadd.f32 %v2129_v32, %v2128_v9  ;;  %v2141_v22 = vadd.f32 %v2140_v7, %v2139_v49  ;;  %v2161_v5 = vadd.f32 %v2160_v30, %v2159_v53 }
 0x31b   : > { %v5252_v54 = vpop.eup %3857  ;;  %3877 = vpow2.f32 %v2077_v58  ;;  %v2152_v4 = vadd.f32 %v2151_v41, %v2150_v28  ;;  %v2162_v12 = vsel %vm1824_vm8, %v5242_v48, 0.0  ;;  %v2119_v40 = vadd.f32 %v2118_v0, %v2117_v15 }
 0x31c   : > { %v5254_v19 = vpop.eup %3859  ;;  %3879 = vpow2.f32 %v2079_v55  ;;  %v2131_v18 = vrot.slane %v2130_v21, 1  ;;  %v2142_v33 = vrot.slane %v2141_v22, 2  ;;  %v2163_v25 = vadd.f32 %v2162_v12, %v2161_v5 }
 0x31d   : > { %v5258_v34 = vpop.eup %3861  ;;  %v2153_v61 = vrot.slane %v2152_v4, 4  ;;  %v2172_v47 = vsel %vm1824_vm8, %v5252_v54, 0.0  ;;  %v2164_v31 = vsel %vm1824_vm8, %v5248_v37, 0.0  ;;  %v2173_v14 = vsel %vm1824_vm8, %v5254_v19, 0.0 }
 0x31e   : > { %v5262_v1 = vpop.eup %3863  ;;  %v2132_v38 = vadd.f32 %v2131_v18, %v2130_v21  ;;  %v2143_v29 = vadd.f32 %v2142_v33, %v2141_v22  ;;  %v2165_v50 = vadd.f32 %v2164_v31, %v2163_v25  ;;  %v2174_v51 = vadd.f32 %v2173_v14, %v2172_v47 }
 0x31f   : > { %v5268_v58 = vpop.eup %3865  ;;  %v2154_v3 = vadd.f32 %v2153_v61, %v2152_v4  ;;  %v2175_v63 = vsel %vm1824_vm8, %v5258_v34, 0.0  ;;  %v2177_v7 = vsel %vm1824_vm8, %v5262_v1, 0.0 }
 0x320   : > { %v5270_v36 = vpop.eup %3867  ;;  %v2144_v56 = vrot.slane %v2143_v29, 1  ;;  %v2185_v27 = vsel %vm1824_vm8, %v5268_v58, 0.0  ;;  %v2219_v15 = vsel %vm1262_vm1, %v2132_v38, %v2119_v40  ;;  %v2166_v55 = vrot.slane %v2165_v50, 4 }
 0x321   : > { %v5277_v9 = vpop.eup %3869  ;;  %v2155_v49 = vrot.slane %v2154_v3, 2  ;;  %v2176_v20 = vadd.f32 %v2175_v63, %v2174_v51  ;;  %v2186_v2 = vsel %vm1824_vm8, %v5270_v36, 0.0 }
 0x322   : > { %v5281_v0 = vpop.eup %3871  ;;  %v2145_v32 = vadd.f32 %v2144_v56, %v2143_v29  ;;  %v2187_v28 = vadd.f32 %v2186_v2, %v2185_v27  ;;  %v2167_v21 = vadd.f32 %v2166_v55, %v2165_v50  ;;  %v2188_v41 = vsel %vm1824_vm8, %v5277_v9, 0.0 }
 0x323   : > { %v5285_v53 = vpop.eup %3873  ;;  %v2156_v30 = vadd.f32 %v2155_v49, %v2154_v3  ;;  %v2178_v22 = vadd.f32 %v2177_v7, %v2176_v20  ;;  %v2190_v18 = vsel %vm1824_vm8, %v5281_v0, 0.0  ;;  %v2105_v2 = vmul.f32 1.442695, %v2104_v35 }
 0x324   : > { %v5289_v4 = vpop.eup %3875  ;;  %v2189_v5 = vadd.f32 %v2188_v41, %v2187_v28  ;;  %v2198_v33 = vsel %vm1824_vm8, %v5285_v53, 0.0  ;;  %v2220_v12 = vsel %vm1264_vm2, %v2145_v32, %v2219_v15  ;;  %v2168_v25 = vrot.slane %v2167_v21, 2 }
 0x325   : > { %v5296_v40 = vpop.eup %3877  ;;  %v2157_v61 = vrot.slane %v2156_v30, 1  ;;  %v2179_v47 = vrot.slane %v2178_v22, 4  ;;  %v2199_v38 = vsel %vm1824_vm8, %v5289_v4, 0.0  ;;  %3881 = vpow2.f32 %v2105_v2 }
 0x326   : > { %v5300_v29 = vpop.eup %3879  ;;  %v2191_v31 = vadd.f32 %v2190_v18, %v2189_v5  ;;  %v2200_v14 = vadd.f32 %v2199_v38, %v2198_v33  ;;  %v2169_v50 = vadd.f32 %v2168_v25, %v2167_v21  ;;  %v2201_v56 = vsel %vm1824_vm8, %v5296_v40, 0.0 }
 0x327   : > { %v2158_v3 = vadd.f32 %v2157_v61, %v2156_v30  ;;  %v2180_v51 = vadd.f32 %v2179_v47, %v2178_v22  ;;  %v2203_v55 = vsel %vm1824_vm8, %v5300_v29, 0.0  ;;  %v5685_v2 = vmov 0.0  }
 0x328   : > { %v2192_v63 = vrot.slane %v2191_v31, 4  ;;  %v2202_v27 = vadd.f32 %v2201_v56, %v2200_v14  ;;  %v2170_v15 = vrot.slane %v2169_v50, 1 }
 0x329   : > { %v2181_v49 = vrot.slane %v2180_v51, 2  ;;  %v2221_v20 = vsel %vm1266_vm3, %v2158_v3, %v2220_v12 }
 0x32a   : > { %v2193_v32 = vadd.f32 %v2192_v63, %v2191_v31  ;;  %v2204_v7 = vadd.f32 %v2203_v55, %v2202_v27  ;;  %v2171_v28 = vadd.f32 %v2170_v15, %v2169_v50  ;;  %v5684_v63 = vld [vmem:[#allocation23_spill] sm:$0xff] }
 0x32b   : > { %v2182_v30 = vadd.f32 %v2181_v49, %v2180_v51 }
 0x32c   : > { %v2194_v21 = vrot.slane %v2193_v32, 2  ;;  %v2205_v22 = vrot.slane %v2204_v7, 4  ;;  %v2222_v5 = vsel %vm1268_vm4, %v2171_v28, %v2221_v20 }
 0x32d   : > { %v2183_v41 = vrot.slane %v2182_v30, 1 }
 0x32e   : > { %v2195_v18 = vadd.f32 %v2194_v21, %v2193_v32  ;;  %v2206_v33 = vadd.f32 %v2205_v22, %v2204_v7 }
 0x32f   : > { %v2184_v61 = vadd.f32 %v2183_v41, %v2182_v30  ;;  %v3882_v14 = vpop.eup %3881 }
 0x330   : > { %v2196_v25 = vrot.slane %v2195_v18, 1  ;;  %v2207_v47 = vrot.slane %v2206_v33, 2 }
 0x331   : > { %v2223_v12 = vsel %vm1270_vm5, %v2184_v61, %v2222_v5 }
 0x332   : > { %v2197_v38 = vadd.f32 %v2196_v25, %v2195_v18  ;;  %v2208_v45 = vadd.f32 %v2207_v47, %v2206_v33 }
 0x334   : > { %v2209_v13 = vrot.slane %v2208_v45, 1  ;;  %v2224_v35 = vsel %vm1272_vm6, %v2197_v38, %v2223_v12 }
 0x336   : > { %v2210_v31 = vadd.f32 %v2209_v13, %v2208_v45 }
 0x338   : > { %v2225_v3 = vsel %vm1274_vm7, %v2210_v31, %v2224_v35 }
 0x339   : > { %v2227_v50 = vadd.f32 %v3882_v14, %v2225_v3 }
 0x33b   : > { %3883 = vrcp.f32 %v2227_v50 }
 0x345   : > { %v3884_v51 = vpop.eup %3883 }
 0x346   : > { %v2351_v56 = vmul.f32 %v3884_v51, %v3882_v14  ;;  %v2237_v27 = vrot.slane %v3884_v51, %v5684_v63  ;;  %v2230_v15 = vcombine.high %v3884_v51, %v3884_v51 }
 0x348   : > { %3581 = vmatmul.mubr.msk.f32.vlgmr.msra.gmra.mrb[64].mxu0 %vm1824_vm8, %v2351_v56  ;;  %v2253_v49 = vrot.slane %v2237_v27, %v5684_v63  ;;  %v2245_v55 = vcombine.high %v2237_v27, %v2237_v27  ;;  %v2244_v20 = vrot.slane %v2230_v15, %v5684_v63 }
 0x349   : > { %3599 = vmatprep.mubr.msk.bf16.mxu0 %vm4085_vm0, %v5685_v2 }
 0x34a   : > { %v2282_v32 = vrot.slane %v2253_v49, %v4674_v46  ;;  %v2267_v7 = vrot.slane %v2245_v55, %v5684_v63  ;;  %v2275_v28 = vcombine.high %v2253_v49, %v2253_v49  ;;  %v2260_v30 = vrot.slane %v2244_v20, %v5684_v63  ;;  %v5405_v49 = vld [vmem:[#allocation7 + $0x18] sm:$0xff]  ;;  %v5407_v55 = vld [vmem:[#allocation7 + $0x8] sm:$0xff] }
 0x34b   : > { %v2246_v21 = vcombine.high %v2244_v20, %v2244_v20  ;;  %v5687_v20 = vld [vmem:[#allocation18_spill] sm:$0xff] }
 0x34c   : > { %v2319_v22 = vmul.f32 %v5135_v10, %v2282_v32  ;;  %v2320_v41 = vmul.f32 %v5142_v62, %v2282_v32  ;;  %v2321_v5 = vmul.f32 %v5148_v16, %v2282_v32  ;;  %v2322_v18 = vmul.f32 %v5155_v6, %v2282_v32 }
 0x34d   : > { %v2286_v33 = vrot.slane %v2267_v7, %v4674_v46  ;;  %v2290_v61 = vrot.slane %v2275_v28, %v4674_v46  ;;  %v2277_v25 = vcombine.high %v2267_v7, %v2267_v7  ;;  %v2298_v47 = vrot.slane %v2260_v30, %v4674_v46  ;;  %v5688_v7 = vld [vmem:[#allocation17_spill] sm:$0xff] }
 0x34e   : > { %3530 = vmatprep.mubr.msk.f32.mxu1 %vm1824_vm8, %v2319_v22  ;;  %v2274_v12 = vrot.slane %v2246_v21, %v5684_v63  ;;  %v2276_v38 = vcombine.high %v2260_v30, %v2260_v30  ;;  %v5686_v63 = vld [vmem:[#allocation50_spill] sm:$0xff]  ;;  %v1042_v32 = vadd.f32 %v5405_v49, %v5687_v20  ;;  %v1040_v28 = vadd.f32 %v5407_v55, %v5688_v7 }
 0x34f   : > { %3531 = vmatmul.mubr.msk.f32.vlgmr.msra.gmra.mrb[38].mxu1 %vm1824_vm8, %v2320_v41  ;;  %v2323_v10 = vmul.f32 %v5159_v57, %v2286_v33  ;;  %v2324_v62 = vmul.f32 %v5165_v52, %v2286_v33  ;;  %v2325_v16 = vmul.f32 %v5170_v44, %v2286_v33  ;;  %v2326_v6 = vmul.f32 %v5177_v23, %v2286_v33  ;;  %v5413_v30 = vld [vmem:[#allocation7 + $0x38] sm:$0xff] }
 0x350   : > { %3533 = vmatprep.mubr.msk.f32.mxu1 %vm1824_vm8, %v2321_v5  ;;  %v2327_v45 = vmul.f32 %v5182_v43, %v2290_v61  ;;  %v2328_v13 = vmul.f32 %v5191_v24, %v2290_v61  ;;  %v2329_v35 = vmul.f32 %v5195_v60, %v2290_v61  ;;  %v2330_v31 = vmul.f32 %v5204_v11, %v2290_v61  ;;  %v5690_v61 = vld [vmem:[#allocation19_spill] sm:$0xff] }
 0x351   : > { %v2294_v14 = vrot.slane %v2277_v25, %v4674_v46  ;;  %v2335_v57 = vmul.f32 %v5232_v17, %v2298_v47  ;;  %v2336_v52 = vmul.f32 %v5240_v8, %v2298_v47  ;;  %v2337_v44 = vmul.f32 %v5242_v48, %v2298_v47 }
 0x352   : > { %v2338_v23 = vmul.f32 %v5248_v37, %v2298_v47  ;;  %v2302_v3 = vrot.slane %v2274_v12, %v4674_v46  ;;  %v2306_v43 = vrot.slane %v2276_v38, %v4674_v46  ;;  %v2278_v50 = vcombine.high %v2274_v12, %v2274_v12 }
 0x353   : > { %3534 = vmatmul.mubr.msk.f32.gmra.mrb[40].mxu1 %vm1824_vm8, %v2322_v18  ;;  %v2331_v24 = vmul.f32 %v5206_v59, %v2294_v14  ;;  %v2332_v60 = vmul.f32 %v5217_v42, %v2294_v14  ;;  %v2333_v11 = vmul.f32 %v5220_v39, %v2294_v14  ;;  %v2334_v17 = vmul.f32 %v5229_v26, %v2294_v14  ;;  %v5689_v18 = vld [vmem:[#allocation20_spill] sm:$0xff] }
 0x354   : > { %3536 = vmatprep.mubr.msk.f32.mxu1 %vm1824_vm8, %v2323_v10  ;;  %v2339_v8 = vmul.f32 %v5252_v54, %v2302_v3  ;;  %v2340_v48 = vmul.f32 %v5254_v19, %v2302_v3  ;;  %v2341_v37 = vmul.f32 %v5258_v34, %v2302_v3  ;;  %v2342_v51 = vmul.f32 %v5262_v1, %v2302_v3 }
 0x355   : > { %v2343_v56 = vmul.f32 %v5268_v58, %v2306_v43  ;;  %v2344_v59 = vmul.f32 %v5270_v36, %v2306_v43  ;;  %v2345_v42 = vmul.f32 %v5277_v9, %v2306_v43  ;;  %v2346_v39 = vmul.f32 %v5281_v0, %v2306_v43  ;;  %v3794_v58 = vld [vmem:[#allocation8 + $0x8] sm:$0xff]   ;;  %v3795_v36 = vld [vmem:[#allocation8 + $0x10] sm:$0xff]   ;;  %v3796_v9 = vld [vmem:[#allocation8 + $0x18] sm:$0xff]  }
 0x356   : > { %v2310_v26 = vrot.slane %v2278_v50, %v4674_v46  ;;  %v3793_v46 = vld [vmem:[#allocation8] sm:$0xff]   ;;  %v1046_v33 = vadd.f32 %v5413_v30, %v5689_v18  ;;  %v5694_v43 = vld [vmem:[#allocation24_spill] sm:$0xff] }
 0x357   : > { %3537 = vmatmul.mubr.msk.f32.gmra.mrb[42].mxu1 %vm1824_vm8, %v2324_v62  ;;  %3584 = vmatpush3.bf16.msra.mxu0 %v3793_v46  ;;  %v3797_v0 = vld [vmem:[#allocation8 + $0x20] sm:$0xff]  }
 0x358   : > { %3539 = vmatprep.mubr.msk.f32.mxu1 %vm1824_vm8, %v2325_v16  ;;  %v2347_v54 = vmul.f32 %v5285_v53, %v2310_v26  ;;  %v2348_v19 = vmul.f32 %v5289_v4, %v2310_v26  ;;  %v2349_v34 = vmul.f32 %v5296_v40, %v2310_v26  ;;  %v2350_v1 = vmul.f32 %v5300_v29, %v2310_v26  ;;  %v3798_v53 = vld [vmem:[#allocation8 + $0x28] sm:$0xff]   ;;  %v3799_v4 = vld [vmem:[#allocation8 + $0x30] sm:$0xff]   ;;  %v3800_v40 = vld [vmem:[#allocation8 + $0x38] sm:$0xff]  }
 0x359   : > { %3585 = vmatprep.subr.bf16.mxu0 %v5685_v2  ;;  %v5691_v16 = vld [vmem:[#allocation22_spill] sm:$0xff] }
 0x35b   : > { %3540 = vmatmul.mubr.msk.f32.gmra.mrb[44].mxu1 %vm1824_vm8, %v2326_v6  ;;  %3586 = vmatpush3.bf16.msra.mxu0 %v3794_v58  ;;  %v1050_v6 = vadd.f32 %v5405_v49, %v5691_v16  ;;  %v5701_v16 = vld [vmem:[#allocation33_spill] sm:$0xff] }
 0x35c   : > { %3542 = vmatprep.mubr.msk.f32.mxu1 %vm1824_vm8, %v2327_v45  ;;  %3587 = vmatprep.subr.bf16.mxu0 %v5685_v2  ;;  %v5692_v45 = vld [vmem:[#allocation21_spill] sm:$0xff] }
 0x35f   : > { %3543 = vmatmul.mubr.msk.f32.gmra.mrb[46].mxu1 %vm1824_vm8, %v2328_v13  ;;  %3588 = vmatpush3.bf16.msra.mxu0 %v3795_v36  ;;  %v1048_v13 = vadd.f32 %v5407_v55, %v5692_v45  ;;  %v5697_v36 = vld [vmem:[#allocation29_spill] sm:$0xff]  ;;  %v5702_v45 = vld [vmem:[#allocation32_spill] sm:$0xff] }
 0x360   : > { %3545 = vmatprep.mubr.msk.f32.mxu1 %vm1824_vm8, %v2329_v35  ;;  %3589 = vmatprep.subr.bf16.mxu0 %v5685_v2 }
 0x363   : > { %3546 = vmatmul.mubr.msk.f32.gmra.mrb[48].mxu1 %vm1824_vm8, %v2330_v31  ;;  %3590 = vmatpush3.bf16.msra.mxu0 %v3796_v9  ;;  %v1062_v9 = vadd.f32 %v5413_v30, %v5697_v36 }
 0x364   : > { %3548 = vmatprep.mubr.msk.f32.mxu1 %vm1824_vm8, %v2331_v24  ;;  %3591 = vmatprep.subr.bf16.mxu0 %v5685_v2 }
 0x367   : > { %3549 = vmatmul.mubr.msk.f32.gmra.mrb[50].mxu1 %vm1824_vm8, %v2332_v60  ;;  %3592 = vmatpush3.bf16.msra.mxu0 %v3797_v0  ;;  %v5698_v0 = vld [vmem:[#allocation28_spill] sm:$0xff] }
 0x368   : > { %3551 = vmatprep.mubr.msk.f32.mxu1 %vm1824_vm8, %v2333_v11  ;;  %3593 = vmatprep.subr.bf16.mxu0 %v5685_v2 }
 0x36b   : > { %3552 = vmatmul.mubr.msk.f32.gmra.mrb[52].mxu1 %vm1824_vm8, %v2334_v17  ;;  %3594 = vmatpush3.bf16.msra.mxu0 %v3798_v53 }
 0x36c   : > { %3554 = vmatprep.mubr.msk.f32.mxu1 %vm1824_vm8, %v2335_v57  ;;  %3595 = vmatprep.subr.bf16.mxu0 %v5685_v2 }
 0x36f   : > { %3555 = vmatmul.mubr.msk.f32.gmra.mrb[54].mxu1 %vm1824_vm8, %v2336_v52  ;;  %3596 = vmatpush3.bf16.msra.mxu0 %v3799_v4 }
 0x370   : > { %3557 = vmatprep.mubr.msk.f32.mxu1 %vm1824_vm8, %v2337_v44  ;;  %3597 = vmatprep.subr.bf16.mxu0 %v5685_v2  ;;  %v5415_v2 = vld [vmem:[#allocation7 + $0x28] sm:$0xff] }
 0x371   : > { %v1044_v25 = vadd.f32 %v5415_v2, %v5690_v61  ;;  %v1052_v50 = vadd.f32 %v5415_v2, %v5694_v43  ;;  %v1060_v53 = vadd.f32 %v5415_v2, %v5698_v0 }
 0x373   : > { %3558 = vmatmul.mubr.msk.f32.gmra.mrb[56].mxu1 %vm1824_vm8, %v2338_v23  ;;  %3598 = vmatpush3.bf16.msra.mxu0 %v3800_v40  ;;  %v5693_v23 = vld [vmem:[#allocation25_spill] sm:$0xff] }
 0x374   : > { %3560 = vmatprep.mubr.msk.f32.mxu1 %vm1824_vm8, %v2339_v8  ;;  %v1054_v3 = vadd.f32 %v5413_v30, %v5693_v23 }
 0x377   : > { %3561 = vmatmul.mubr.msk.f32.gmra.mrb[58].mxu1 %vm1824_vm8, %v2340_v48 }
 0x378   : > { %3563 = vmatprep.mubr.msk.f32.mxu1 %vm1824_vm8, %v2341_v37 }
 0x37b   : > { %3564 = vmatmul.mubr.msk.f32.gmra.mrb[60].mxu1 %vm1824_vm8, %v2342_v51  ;;  %v5695_v51 = vld [vmem:[#allocation27_spill] sm:$0xff] }
 0x37c   : > { %3566 = vmatprep.mubr.msk.f32.mxu1 %vm1824_vm8, %v2343_v56  ;;  %v1058_v56 = vadd.f32 %v5405_v49, %v5695_v51 }
 0x37f   : > { %3567 = vmatmul.mubr.msk.f32.gmra.mrb[62].mxu1 %vm1824_vm8, %v2344_v59  ;;  %v5696_v59 = vld [vmem:[#allocation26_spill] sm:$0xff] }
 0x380   : > { %3569 = vmatprep.mubr.msk.f32.mxu1 %vm1824_vm8, %v2345_v42  ;;  %v1056_v42 = vadd.f32 %v5407_v55, %v5696_v59 }
 0x383   : > { %3570 = vmatmul.mubr.msk.f32.gmra.mrb[64].mxu1 %vm1824_vm8, %v2346_v39 }
 0x384   : > { %3572 = vmatprep.mubr.msk.f32.mxu1 %vm1824_vm8, %v2347_v54 }
 0x387   : > { %3573 = vmatmul.mubr.msk.f32.gmra.mrb[66].mxu1 %vm1824_vm8, %v2348_v19 }
 0x388   : > { %3575 = vmatprep.mubr.msk.f32.mxu1 %vm1824_vm8, %v2349_v34 }
 0x38b   : > { %3576 = vmatmul.mubr.msk.f32.gmra.mrb[68].mxu1 %vm1824_vm8, %v2350_v1 }
 0x41b   : > { %v2747_v29 = vpop.f32.mrb[64].mxu0 }
 0x41c   : > { %v5403_v27 = vmul.f32 %v5686_v63, %v2747_v29  ;;  %v3582_v15 = vpop.f32.mrb[65].mxu0 }
 0x422   : > { %v3532_v21 = vpop.f32.mrb[38].mxu1 }
 0x423   : > { %v2752_v22 = vmul.f32 %v3532_v21, %v1042_v32  ;;  %v2519_v41 = vpop.f32.mrb[39].mxu1  ;;  %v5699_v21 = vld [vmem:[#allocation31_spill] sm:$0xff] }
 0x424   : > { %v2751_v5 = vmul.f32 %v2519_v41, %v1040_v28  ;;  %v5700_v41 = vld [vmem:[#allocation30_spill] sm:$0xff] }
 0x426   : > { %v2783_v47 = vadd.f32 %v2752_v22, %v2751_v5  ;;  %v3535_v12 = vpop.f32.mrb[40].mxu1  ;;  %v1066_v22 = vadd.f32 %v5405_v49, %v5699_v21  ;;  %v1064_v5 = vadd.f32 %v5407_v55, %v5700_v41  ;;  %v5707_v21 = vld [vmem:[#allocation38_spill] sm:$0xff]  ;;  %v5708_v41 = vld [vmem:[#allocation39_spill] sm:$0xff] }
 0x427   : > { %v2754_v38 = vmul.f32 %v3535_v12, %v1046_v33  ;;  %v2529_v10 = vpop.f32.mrb[41].mxu1 }
 0x428   : > { %v2753_v62 = vmul.f32 %v2529_v10, %v1044_v25 }
 0x42a   : > { %v2784_v35 = vadd.f32 %v2783_v47, %v2753_v62  ;;  %v3538_v31 = vpop.f32.mrb[42].mxu1 }
 0x42b   : > { %v2756_v14 = vmul.f32 %v3538_v31, %v1050_v6  ;;  %v2539_v57 = vpop.f32.mrb[43].mxu1  ;;  %v1070_v6 = vadd.f32 %v5413_v30, %v5701_v16 }
 0x42c   : > { %v2785_v52 = vadd.f32 %v2784_v35, %v2754_v38  ;;  %v2755_v44 = vmul.f32 %v2539_v57, %v1048_v13  ;;  %v1068_v13 = vadd.f32 %v5415_v2, %v5702_v45  ;;  %v5709_v45 = vld [vmem:[#allocation40_spill] sm:$0xff] }
 0x42e   : > { %v2786_v24 = vrot.slane %v2785_v52, 4  ;;  %v2792_v60 = vadd.f32 %v2756_v14, %v2755_v44  ;;  %v3541_v11 = vpop.f32.mrb[44].mxu1 }
 0x42f   : > { %v2758_v17 = vmul.f32 %v3541_v11, %v1054_v3  ;;  %v2549_v8 = vpop.f32.mrb[45].mxu1  ;;  %v2880_v3 = vrot.slane %v5403_v27, 1  ;;  %v5704_v11 = vld [vmem:[#allocation34_spill] sm:$0xff] }
 0x430   : > { %v2787_v48 = vadd.f32 %v2786_v24, %v2785_v52  ;;  %v2757_v37 = vmul.f32 %v2549_v8, %v1052_v50  ;;  %v5703_v24 = vld [vmem:[#allocation35_spill] sm:$0xff] }
 0x432   : > { %v2788_v39 = vrot.slane %v2787_v48, 2  ;;  %v2793_v26 = vadd.f32 %v2792_v60, %v2757_v37  ;;  %v3544_v54 = vpop.f32.mrb[46].mxu1  ;;  %v1074_v60 = vadd.f32 %v5405_v49, %v5703_v24 }
 0x433   : > { %v2760_v19 = vmul.f32 %v3544_v54, %v1058_v56  ;;  %v2559_v34 = vpop.f32.mrb[47].mxu1 }
 0x434   : > { %v2789_v1 = vadd.f32 %v2788_v39, %v2787_v48  ;;  %v2794_v46 = vadd.f32 %v2793_v26, %v2758_v17  ;;  %v2759_v58 = vmul.f32 %v2559_v34, %v1056_v42  ;;  %v1072_v17 = vadd.f32 %v5407_v55, %v5704_v11  ;;  %v5705_v34 = vld [vmem:[#allocation36_spill] sm:$0xff] }
 0x436   : > { %v2790_v4 = vrot.slane %v2789_v1, 1  ;;  %v2795_v40 = vrot.slane %v2794_v46, 4  ;;  %v2801_v29 = vadd.f32 %v2760_v19, %v2759_v58  ;;  %v3547_v63 = vpop.f32.mrb[48].mxu1 }
 0x437   : > { %v2762_v15 = vmul.f32 %v3547_v63, %v1062_v9  ;;  %v2569_v20 = vpop.f32.mrb[49].mxu1 }
 0x438   : > { %v2791_v32 = vadd.f32 %v2790_v4, %v2789_v1  ;;  %v2796_v7 = vadd.f32 %v2795_v40, %v2794_v46  ;;  %v2761_v28 = vmul.f32 %v2569_v20, %v1060_v53  ;;  %v1076_v1 = vadd.f32 %v5415_v2, %v5705_v34  ;;  %v5706_v46 = vld [vmem:[#allocation37_spill] sm:$0xff] }
 0x439   : > { %v1078_v58 = vadd.f32 %v5413_v30, %v5706_v46 }
 0x43a   : > { %v2895_v18 = vadd.f32 %v5403_v27, %v2791_v32  ;;  %v2797_v33 = vrot.slane %v2796_v7, 2  ;;  %v2802_v61 = vadd.f32 %v2801_v29, %v2761_v28  ;;  %v3550_v25 = vpop.f32.mrb[50].mxu1  ;;  %v2881_v29 = vrot.slane %v5403_v27, 2 }
 0x43b   : > { %v2764_v47 = vmul.f32 %v3550_v25, %v1066_v22  ;;  %v2579_v12 = vpop.f32.mrb[51].mxu1  ;;  %v1080_v22 = vadd.f32 %v5407_v55, %v5707_v21 }
 0x43c   : > { %v2798_v38 = vadd.f32 %v2797_v33, %v2796_v7  ;;  %v2803_v10 = vadd.f32 %v2802_v61, %v2762_v15  ;;  %v2763_v62 = vmul.f32 %v2579_v12, %v1064_v5  ;;  %v2903_v56 = vpack.c.bf16 %v2895_v18, %v2895_v18 }
 0x43d   : > { %v1082_v5 = vadd.f32 %v5405_v49, %v5708_v41 }
 0x43e   : > { %v2799_v35 = vrot.slane %v2798_v38, 1  ;;  %v2804_v31 = vrot.slane %v2803_v10, 4  ;;  %v2810_v14 = vadd.f32 %v2764_v47, %v2763_v62  ;;  %v3553_v57 = vpop.f32.mrb[52].mxu1  ;;  %v2942_v40 = vunpack.c.l.b16 %v2903_v56 }
 0x43f   : > { %v2766_v52 = vmul.f32 %v3553_v57, %v1070_v6  ;;  %v2589_v44 = vpop.f32.mrb[53].mxu1 }
 0x440   : > { %v2800_v23 = vadd.f32 %v2799_v35, %v2798_v38  ;;  %v2805_v43 = vadd.f32 %v2804_v31, %v2803_v10  ;;  %v2765_v50 = vmul.f32 %v2589_v44, %v1068_v13  ;;  %v1084_v13 = vadd.f32 %v5415_v2, %v5709_v45  ;;  %v5710_v35 = vld [vmem:[#allocation41_spill] sm:$0xff] }
 0x441   : > { %v1086_v31 = vadd.f32 %v5413_v30, %v5710_v35 }
 0x442   : > { %v2896_v8 = vadd.f32 %v2880_v3, %v2800_v23  ;;  %v2806_v48 = vrot.slane %v2805_v43, 2  ;;  %v2811_v37 = vadd.f32 %v2810_v14, %v2765_v50  ;;  %v3556_v51 = vpop.f32.mrb[54].mxu1  ;;  %v2882_v3 = vrot.slane %v5403_v27, 3 }
 0x443   : > { %v2768_v59 = vmul.f32 %v3556_v51, %v1074_v60  ;;  %v2599_v42 = vpop.f32.mrb[55].mxu1 }
 0x444   : > { %v2904_v39 = vpack.c.bf16 %v2896_v8, %v2896_v8  ;;  %v2807_v26 = vadd.f32 %v2806_v48, %v2805_v43  ;;  %v2812_v54 = vadd.f32 %v2811_v37, %v2766_v52  ;;  %v2767_v19 = vmul.f32 %v2599_v42, %v1072_v17  ;;  %v5711_v8 = vld [vmem:[#allocation42_spill] sm:$0xff]  ;;  %v5712_v37 = vld [vmem:[#allocation43_spill] sm:$0xff] }
 0x445   : > { %v1088_v48 = vadd.f32 %v5407_v55, %v5711_v8  ;;  %v1090_v51 = vadd.f32 %v5405_v49, %v5712_v37 }
 0x446   : > { %v2943_v36 = vunpack.c.l.b16 %v2904_v39  ;;  %v2808_v9 = vrot.slane %v2807_v26, 1  ;;  %v2813_v0 = vrot.slane %v2812_v54, 4  ;;  %v2819_v53 = vadd.f32 %v2768_v59, %v2767_v19  ;;  %v3559_v4 = vpop.f32.mrb[56].mxu1 }
 0x447   : > { %v2770_v63 = vmul.f32 %v3559_v4, %v1078_v58  ;;  %v2609_v15 = vpop.f32.mrb[57].mxu1 }
 0x448   : > { %v2950_v20 = vrot.slane %v2943_v36, 7  ;;  %v2809_v32 = vadd.f32 %v2808_v9, %v2807_v26  ;;  %v2814_v7 = vadd.f32 %v2813_v0, %v2812_v54  ;;  %v2769_v28 = vmul.f32 %v2609_v15, %v1076_v1  ;;  %v5713_v36 = vld [vmem:[#allocation44_spill] sm:$0xff]  ;;  %v5714_v0 = vld [vmem:[#allocation45_spill] sm:$0xff] }
 0x449   : > { %v1092_v9 = vadd.f32 %v5415_v2, %v5713_v36 }
 0x44a   : > { %v2951_v18 = vsel %vm1262_vm1, %v2950_v20, %v2942_v40  ;;  %v2897_v33 = vadd.f32 %v2881_v29, %v2809_v32  ;;  %v2815_v61 = vrot.slane %v2814_v7, 2  ;;  %v2820_v25 = vadd.f32 %v2819_v53, %v2769_v28  ;;  %v3562_v47 = vpop.f32.mrb[58].mxu1 }
 0x44b   : > { %v2772_v12 = vmul.f32 %v3562_v47, %v1082_v5  ;;  %v2619_v38 = vpop.f32.mrb[59].mxu1  ;;  %v1094_v53 = vadd.f32 %v5413_v30, %v5714_v0  ;;  %v2883_v20 = vrot.slane %v5403_v27, 4  ;;  %v5715_v5 = vld [vmem:[#allocation46_spill] sm:$0xff] }
 0x44c   : > { %v2905_v10 = vpack.c.bf16 %v2897_v33, %v2897_v33  ;;  %v2816_v62 = vadd.f32 %v2815_v61, %v2814_v7  ;;  %v2821_v16 = vadd.f32 %v2820_v25, %v2770_v63  ;;  %v2771_v6 = vmul.f32 %v2619_v38, %v1080_v22  ;;  %v5716_v33 = vld [vmem:[#allocation47_spill] sm:$0xff] }
 0x44d   : > { %v1098_v61 = vadd.f32 %v5405_v49, %v5716_v33 }
 0x44e   : > { %v2944_v14 = vunpack.c.l.b16 %v2905_v10  ;;  %v2817_v57 = vrot.slane %v2816_v62, 1  ;;  %v2822_v52 = vrot.slane %v2821_v16, 4  ;;  %v2828_v44 = vadd.f32 %v2772_v12, %v2771_v6  ;;  %v3565_v23 = vpop.f32.mrb[60].mxu1 }
 0x44f   : > { %v2774_v43 = vmul.f32 %v3565_v23, %v1086_v31  ;;  %v2629_v50 = vpop.f32.mrb[61].mxu1  ;;  %v5717_v31 = vld [vmem:[#allocation48_spill] sm:$0xff] }
 0x450   : > { %v2952_v24 = vrot.slane %v2944_v14, 6  ;;  %v2818_v60 = vadd.f32 %v2817_v57, %v2816_v62  ;;  %v2823_v11 = vadd.f32 %v2822_v52, %v2821_v16  ;;  %v2773_v17 = vmul.f32 %v2629_v50, %v1084_v13  ;;  %v5718_v57 = vld [vmem:[#allocation49_spill] sm:$0xff] }
 0x451   : > { %v1100_v14 = vadd.f32 %v5415_v2, %v5717_v31 }
 0x452   : > { %v2953_v56 = vsel %vm1264_vm2, %v2952_v24, %v2951_v18  ;;  %v2898_v59 = vadd.f32 %v2882_v3, %v2818_v60  ;;  %v2824_v42 = vrot.slane %v2823_v11, 2  ;;  %v2829_v39 = vadd.f32 %v2828_v44, %v2773_v17  ;;  %v3568_v26 = vpop.f32.mrb[62].mxu1 }
 0x453   : > { %v2776_v54 = vmul.f32 %v3568_v26, %v1090_v51  ;;  %v2639_v19 = vpop.f32.mrb[63].mxu1  ;;  %v1096_v18 = vadd.f32 %v5407_v55, %v5715_v5  ;;  %v1102_v55 = vadd.f32 %v5413_v30, %v5718_v57 }
 0x454   : > { %v2906_v34 = vpack.c.bf16 %v2898_v59, %v2898_v59  ;;  %v2825_v1 = vadd.f32 %v2824_v42, %v2823_v11  ;;  %v2830_v46 = vadd.f32 %v2829_v39, %v2774_v43  ;;  %v2775_v58 = vmul.f32 %v2639_v19, %v1088_v48 }
 0x455   : > { %v2884_v43 = vrot.slane %v5403_v27, 5 }
 0x456   : > { %v2945_v4 = vunpack.c.l.b16 %v2906_v34  ;;  %v2826_v40 = vrot.slane %v2825_v1, 1  ;;  %v2831_v29 = vrot.slane %v2830_v46, 4  ;;  %v2837_v63 = vadd.f32 %v2776_v54, %v2775_v58  ;;  %v3571_v15 = vpop.f32.mrb[64].mxu1 }
 0x457   : > { %v2778_v32 = vmul.f32 %v3571_v15, %v1094_v53  ;;  %v2649_v7 = vpop.f32.mrb[65].mxu1  ;;  %v2885_v34 = vrot.slane %v5403_v27, 6 }
 0x458   : > { %v2954_v28 = vrot.slane %v2945_v4, 5  ;;  %v2827_v21 = vadd.f32 %v2826_v40, %v2825_v1  ;;  %v2832_v22 = vadd.f32 %v2831_v29, %v2830_v46  ;;  %v2777_v41 = vmul.f32 %v2649_v7, %v1092_v9 }
 0x45a   : > { %v2899_v25 = vadd.f32 %v2883_v20, %v2827_v21  ;;  %v2833_v47 = vrot.slane %v2832_v22, 2  ;;  %v2838_v12 = vadd.f32 %v2837_v63, %v2777_v41  ;;  %v3574_v38 = vpop.f32.mrb[66].mxu1  ;;  %v2955_v10 = vsel %vm1266_vm3, %v2954_v28, %v2953_v56  ;;  %v3260_v41 = vld [vmem:[%s5719_s19] ss:$0 sm:$0xff] }
 0x45b   : > { %v2780_v62 = vmul.f32 %v3574_v38, %v1098_v61  ;;  %v2659_v16 = vpop.f32.mrb[67].mxu1  ;;  %v2886_v63 = vrot.slane %v5403_v27, 7 }
 0x45c   : > { %v2907_v6 = vpack.c.bf16 %v2899_v25, %v2899_v25  ;;  %v2834_v45 = vadd.f32 %v2833_v47, %v2832_v22  ;;  %v2839_v13 = vadd.f32 %v2838_v12, %v2778_v32  ;;  %v2779_v35 = vmul.f32 %v2659_v16, %v1096_v18 }
 0x45e   : > { %v2946_v52 = vunpack.c.l.b16 %v2907_v6  ;;  %v2835_v49 = vrot.slane %v2834_v45, 1  ;;  %v2840_v44 = vrot.slane %v2839_v13, 4  ;;  %v2846_v23 = vadd.f32 %v2780_v62, %v2779_v35  ;;  %v3577_v3 = vpop.f32.mrb[68].mxu1 }
 0x45f   : > { %v2782_v50 = vmul.f32 %v3577_v3, %v1102_v55  ;;  %v2669_v24 = vpop.f32.mrb[69].mxu1 }
 0x460   : > { %v2956_v60 = vrot.slane %v2946_v52, 4  ;;  %v2836_v11 = vadd.f32 %v2835_v49, %v2834_v45  ;;  %v2841_v17 = vadd.f32 %v2840_v44, %v2839_v13  ;;  %v2781_v8 = vmul.f32 %v2669_v24, %v1100_v14 }
 0x462   : > { %v2900_v48 = vadd.f32 %v2884_v43, %v2836_v11  ;;  %v2842_v37 = vrot.slane %v2841_v17, 2  ;;  %v2847_v51 = vadd.f32 %v2846_v23, %v2781_v8  ;;  %v2957_v2 = vsel %vm1268_vm4, %v2956_v60, %v2955_v10 }
 0x464   : > { %v2908_v56 = vpack.c.bf16 %v2900_v48, %v2900_v48  ;;  %v2843_v30 = vadd.f32 %v2842_v37, %v2841_v17  ;;  %v2848_v59 = vadd.f32 %v2847_v51, %v2782_v50 }
 0x466   : > { %v2947_v42 = vunpack.c.l.b16 %v2908_v56  ;;  %v2844_v39 = vrot.slane %v2843_v30, 1  ;;  %v2849_v26 = vrot.slane %v2848_v59, 4 }
 0x468   : > { %v2958_v54 = vrot.slane %v2947_v42, 3  ;;  %v2845_v19 = vadd.f32 %v2844_v39, %v2843_v30  ;;  %v2850_v1 = vadd.f32 %v2849_v26, %v2848_v59 }
 0x46a   : > { %v2901_v46 = vadd.f32 %v2885_v34, %v2845_v19  ;;  %v2851_v58 = vrot.slane %v2850_v1, 2  ;;  %v2959_v36 = vsel %vm1270_vm5, %v2958_v54, %v2957_v2 }
 0x46c   : > { %v2909_v9 = vpack.c.bf16 %v2901_v46, %v2901_v46  ;;  %v2852_v0 = vadd.f32 %v2851_v58, %v2850_v1 }
 0x46e   : > { %v2948_v53 = vunpack.c.l.b16 %v2909_v9  ;;  %v2853_v4 = vrot.slane %v2852_v0, 1 }
 0x470   : > { %v2960_v40 = vrot.slane %v2948_v53, 2  ;;  %v2854_v29 = vadd.f32 %v2853_v4, %v2852_v0 }
 0x472   : > { %v2902_v15 = vadd.f32 %v2886_v63, %v2854_v29  ;;  %v2961_v20 = vsel %vm1272_vm6, %v2960_v40, %v2959_v36 }
 0x474   : > { %v2910_v32 = vpack.c.bf16 %v2902_v15, %v2902_v15 }
 0x476   : > { %v2949_v7 = vunpack.c.l.b16 %v2910_v32 }
 0x478   : > { %v2962_v28 = vrot.slane %v2949_v7, 1 }
 0x47a   : > { %v2963_v21 = vsel %vm1274_vm7, %v2962_v28, %v2961_v20 }
 0x47b   : > { %v2964_v22 = vpack.c.b16 %v2963_v21, %v2963_v21 }
 0x47d   : > { %3600 = vmatmul.mubr.bf16.vlgmr.msra.gmra.mrb[68].mxu0 %v2964_v22 }
 0x550   : > { %v3048_v27 = vpop.f32.mrb[68].mxu0 }
 0x551   : > { %v3049_v5 = vadd.f32 %v3260_v41, %v3048_v27  ;;  %v3601_v18 = vpop.f32.mrb[69].mxu0 }
 0x552   : > { %v3051_v33 = vpop.f32.mrb[70].mxu0 }
 0x553   : > { %3054 = vst [vmem:[%s422_s25] sm:$0xff] %v3049_v5  ;;  %v3602_v61 = vpop.f32.mrb[71].mxu0 }
 0x554   : > { %4012 = shalt.err (!%p4009_p4)
}
 0x555   : > { %s4013_s12 = scalar_lea.hbm %s5500_s1, 128  ;;  %s4017_s22 = scalar_lea.hbm %s5720_s26, 256 }
 0x556   : > { %p4014_p9 = scmp.ne.s32.totalorder %s5500_s1, %s4013_s12  ;;  %p4018_p8 = scmp.lt.u32.totalorder %s5500_s1, %s5720_s26 }
 0x557   : > { %p4019_p13 = scmp.lt.u32.totalorder %s4017_s22, %s4013_s12  ;;  %p4021_p10 = scmp.lt.u32.totalorder %s4013_s12, %s5500_s1 }
 0x558   : > { %p4015_p0 = pnand %p4014_p9, %p4292_p5 }
 0x559   : > { %p4020_p6 = por %p4019_p13, %p4018_p8 }
 0x55a   : > { %p4016_p11 = pneg %p4015_p0 }
 0x55b   : > { %p4022_p3 = por %p4021_p10, %p4020_p6 }
 0x55d   : > { %p4023_p7 = pnand %p4022_p3, %p4016_p11 }
 0x55f   : > { %4026 = shalt.err (!%p4023_p7)
}
 0x560   : > { %3673 = dma.vmem_to_hbm [thread:$0]  (%p4292_p5), %s5502_s27, 128, %s5500_s1, %s3056_s9  }
 0x561 PF: > { %s5721_s25 = sld [smem:[#allocation15_spill]]  ;;  %s5722_s28 = sld [smem:[#allocation16_spill]] }
 0x562   : > { %p5724_p1 = scmp.ge.s32.totalorder %s4073_s16, 2 }
 0x567   : > { %s3081_s11 = sand.u32 1, %s5721_s25   ;;  %p5723_p12 = scmp.ne.s32.totalorder %s5722_s28, 0 }
 0x568   : > { %s3082_s17 = scalar_lea.sflag [#allocation4], %s3081_s11 }
 0x569   : > { %p3690_p2 = pnand %p5724_p1, %p5723_p12 }
 0x56b   : > { %4056 = dma.done.wait (!%p3690_p2), %s3082_s17, 128  }
 0x56c   : > { %4058 = vsyncadd (!%p3690_p2), %s3082_s17, 4294967168  ;;  %p25_p4 = scmp.ge.s32.totalorder %s4257_s18, 4   ;;  %s5725_s13 = smov %s4065_s14 }
 0x56d   : > { %s5726_s14 = smov %s4069_s15  ;;  %s5727_s15 = smov %s4288_s20 }
 0x56e   : > { %s5728_s16 = smov %s4257_s18  ;;  %27 = sbr.rel (!%p25_p4) target bundleno = 11 (0xb), region = 117 }
 0x575   :  { %3087 = vsyncpa [#allocation3], 1 }
 0x576   :  { %3089 = vsyncpa [#allocation3 + $0x1], 1 }
 0x577   :  { %3090 = vsyncpa [#allocation6], 1 }
 0x578   :  { %3091 = vsyncpa [#allocation9], 1 }
 0x579   :  { %3092 = vsyncpa [#allocation4], 1 }
 0x57a   :  { %3094 = vsyncpa [#allocation4 + $0x1], 1 }

</bundles_post_ra>
